<compile_context>
chip_gen: v7x
topology: tpu7x:2x2x1
jax: 0.10.0
libtpu: 0.0.40
codegen_flags: <defaults>
</compile_context>

<pallas_src>
import functools

import jax
import jax.numpy as jnp
from jax import lax
from jax.experimental import pallas as pl
from jax.experimental.pallas import tpu as pltpu


# Static row offsets of each weight matrix inside the packed parameter slabs
# (architecture channel widths are fixed: 32/64/128/256/512, n_out <= 128).
_OFF_A = {"w0": 0, "pwA1": 16, "pwA2": 80, "xxA": 208, "fc2": 240}      # bf16, width 128
_OFF_B = {"pwB1": 0, "pwB2": 128, "xxB": 384}                           # bf16, width 256
_OFF_S = {"biases": 0, "dwA1": 16, "dwA2": 24, "dwB1": 32, "dwB2": 40}  # f32, width 512


# ----------------------------------------------------------------------------
# Fused kernel
# ----------------------------------------------------------------------------

def _mscnn5_kernel(x7_ref, w128_ref, w256_ref, w512_ref, sm_ref,
                   logits_ref, probs_ref, *, B, Lh):
    f32, bf16 = jnp.float32, jnp.bfloat16
    R = B * Lh

    def relu(v):
        return jnp.maximum(v, 0.0)

    def mm(a_bf16, w, b):
        # bf16 operands on the MXU, f32 accumulation, f32 bias add.
        return jnp.dot(a_bf16, w, preferred_element_type=f32) + b

    def bias(row, c):
        base = _OFF_S["biases"] + row
        return sm_ref[base:base + 1, 0:c]                          # (1, c) f32

    def dw_same(x3d, dw_name, c):
        # Fused 5-tap depthwise conv with "same" zero padding along axis 1 of
        # an (B, Lh, c) f32 value.  Shifts are pltpu.roll on the sublane axis
        # (XLU); rows that wrapped around are masked back to zero.
        dwv = sm_ref[_OFF_S[dw_name]:_OFF_S[dw_name] + 5, 0:c]     # (5, c) f32
        it = lax.broadcasted_iota(jnp.int32, x3d.shape, 1)
        acc = x3d * dwv[2:3, :]                                    # centre tap
        for t in (0, 1, 3, 4):
            s = 2 - t
            r = pltpu.roll(x3d, shift=s % Lh, axis=1)
            if s > 0:
                r = jnp.where(it >= s, r, 0.0)
            else:
                r = jnp.where(it < Lh + s, r, 0.0)
            acc = acc + r * dwv[t:t + 1, :]
        return acc

    # ---- conv0 (+folded bn0, ReLU) on host-prepared im2col rows ------------
    # Rows [0, R) are even positions, rows [R, 2R) odd positions, so
    # MaxPool1d(2) is a plain elementwise max (no strided sublane reads).
    w0 = w128_ref[_OFF_A["w0"]:_OFF_A["w0"] + 16, 0:32]
    x1 = relu(mm(x7_ref[...], w0, bias(0, 32)))                    # (2R, 32)
    x0 = jnp.maximum(x1[0:R, :], x1[R:2 * R, :])                   # (R, 32)

    # ---- fused StackConvBlock #1 of both stacks (k=3 | k=5): 32 -> 64+64 ---
    x0_3d = x0.reshape(B, Lh, 32)
    xdup = jnp.concatenate([x0_3d, x0_3d], axis=-1)                # (B, Lh, 64)
    a = dw_same(xdup, "dwA1", 64).reshape(R, 64).astype(bf16)
    pwA1 = w128_ref[_OFF_A["pwA1"]:_OFF_A["pwA1"] + 64, :]
    c1 = relu(mm(a, pwA1, bias(1, 128)))                           # (R, 128)
    a = dw_same(c1.reshape(B, Lh, 128), "dwA2", 128).reshape(R, 128).astype(bf16)
    pwA2 = w128_ref[_OFF_A["pwA2"]:_OFF_A["pwA2"] + 128, :]
    xxA = w128_ref[_OFF_A["xxA"]:_OFF_A["xxA"] + 32, :]
    y1 = relu(mm(a, pwA2, bias(2, 128)) +
              mm(x0.astype(bf16), xxA, bias(3, 128)))              # (R, 128)

    # ---- fused StackConvBlock #2 of both stacks: 64+64 -> 128+128 ----------
    a = dw_same(y1.reshape(B, Lh, 128), "dwB1", 128).reshape(R, 128).astype(bf16)
    pwB1 = w256_ref[_OFF_B["pwB1"]:_OFF_B["pwB1"] + 128, :]
    d1 = relu(mm(a, pwB1, bias(4, 256)))                           # (R, 256)
    a = dw_same(d1.reshape(B, Lh, 256), "dwB2", 256).reshape(R, 256).astype(bf16)
    pwB2 = w256_ref[_OFF_B["pwB2"]:_OFF_B["pwB2"] + 256, :]
    xxB = w256_ref[_OFF_B["xxB"]:_OFF_B["xxB"] + 128, :]
    y2 = relu(mm(a, pwB2, bias(5, 256)) +
              mm(y1.astype(bf16), xxB, bias(6, 256)))              # (R, 256)

    # ---- AdaptiveAvgPool1d(1) over length: sublane mean reduce -------------
    # Fused channel layout is already [stack3(128) | stack5(128)] == torch.cat.
    feat = jnp.mean(y2.reshape(B, Lh, 256), axis=1)                # (B, 256)

    # ---- head: Dropout(0.5)=identity, fc1+ReLU, fc2 (lane-padded), softmax -
    # TODO(synk): training-mode dropout randomness not reproduced.
    h = relu(mm(feat.astype(bf16), w512_ref[...], bias(7, 512)))   # (B, 512)
    fc2 = w128_ref[_OFF_A["fc2"]:_OFF_A["fc2"] + 512, :]
    z = mm(h.astype(bf16), fc2, bias(8, 128))                      # (B, 128)
    logits_ref[...] = z                                            # pad lanes ~ -1e30
    zmax = jnp.max(z, axis=-1, keepdims=True)
    e = jnp.exp(z - zmax)                                          # pad lanes -> 0
    probs_ref[...] = e * pl.reciprocal(jnp.sum(e, axis=-1, keepdims=True),
                                       approx=True)


# ----------------------------------------------------------------------------
# Host-side glue: im2col for conv0 (even/odd blocks), forward wrapper
# ----------------------------------------------------------------------------

def _conv0_inputs(x_ncw):
    # (B, 1, L) -> (2*B*Lh, 16) bf16 im2col rows for the k=7 "same" conv,
    # reordered as [even positions ; odd positions]; K padded 7 -> 16.
    B, _, L = x_ncw.shape
    Lh = L // 2
    xp = jnp.pad(x_ncw[:, 0, :], ((0, 0), (3, 3)))                  # (B, L+6)
    cols = jnp.stack([xp[:, t:t + L] for t in range(7)], axis=-1)   # (B, L, 7)
    cols = jnp.pad(cols, ((0, 0), (0, 0), (0, 9)))                  # (B, L, 16)
    even = cols[:, 0::2, :].reshape(B * Lh, 16)
    odd = cols[:, 1::2, :].reshape(B * Lh, 16)
    return jnp.concatenate([even, odd], axis=0).astype(jnp.bfloat16)


def mscnn5_forward(x_ncw, packed, *, n_out):
    B, cin, L = x_ncw.shape
    assert cin == 1 and L % 2 == 0
    Lh = L // 2
    assert Lh % 8 == 0, "Lh must be a multiple of 8 for aligned tiles"

    x7 = _conv0_inputs(x_ncw)

    kernel = functools.partial(_mscnn5_kernel, B=B, Lh=Lh)
    vmem = pl.BlockSpec(memory_space=pltpu.MemorySpace.VMEM)
    logits_p, probs_p = pl.pallas_call(
        kernel,
        out_shape=(jax.ShapeDtypeStruct((B, 128), jnp.float32),
                   jax.ShapeDtypeStruct((B, 128), jnp.float32)),
        in_specs=[vmem] * 5,
        out_specs=(vmem, vmem),
    )(x7, packed["w128"], packed["w256"], packed["w512"], packed["sm"])
    # Lane-dense (B,128) outputs; slice the real classes outside the kernel.
    return logits_p[:, :n_out], probs_p[:, :n_out]


# ----------------------------------------------------------------------------
# Parameter init (deterministic, synthetic) + inference-mode folding / packing
# ----------------------------------------------------------------------------

def _init(key, shape, scale=0.1):
    return scale * jax.random.normal(key, shape, dtype=jnp.float32)


def _make_dwsep(key, cin, cout, k):
    k1, k2, k3, k4 = jax.random.split(key, 4)
    return dict(dw_w=_init(k1, (k, cin), 0.3), dw_b=_init(k2, (1, cin), 0.1),
                pw_w=_init(k3, (cin, cout), 0.3), pw_b=_init(k4, (1, cout), 0.1))


def _make_bn(key, c):
    k1, k2 = jax.random.split(key)
    gamma = 1.0 + 0.1 * jax.random.normal(k1, (1, c), dtype=jnp.float32)
    beta = 0.1 * jax.random.normal(k2, (1, c), dtype=jnp.float32)
    return dict(gamma=gamma, beta=beta, eps=1e-5)


def _make_block(key, cin, cout, k):
    ks = jax.random.split(key, 6)
    return dict(conv1=_make_dwsep(ks[0], cin, cout, k), bn1=_make_bn(ks[1], cout),
                conv2=_make_dwsep(ks[2], cout, cout, k), bn2=_make_bn(ks[3], cout),
                xx_w=_init(ks[4], (cin, cout), 0.3), xx_b=_init(ks[5], (1, cout), 0.1))


def init_params(key, in_channel=1, out_channel=15):
    ks = jax.random.split(key, 10)
    return dict(
        conv0=_make_dwsep(ks[0], in_channel, 32, 7), bn0=_make_bn(ks[1], 32),
        stack3=dict(block1=_make_block(ks[2], 32, 64, 3),
                    block2=_make_block(ks[3], 64, 128, 3)),
        stack5=dict(block1=_make_block(ks[4], 32, 64, 5),
                    block2=_make_block(ks[5], 64, 128, 5)),
        fc1_w=_init(ks[6], (128 * 2, 512), 0.05), fc1_b=_init(ks[7], (1, 512), 0.05),
        fc2_w=_init(ks[8], (512, out_channel), 0.05),
        fc2_b=_init(ks[9], (1, out_channel), 0.05),
    )


def prepare_params(raw, n_out):
    """Fold BN, fuse the k=3/k=5 stacks channel-wise, pack into 4 slabs."""
    assert n_out <= 128
    f32, bf16 = jnp.float32, jnp.bfloat16

    def bn_ss(bn):
        # inference BN with as-constructed running stats (mean=0, var=1)
        return bn["gamma"] / jnp.sqrt(1.0 + bn["eps"]), bn["beta"]

    def fold(conv, bn):
        s, sh = bn_ss(bn)
        pw = conv["pw_w"] * s                                           # (cin, cout)
        b = (conv["dw_b"] @ conv["pw_w"] + conv["pw_b"]) * s + sh       # (1, cout)
        return conv["dw_w"], pw, b

    def pad_taps(dw, K=5):
        p = (K - dw.shape[0]) // 2
        return jnp.pad(dw, ((p, p), (0, 0)))

    def bdiag(a, b):
        z1 = jnp.zeros((a.shape[0], b.shape[1]), f32)
        z2 = jnp.zeros((b.shape[0], a.shape[1]), f32)
        return jnp.concatenate([jnp.concatenate([a, z1], 1),
                                jnp.concatenate([z2, b], 1)], 0)

    cat1 = lambda a, b: jnp.concatenate([a, b], axis=1)

    # conv0 + bn0 folded into a single (7, 32) im2col weight
    s0, sh0 = bn_ss(raw["bn0"])
    c0 = raw["conv0"]
    w0 = (c0["dw_w"] @ c0["pw_w"]) * s0                                 # (7, 32)
    b0 = (c0["dw_b"] @ c0["pw_w"] + c0["pw_b"]) * s0 + sh0              # (1, 32)

    def fold_block(blk):
        dw1, pw1, b1 = fold(blk["conv1"], blk["bn1"])
        dw2, pw2, b2 = fold(blk["conv2"], blk["bn2"])
        return dict(dw1=pad_taps(dw1), pw1=pw1, b1=b1,
                    dw2=pad_taps(dw2), pw2=pw2, b2=b2,
                    xxw=blk["xx_w"], xxb=blk["xx_b"])

    s3b1 = fold_block(raw["stack3"]["block1"]); s5b1 = fold_block(raw["stack5"]["block1"])
    s3b2 = fold_block(raw["stack3"]["block2"]); s5b2 = fold_block(raw["stack5"]["block2"])

    # Fused block A (= both stacks' first StackConvBlock, 32 -> 64+64)
    dwA1 = cat1(s3b1["dw1"], s5b1["dw1"])           # (5, 64)
    pwA1 = bdiag(s3b1["pw1"], s5b1["pw1"])          # (64, 128)
    bA1 = cat1(s3b1["b1"], s5b1["b1"])              # (1, 128)
    dwA2 = cat1(s3b1["dw2"], s5b1["dw2"])           # (5, 128)
    pwA2 = bdiag(s3b1["pw2"], s5b1["pw2"])          # (128, 128)
    bA2 = cat1(s3b1["b2"], s5b1["b2"])              # (1, 128)
    xxA = cat1(s3b1["xxw"], s5b1["xxw"])            # (32, 128)  shared 32-ch input
    bxxA = cat1(s3b1["xxb"], s5b1["xxb"])           # (1, 128)

    # Fused block B (= both stacks' second StackConvBlock, 64+64 -> 128+128)
    dwB1 = cat1(s3b2["dw1"], s5b2["dw1"])           # (5, 128)
    pwB1 = bdiag(s3b2["pw1"], s5b2["pw1"])          # (128, 256)
    bB1 = cat1(s3b2["b1"], s5b2["b1"])              # (1, 256)
    dwB2 = cat1(s3b2["dw2"], s5b2["dw2"])           # (5, 256)
    pwB2 = bdiag(s3b2["pw2"], s5b2["pw2"])          # (256, 256)
    bB2 = cat1(s3b2["b2"], s5b2["b2"])              # (1, 256)
    xxB = bdiag(s3b2["xxw"], s5b2["xxw"])           # (128, 256)
    bxxB = cat1(s3b2["xxb"], s5b2["xxb"])           # (1, 256)

    fc1_w, fc1_b = raw["fc1_w"], raw["fc1_b"]                           # (256,512),(1,512)
    fc2_w = jnp.pad(raw["fc2_w"], ((0, 0), (0, 128 - n_out)))           # (512, 128)
    fc2_b = jnp.pad(raw["fc2_b"], ((0, 0), (0, 128 - n_out)),
                    constant_values=-1e30)                              # (1, 128)

    def padw(a, width):
        return jnp.pad(a, ((0, (-a.shape[0]) % 8), (0, width - a.shape[1])))

    w0_16 = jnp.pad(w0, ((0, 9), (0, 0)))                               # K padded 7 -> 16

    w128 = jnp.concatenate([padw(w0_16, 128), padw(pwA1, 128), padw(pwA2, 128),
                            padw(xxA, 128), padw(fc2_w, 128)], axis=0).astype(bf16)
    w256 = jnp.concatenate([padw(pwB1, 256), padw(pwB2, 256), padw(xxB, 256)],
                           axis=0).astype(bf16)
    w512 = fc1_w.astype(bf16)                                            # (256, 512)

    row = lambda v: jnp.pad(v.reshape(1, -1), ((0, 0), (0, 512 - v.size)))
    biases = jnp.concatenate([row(b0), row(bA1), row(bA2), row(bxxA),
                              row(bB1), row(bB2), row(bxxB),
                              row(fc1_b), row(fc2_b)], axis=0)           # (9, 512)
    sm = jnp.concatenate([padw(biases, 512), padw(dwA1, 512), padw(dwA2, 512),
                          padw(dwB1, 512), padw(dwB2, 512)], axis=0).astype(f32)

    assert w128.shape == (752, 128) and w256.shape == (512, 256)
    assert w512.shape == (256, 512) and sm.shape == (48, 512)
    return dict(w128=w128, w256=w256, w512=w512, sm=sm)


# ----------------------------------------------------------------------------
# Main
# ----------------------------------------------------------------------------

if __name__ == "__main__":
    key = jax.random.PRNGKey(0)
    kp, kx = jax.random.split(key)

    B, C_in, L, n_out = 2, 1, 64, 15
    raw = init_params(kp, in_channel=C_in, out_channel=n_out)
    packed = prepare_params(raw, n_out=n_out)

    x_ncw = jax.random.normal(kx, (B, C_in, L), dtype=jnp.float32)   # PyTorch NCW

    fwd = jax.jit(functools.partial(mscnn5_forward, n_out=n_out))
    logits, probs = fwd(x_ncw, packed)
    jax.block_until_ready((logits, probs))

    assert logits.shape == (B, n_out) and probs.shape == (B, n_out)
    assert bool(jnp.all(jnp.isfinite(logits)))
    assert bool(jnp.all(jnp.abs(jnp.sum(probs, axis=1) - 1.0) < 5e-3))
    print("KERNEL_OK")
</pallas_src>

<mosaic_0001>
module attributes {stable_mosaic.version = 11 : i64} {
  func.func @_mscnn5_kernel(%arg0: memref<128x16xbf16, #tpu.memory_space<vmem>>, %arg1: memref<752x128xbf16, #tpu.memory_space<vmem>>, %arg2: memref<512x256xbf16, #tpu.memory_space<vmem>>, %arg3: memref<256x512xbf16, #tpu.memory_space<vmem>>, %arg4: memref<48x512xf32, #tpu.memory_space<vmem>>, %arg5: memref<2x128xf32, #tpu.memory_space<vmem>>, %arg6: memref<2x128xf32, #tpu.memory_space<vmem>>) attributes {dimension_semantics = [], scalar_prefetch = 0 : i64, scratch_operands = 0 : i64, tpu.core_type = #tpu.core_type<tc>} {
    %c0 = arith.constant 0 : index
    %c0_0 = arith.constant 0 : index
    %0 = vector.load %arg1[%c0, %c0_0] : memref<752x128xbf16, #tpu.memory_space<vmem>>, vector<16x32xbf16>
    %c0_1 = arith.constant 0 : index
    %c0_2 = arith.constant 0 : index
    %1 = vector.load %arg0[%c0_1, %c0_2] : memref<128x16xbf16, #tpu.memory_space<vmem>>, vector<128x16xbf16>
    %c0_3 = arith.constant 0 : index
    %c0_4 = arith.constant 0 : index
    %2 = vector.load %arg4[%c0_3, %c0_4] : memref<48x512xf32, #tpu.memory_space<vmem>>, vector<1x32xf32>
    %cst = arith.constant dense<0.000000e+00> : vector<128x32xf32>
    %3 = tpu.matmul %1, %0, %cst {dimension_numbers = #tpu.dot_dimension_numbers<[1], [0], [0], [1], [0, 0, 1, 1], [], []>} : vector<128x16xbf16>, vector<16x32xbf16>, vector<128x32xf32> -> vector<128x32xf32>
    %4 = vector.broadcast %2 : vector<1x32xf32> to vector<128x32xf32>
    %5 = arith.addf %3, %4 : vector<128x32xf32>
    %cst_5 = arith.constant 0.000000e+00 : f32
    %6 = vector.broadcast %cst_5 : f32 to vector<128x32xf32>
    %7 = arith.maximumf %5, %6 : vector<128x32xf32>
    %8 = vector.extract_strided_slice %7 {offsets = [0, 0], sizes = [64, 32], strides = [1, 1]} : vector<128x32xf32> to vector<64x32xf32>
    %9 = vector.extract_strided_slice %7 {offsets = [64, 0], sizes = [64, 32], strides = [1, 1]} : vector<128x32xf32> to vector<64x32xf32>
    %10 = arith.maximumf %8, %9 : vector<64x32xf32>
    %11 = vector.shape_cast %10 : vector<64x32xf32> to vector<2x32x32xf32>
    %12 = tpu.concatenate %11, %11 in 2 : vector<2x32x32xf32>, vector<2x32x32xf32> -> vector<2x32x64xf32>
    %c16 = arith.constant 16 : index
    %c0_6 = arith.constant 0 : index
    %13 = vector.load %arg4[%c16, %c0_6] : memref<48x512xf32, #tpu.memory_space<vmem>>, vector<5x64xf32>
    %14 = tpu.iota {dimensions = array<i32: 1>} : vector<2x32x64xi32>
    %15 = vector.extract_strided_slice %13 {offsets = [2, 0], sizes = [1, 64], strides = [1, 1]} : vector<5x64xf32> to vector<1x64xf32>
    %16 = vector.shape_cast %15 : vector<1x64xf32> to vector<1x1x64xf32>
    %17 = vector.broadcast %16 : vector<1x1x64xf32> to vector<2x32x64xf32>
    %18 = arith.mulf %12, %17 : vector<2x32x64xf32>
    %c2_i32 = arith.constant 2 : i32
    %19 = tpu.dynamic_rotate %12 by %c2_i32 dim 1 : vector<2x32x64xf32>, i32 -> vector<2x32x64xf32>
    %c2_i32_7 = arith.constant 2 : i32
    %20 = vector.broadcast %c2_i32_7 : i32 to vector<2x32x64xi32>
    %21 = arith.cmpi sge, %14, %20 : vector<2x32x64xi32>
    %cst_8 = arith.constant 0.000000e+00 : f32
    %22 = vector.broadcast %cst_8 : f32 to vector<2x32x64xf32>
    %23 = arith.select %21, %19, %22 : vector<2x32x64xi1>, vector<2x32x64xf32>
    %24 = vector.extract_strided_slice %13 {offsets = [0, 0], sizes = [1, 64], strides = [1, 1]} : vector<5x64xf32> to vector<1x64xf32>
    %25 = vector.shape_cast %24 : vector<1x64xf32> to vector<1x1x64xf32>
    %26 = vector.broadcast %25 : vector<1x1x64xf32> to vector<2x32x64xf32>
    %27 = arith.mulf %23, %26 : vector<2x32x64xf32>
    %28 = arith.addf %18, %27 : vector<2x32x64xf32>
    %c1_i32 = arith.constant 1 : i32
    %29 = tpu.dynamic_rotate %12 by %c1_i32 dim 1 : vector<2x32x64xf32>, i32 -> vector<2x32x64xf32>
    %c1_i32_9 = arith.constant 1 : i32
    %30 = vector.broadcast %c1_i32_9 : i32 to vector<2x32x64xi32>
    %31 = arith.cmpi sge, %14, %30 : vector<2x32x64xi32>
    %cst_10 = arith.constant 0.000000e+00 : f32
    %32 = vector.broadcast %cst_10 : f32 to vector<2x32x64xf32>
    %33 = arith.select %31, %29, %32 : vector<2x32x64xi1>, vector<2x32x64xf32>
    %34 = vector.extract_strided_slice %13 {offsets = [1, 0], sizes = [1, 64], strides = [1, 1]} : vector<5x64xf32> to vector<1x64xf32>
    %35 = vector.shape_cast %34 : vector<1x64xf32> to vector<1x1x64xf32>
    %36 = vector.broadcast %35 : vector<1x1x64xf32> to vector<2x32x64xf32>
    %37 = arith.mulf %33, %36 : vector<2x32x64xf32>
    %38 = arith.addf %28, %37 : vector<2x32x64xf32>
    %c31_i32 = arith.constant 31 : i32
    %39 = tpu.dynamic_rotate %12 by %c31_i32 dim 1 : vector<2x32x64xf32>, i32 -> vector<2x32x64xf32>
    %c31_i32_11 = arith.constant 31 : i32
    %40 = vector.broadcast %c31_i32_11 : i32 to vector<2x32x64xi32>
    %41 = arith.cmpi slt, %14, %40 : vector<2x32x64xi32>
    %cst_12 = arith.constant 0.000000e+00 : f32
    %42 = vector.broadcast %cst_12 : f32 to vector<2x32x64xf32>
    %43 = arith.select %41, %39, %42 : vector<2x32x64xi1>, vector<2x32x64xf32>
    %44 = vector.extract_strided_slice %13 {offsets = [3, 0], sizes = [1, 64], strides = [1, 1]} : vector<5x64xf32> to vector<1x64xf32>
    %45 = vector.shape_cast %44 : vector<1x64xf32> to vector<1x1x64xf32>
    %46 = vector.broadcast %45 : vector<1x1x64xf32> to vector<2x32x64xf32>
    %47 = arith.mulf %43, %46 : vector<2x32x64xf32>
    %48 = arith.addf %38, %47 : vector<2x32x64xf32>
    %c30_i32 = arith.constant 30 : i32
    %49 = tpu.dynamic_rotate %12 by %c30_i32 dim 1 : vector<2x32x64xf32>, i32 -> vector<2x32x64xf32>
    %c30_i32_13 = arith.constant 30 : i32
    %50 = vector.broadcast %c30_i32_13 : i32 to vector<2x32x64xi32>
    %51 = arith.cmpi slt, %14, %50 : vector<2x32x64xi32>
    %cst_14 = arith.constant 0.000000e+00 : f32
    %52 = vector.broadcast %cst_14 : f32 to vector<2x32x64xf32>
    %53 = arith.select %51, %49, %52 : vector<2x32x64xi1>, vector<2x32x64xf32>
    %54 = vector.extract_strided_slice %13 {offsets = [4, 0], sizes = [1, 64], strides = [1, 1]} : vector<5x64xf32> to vector<1x64xf32>
    %55 = vector.shape_cast %54 : vector<1x64xf32> to vector<1x1x64xf32>
    %56 = vector.broadcast %55 : vector<1x1x64xf32> to vector<2x32x64xf32>
    %57 = arith.mulf %53, %56 : vector<2x32x64xf32>
    %58 = arith.addf %48, %57 : vector<2x32x64xf32>
    %59 = vector.shape_cast %58 : vector<2x32x64xf32> to vector<64x64xf32>
    %60 = arith.truncf %59 : vector<64x64xf32> to vector<64x64xbf16>
    %c16_15 = arith.constant 16 : index
    %c0_16 = arith.constant 0 : index
    %61 = vector.load %arg1[%c16_15, %c0_16] : memref<752x128xbf16, #tpu.memory_space<vmem>>, vector<64x128xbf16>
    %c1 = arith.constant 1 : index
    %c0_17 = arith.constant 0 : index
    %62 = vector.load %arg4[%c1, %c0_17] : memref<48x512xf32, #tpu.memory_space<vmem>>, vector<1x128xf32>
    %cst_18 = arith.constant dense<0.000000e+00> : vector<64x128xf32>
    %63 = tpu.matmul %60, %61, %cst_18 {dimension_numbers = #tpu.dot_dimension_numbers<[1], [0], [0], [1], [0, 0, 1, 1], [], []>} : vector<64x64xbf16>, vector<64x128xbf16>, vector<64x128xf32> -> vector<64x128xf32>
    %64 = vector.broadcast %62 : vector<1x128xf32> to vector<64x128xf32>
    %65 = arith.addf %63, %64 : vector<64x128xf32>
    %cst_19 = arith.constant 0.000000e+00 : f32
    %66 = vector.broadcast %cst_19 : f32 to vector<64x128xf32>
    %67 = arith.maximumf %65, %66 : vector<64x128xf32>
    %68 = vector.shape_cast %67 : vector<64x128xf32> to vector<2x32x128xf32>
    %c24 = arith.constant 24 : index
    %c0_20 = arith.constant 0 : index
    %69 = vector.load %arg4[%c24, %c0_20] : memref<48x512xf32, #tpu.memory_space<vmem>>, vector<5x128xf32>
    %70 = tpu.iota {dimensions = array<i32: 1>} : vector<2x32x128xi32>
    %71 = vector.extract_strided_slice %69 {offsets = [2, 0], sizes = [1, 128], strides = [1, 1]} : vector<5x128xf32> to vector<1x128xf32>
    %72 = vector.shape_cast %71 : vector<1x128xf32> to vector<1x1x128xf32>
    %73 = vector.broadcast %72 : vector<1x1x128xf32> to vector<2x32x128xf32>
    %74 = arith.mulf %68, %73 : vector<2x32x128xf32>
    %c2_i32_21 = arith.constant 2 : i32
    %75 = tpu.dynamic_rotate %68 by %c2_i32_21 dim 1 : vector<2x32x128xf32>, i32 -> vector<2x32x128xf32>
    %c2_i32_22 = arith.constant 2 : i32
    %76 = vector.broadcast %c2_i32_22 : i32 to vector<2x32x128xi32>
    %77 = arith.cmpi sge, %70, %76 : vector<2x32x128xi32>
    %cst_23 = arith.constant 0.000000e+00 : f32
    %78 = vector.broadcast %cst_23 : f32 to vector<2x32x128xf32>
    %79 = arith.select %77, %75, %78 : vector<2x32x128xi1>, vector<2x32x128xf32>
    %80 = vector.extract_strided_slice %69 {offsets = [0, 0], sizes = [1, 128], strides = [1, 1]} : vector<5x128xf32> to vector<1x128xf32>
    %81 = vector.shape_cast %80 : vector<1x128xf32> to vector<1x1x128xf32>
    %82 = vector.broadcast %81 : vector<1x1x128xf32> to vector<2x32x128xf32>
    %83 = arith.mulf %79, %82 : vector<2x32x128xf32>
    %84 = arith.addf %74, %83 : vector<2x32x128xf32>
    %c1_i32_24 = arith.constant 1 : i32
    %85 = tpu.dynamic_rotate %68 by %c1_i32_24 dim 1 : vector<2x32x128xf32>, i32 -> vector<2x32x128xf32>
    %c1_i32_25 = arith.constant 1 : i32
    %86 = vector.broadcast %c1_i32_25 : i32 to vector<2x32x128xi32>
    %87 = arith.cmpi sge, %70, %86 : vector<2x32x128xi32>
    %cst_26 = arith.constant 0.000000e+00 : f32
    %88 = vector.broadcast %cst_26 : f32 to vector<2x32x128xf32>
    %89 = arith.select %87, %85, %88 : vector<2x32x128xi1>, vector<2x32x128xf32>
    %90 = vector.extract_strided_slice %69 {offsets = [1, 0], sizes = [1, 128], strides = [1, 1]} : vector<5x128xf32> to vector<1x128xf32>
    %91 = vector.shape_cast %90 : vector<1x128xf32> to vector<1x1x128xf32>
    %92 = vector.broadcast %91 : vector<1x1x128xf32> to vector<2x32x128xf32>
    %93 = arith.mulf %89, %92 : vector<2x32x128xf32>
    %94 = arith.addf %84, %93 : vector<2x32x128xf32>
    %c31_i32_27 = arith.constant 31 : i32
    %95 = tpu.dynamic_rotate %68 by %c31_i32_27 dim 1 : vector<2x32x128xf32>, i32 -> vector<2x32x128xf32>
    %c31_i32_28 = arith.constant 31 : i32
    %96 = vector.broadcast %c31_i32_28 : i32 to vector<2x32x128xi32>
    %97 = arith.cmpi slt, %70, %96 : vector<2x32x128xi32>
    %cst_29 = arith.constant 0.000000e+00 : f32
    %98 = vector.broadcast %cst_29 : f32 to vector<2x32x128xf32>
    %99 = arith.select %97, %95, %98 : vector<2x32x128xi1>, vector<2x32x128xf32>
    %100 = vector.extract_strided_slice %69 {offsets = [3, 0], sizes = [1, 128], strides = [1, 1]} : vector<5x128xf32> to vector<1x128xf32>
    %101 = vector.shape_cast %100 : vector<1x128xf32> to vector<1x1x128xf32>
    %102 = vector.broadcast %101 : vector<1x1x128xf32> to vector<2x32x128xf32>
    %103 = arith.mulf %99, %102 : vector<2x32x128xf32>
    %104 = arith.addf %94, %103 : vector<2x32x128xf32>
    %c30_i32_30 = arith.constant 30 : i32
    %105 = tpu.dynamic_rotate %68 by %c30_i32_30 dim 1 : vector<2x32x128xf32>, i32 -> vector<2x32x128xf32>
    %c30_i32_31 = arith.constant 30 : i32
    %106 = vector.broadcast %c30_i32_31 : i32 to vector<2x32x128xi32>
    %107 = arith.cmpi slt, %70, %106 : vector<2x32x128xi32>
    %cst_32 = arith.constant 0.000000e+00 : f32
    %108 = vector.broadcast %cst_32 : f32 to vector<2x32x128xf32>
    %109 = arith.select %107, %105, %108 : vector<2x32x128xi1>, vector<2x32x128xf32>
    %110 = vector.extract_strided_slice %69 {offsets = [4, 0], sizes = [1, 128], strides = [1, 1]} : vector<5x128xf32> to vector<1x128xf32>
    %111 = vector.shape_cast %110 : vector<1x128xf32> to vector<1x1x128xf32>
    %112 = vector.broadcast %111 : vector<1x1x128xf32> to vector<2x32x128xf32>
    %113 = arith.mulf %109, %112 : vector<2x32x128xf32>
    %114 = arith.addf %104, %113 : vector<2x32x128xf32>
    %115 = vector.shape_cast %114 : vector<2x32x128xf32> to vector<64x128xf32>
    %116 = arith.truncf %115 : vector<64x128xf32> to vector<64x128xbf16>
    %c80 = arith.constant 80 : index
    %c0_33 = arith.constant 0 : index
    %117 = vector.load %arg1[%c80, %c0_33] : memref<752x128xbf16, #tpu.memory_space<vmem>>, vector<128x128xbf16>
    %c208 = arith.constant 208 : index
    %c0_34 = arith.constant 0 : index
    %118 = vector.load %arg1[%c208, %c0_34] : memref<752x128xbf16, #tpu.memory_space<vmem>>, vector<32x128xbf16>
    %c2 = arith.constant 2 : index
    %c0_35 = arith.constant 0 : index
    %119 = vector.load %arg4[%c2, %c0_35] : memref<48x512xf32, #tpu.memory_space<vmem>>, vector<1x128xf32>
    %cst_36 = arith.constant dense<0.000000e+00> : vector<64x128xf32>
    %120 = tpu.matmul %116, %117, %cst_36 {dimension_numbers = #tpu.dot_dimension_numbers<[1], [0], [0], [1], [0, 0, 1, 1], [], []>} : vector<64x128xbf16>, vector<128x128xbf16>, vector<64x128xf32> -> vector<64x128xf32>
    %121 = vector.broadcast %119 : vector<1x128xf32> to vector<64x128xf32>
    %122 = arith.addf %120, %121 : vector<64x128xf32>
    %123 = arith.truncf %10 : vector<64x32xf32> to vector<64x32xbf16>
    %c3 = arith.constant 3 : index
    %c0_37 = arith.constant 0 : index
    %124 = vector.load %arg4[%c3, %c0_37] : memref<48x512xf32, #tpu.memory_space<vmem>>, vector<1x128xf32>
    %cst_38 = arith.constant dense<0.000000e+00> : vector<64x128xf32>
    %125 = tpu.matmul %123, %118, %cst_38 {dimension_numbers = #tpu.dot_dimension_numbers<[1], [0], [0], [1], [0, 0, 1, 1], [], []>} : vector<64x32xbf16>, vector<32x128xbf16>, vector<64x128xf32> -> vector<64x128xf32>
    %126 = vector.broadcast %124 : vector<1x128xf32> to vector<64x128xf32>
    %127 = arith.addf %125, %126 : vector<64x128xf32>
    %128 = arith.addf %122, %127 : vector<64x128xf32>
    %cst_39 = arith.constant 0.000000e+00 : f32
    %129 = vector.broadcast %cst_39 : f32 to vector<64x128xf32>
    %130 = arith.maximumf %128, %129 : vector<64x128xf32>
    %131 = vector.shape_cast %130 : vector<64x128xf32> to vector<2x32x128xf32>
    %c32 = arith.constant 32 : index
    %c0_40 = arith.constant 0 : index
    %132 = vector.load %arg4[%c32, %c0_40] : memref<48x512xf32, #tpu.memory_space<vmem>>, vector<5x128xf32>
    %133 = tpu.iota {dimensions = array<i32: 1>} : vector<2x32x128xi32>
    %134 = vector.extract_strided_slice %132 {offsets = [2, 0], sizes = [1, 128], strides = [1, 1]} : vector<5x128xf32> to vector<1x128xf32>
    %135 = vector.shape_cast %134 : vector<1x128xf32> to vector<1x1x128xf32>
    %136 = vector.broadcast %135 : vector<1x1x128xf32> to vector<2x32x128xf32>
    %137 = arith.mulf %131, %136 : vector<2x32x128xf32>
    %c2_i32_41 = arith.constant 2 : i32
    %138 = tpu.dynamic_rotate %131 by %c2_i32_41 dim 1 : vector<2x32x128xf32>, i32 -> vector<2x32x128xf32>
    %c2_i32_42 = arith.constant 2 : i32
    %139 = vector.broadcast %c2_i32_42 : i32 to vector<2x32x128xi32>
    %140 = arith.cmpi sge, %133, %139 : vector<2x32x128xi32>
    %cst_43 = arith.constant 0.000000e+00 : f32
    %141 = vector.broadcast %cst_43 : f32 to vector<2x32x128xf32>
    %142 = arith.select %140, %138, %141 : vector<2x32x128xi1>, vector<2x32x128xf32>
    %143 = vector.extract_strided_slice %132 {offsets = [0, 0], sizes = [1, 128], strides = [1, 1]} : vector<5x128xf32> to vector<1x128xf32>
    %144 = vector.shape_cast %143 : vector<1x128xf32> to vector<1x1x128xf32>
    %145 = vector.broadcast %144 : vector<1x1x128xf32> to vector<2x32x128xf32>
    %146 = arith.mulf %142, %145 : vector<2x32x128xf32>
    %147 = arith.addf %137, %146 : vector<2x32x128xf32>
    %c1_i32_44 = arith.constant 1 : i32
    %148 = tpu.dynamic_rotate %131 by %c1_i32_44 dim 1 : vector<2x32x128xf32>, i32 -> vector<2x32x128xf32>
    %c1_i32_45 = arith.constant 1 : i32
    %149 = vector.broadcast %c1_i32_45 : i32 to vector<2x32x128xi32>
    %150 = arith.cmpi sge, %133, %149 : vector<2x32x128xi32>
    %cst_46 = arith.constant 0.000000e+00 : f32
    %151 = vector.broadcast %cst_46 : f32 to vector<2x32x128xf32>
    %152 = arith.select %150, %148, %151 : vector<2x32x128xi1>, vector<2x32x128xf32>
    %153 = vector.extract_strided_slice %132 {offsets = [1, 0], sizes = [1, 128], strides = [1, 1]} : vector<5x128xf32> to vector<1x128xf32>
    %154 = vector.shape_cast %153 : vector<1x128xf32> to vector<1x1x128xf32>
    %155 = vector.broadcast %154 : vector<1x1x128xf32> to vector<2x32x128xf32>
    %156 = arith.mulf %152, %155 : vector<2x32x128xf32>
    %157 = arith.addf %147, %156 : vector<2x32x128xf32>
    %c31_i32_47 = arith.constant 31 : i32
    %158 = tpu.dynamic_rotate %131 by %c31_i32_47 dim 1 : vector<2x32x128xf32>, i32 -> vector<2x32x128xf32>
    %c31_i32_48 = arith.constant 31 : i32
    %159 = vector.broadcast %c31_i32_48 : i32 to vector<2x32x128xi32>
    %160 = arith.cmpi slt, %133, %159 : vector<2x32x128xi32>
    %cst_49 = arith.constant 0.000000e+00 : f32
    %161 = vector.broadcast %cst_49 : f32 to vector<2x32x128xf32>
    %162 = arith.select %160, %158, %161 : vector<2x32x128xi1>, vector<2x32x128xf32>
    %163 = vector.extract_strided_slice %132 {offsets = [3, 0], sizes = [1, 128], strides = [1, 1]} : vector<5x128xf32> to vector<1x128xf32>
    %164 = vector.shape_cast %163 : vector<1x128xf32> to vector<1x1x128xf32>
    %165 = vector.broadcast %164 : vector<1x1x128xf32> to vector<2x32x128xf32>
    %166 = arith.mulf %162, %165 : vector<2x32x128xf32>
    %167 = arith.addf %157, %166 : vector<2x32x128xf32>
    %c30_i32_50 = arith.constant 30 : i32
    %168 = tpu.dynamic_rotate %131 by %c30_i32_50 dim 1 : vector<2x32x128xf32>, i32 -> vector<2x32x128xf32>
    %c30_i32_51 = arith.constant 30 : i32
    %169 = vector.broadcast %c30_i32_51 : i32 to vector<2x32x128xi32>
    %170 = arith.cmpi slt, %133, %169 : vector<2x32x128xi32>
    %cst_52 = arith.constant 0.000000e+00 : f32
    %171 = vector.broadcast %cst_52 : f32 to vector<2x32x128xf32>
    %172 = arith.select %170, %168, %171 : vector<2x32x128xi1>, vector<2x32x128xf32>
    %173 = vector.extract_strided_slice %132 {offsets = [4, 0], sizes = [1, 128], strides = [1, 1]} : vector<5x128xf32> to vector<1x128xf32>
    %174 = vector.shape_cast %173 : vector<1x128xf32> to vector<1x1x128xf32>
    %175 = vector.broadcast %174 : vector<1x1x128xf32> to vector<2x32x128xf32>
    %176 = arith.mulf %172, %175 : vector<2x32x128xf32>
    %177 = arith.addf %167, %176 : vector<2x32x128xf32>
    %178 = vector.shape_cast %177 : vector<2x32x128xf32> to vector<64x128xf32>
    %179 = arith.truncf %178 : vector<64x128xf32> to vector<64x128xbf16>
    %c0_53 = arith.constant 0 : index
    %c0_54 = arith.constant 0 : index
    %180 = vector.load %arg2[%c0_53, %c0_54] : memref<512x256xbf16, #tpu.memory_space<vmem>>, vector<128x256xbf16>
    %c4 = arith.constant 4 : index
    %c0_55 = arith.constant 0 : index
    %181 = vector.load %arg4[%c4, %c0_55] : memref<48x512xf32, #tpu.memory_space<vmem>>, vector<1x256xf32>
    %cst_56 = arith.constant dense<0.000000e+00> : vector<64x256xf32>
    %182 = tpu.matmul %179, %180, %cst_56 {dimension_numbers = #tpu.dot_dimension_numbers<[1], [0], [0], [1], [0, 0, 1, 1], [], []>} : vector<64x128xbf16>, vector<128x256xbf16>, vector<64x256xf32> -> vector<64x256xf32>
    %183 = vector.broadcast %181 : vector<1x256xf32> to vector<64x256xf32>
    %184 = arith.addf %182, %183 : vector<64x256xf32>
    %cst_57 = arith.constant 0.000000e+00 : f32
    %185 = vector.broadcast %cst_57 : f32 to vector<64x256xf32>
    %186 = arith.maximumf %184, %185 : vector<64x256xf32>
    %187 = vector.shape_cast %186 : vector<64x256xf32> to vector<2x32x256xf32>
    %c40 = arith.constant 40 : index
    %c0_58 = arith.constant 0 : index
    %188 = vector.load %arg4[%c40, %c0_58] : memref<48x512xf32, #tpu.memory_space<vmem>>, vector<5x256xf32>
    %189 = tpu.iota {dimensions = array<i32: 1>} : vector<2x32x256xi32>
    %190 = vector.extract_strided_slice %188 {offsets = [2, 0], sizes = [1, 256], strides = [1, 1]} : vector<5x256xf32> to vector<1x256xf32>
    %191 = vector.shape_cast %190 : vector<1x256xf32> to vector<1x1x256xf32>
    %192 = vector.broadcast %191 : vector<1x1x256xf32> to vector<2x32x256xf32>
    %193 = arith.mulf %187, %192 : vector<2x32x256xf32>
    %c2_i32_59 = arith.constant 2 : i32
    %194 = tpu.dynamic_rotate %187 by %c2_i32_59 dim 1 : vector<2x32x256xf32>, i32 -> vector<2x32x256xf32>
    %c2_i32_60 = arith.constant 2 : i32
    %195 = vector.broadcast %c2_i32_60 : i32 to vector<2x32x256xi32>
    %196 = arith.cmpi sge, %189, %195 : vector<2x32x256xi32>
    %cst_61 = arith.constant 0.000000e+00 : f32
    %197 = vector.broadcast %cst_61 : f32 to vector<2x32x256xf32>
    %198 = arith.select %196, %194, %197 : vector<2x32x256xi1>, vector<2x32x256xf32>
    %199 = vector.extract_strided_slice %188 {offsets = [0, 0], sizes = [1, 256], strides = [1, 1]} : vector<5x256xf32> to vector<1x256xf32>
    %200 = vector.shape_cast %199 : vector<1x256xf32> to vector<1x1x256xf32>
    %201 = vector.broadcast %200 : vector<1x1x256xf32> to vector<2x32x256xf32>
    %202 = arith.mulf %198, %201 : vector<2x32x256xf32>
    %203 = arith.addf %193, %202 : vector<2x32x256xf32>
    %c1_i32_62 = arith.constant 1 : i32
    %204 = tpu.dynamic_rotate %187 by %c1_i32_62 dim 1 : vector<2x32x256xf32>, i32 -> vector<2x32x256xf32>
    %c1_i32_63 = arith.constant 1 : i32
    %205 = vector.broadcast %c1_i32_63 : i32 to vector<2x32x256xi32>
    %206 = arith.cmpi sge, %189, %205 : vector<2x32x256xi32>
    %cst_64 = arith.constant 0.000000e+00 : f32
    %207 = vector.broadcast %cst_64 : f32 to vector<2x32x256xf32>
    %208 = arith.select %206, %204, %207 : vector<2x32x256xi1>, vector<2x32x256xf32>
    %209 = vector.extract_strided_slice %188 {offsets = [1, 0], sizes = [1, 256], strides = [1, 1]} : vector<5x256xf32> to vector<1x256xf32>
    %210 = vector.shape_cast %209 : vector<1x256xf32> to vector<1x1x256xf32>
    %211 = vector.broadcast %210 : vector<1x1x256xf32> to vector<2x32x256xf32>
    %212 = arith.mulf %208, %211 : vector<2x32x256xf32>
    %213 = arith.addf %203, %212 : vector<2x32x256xf32>
    %c31_i32_65 = arith.constant 31 : i32
    %214 = tpu.dynamic_rotate %187 by %c31_i32_65 dim 1 : vector<2x32x256xf32>, i32 -> vector<2x32x256xf32>
    %c31_i32_66 = arith.constant 31 : i32
    %215 = vector.broadcast %c31_i32_66 : i32 to vector<2x32x256xi32>
    %216 = arith.cmpi slt, %189, %215 : vector<2x32x256xi32>
    %cst_67 = arith.constant 0.000000e+00 : f32
    %217 = vector.broadcast %cst_67 : f32 to vector<2x32x256xf32>
    %218 = arith.select %216, %214, %217 : vector<2x32x256xi1>, vector<2x32x256xf32>
    %219 = vector.extract_strided_slice %188 {offsets = [3, 0], sizes = [1, 256], strides = [1, 1]} : vector<5x256xf32> to vector<1x256xf32>
    %220 = vector.shape_cast %219 : vector<1x256xf32> to vector<1x1x256xf32>
    %221 = vector.broadcast %220 : vector<1x1x256xf32> to vector<2x32x256xf32>
    %222 = arith.mulf %218, %221 : vector<2x32x256xf32>
    %223 = arith.addf %213, %222 : vector<2x32x256xf32>
    %c30_i32_68 = arith.constant 30 : i32
    %224 = tpu.dynamic_rotate %187 by %c30_i32_68 dim 1 : vector<2x32x256xf32>, i32 -> vector<2x32x256xf32>
    %c30_i32_69 = arith.constant 30 : i32
    %225 = vector.broadcast %c30_i32_69 : i32 to vector<2x32x256xi32>
    %226 = arith.cmpi slt, %189, %225 : vector<2x32x256xi32>
    %cst_70 = arith.constant 0.000000e+00 : f32
    %227 = vector.broadcast %cst_70 : f32 to vector<2x32x256xf32>
    %228 = arith.select %226, %224, %227 : vector<2x32x256xi1>, vector<2x32x256xf32>
    %229 = vector.extract_strided_slice %188 {offsets = [4, 0], sizes = [1, 256], strides = [1, 1]} : vector<5x256xf32> to vector<1x256xf32>
    %230 = vector.shape_cast %229 : vector<1x256xf32> to vector<1x1x256xf32>
    %231 = vector.broadcast %230 : vector<1x1x256xf32> to vector<2x32x256xf32>
    %232 = arith.mulf %228, %231 : vector<2x32x256xf32>
    %233 = arith.addf %223, %232 : vector<2x32x256xf32>
    %234 = vector.shape_cast %233 : vector<2x32x256xf32> to vector<64x256xf32>
    %235 = arith.truncf %234 : vector<64x256xf32> to vector<64x256xbf16>
    %c128 = arith.constant 128 : index
    %c0_71 = arith.constant 0 : index
    %236 = vector.load %arg2[%c128, %c0_71] : memref<512x256xbf16, #tpu.memory_space<vmem>>, vector<256x256xbf16>
    %c384 = arith.constant 384 : index
    %c0_72 = arith.constant 0 : index
    %237 = vector.load %arg2[%c384, %c0_72] : memref<512x256xbf16, #tpu.memory_space<vmem>>, vector<128x256xbf16>
    %c5 = arith.constant 5 : index
    %c0_73 = arith.constant 0 : index
    %238 = vector.load %arg4[%c5, %c0_73] : memref<48x512xf32, #tpu.memory_space<vmem>>, vector<1x256xf32>
    %cst_74 = arith.constant dense<0.000000e+00> : vector<64x256xf32>
    %239 = tpu.matmul %235, %236, %cst_74 {dimension_numbers = #tpu.dot_dimension_numbers<[1], [0], [0], [1], [0, 0, 1, 1], [], []>} : vector<64x256xbf16>, vector<256x256xbf16>, vector<64x256xf32> -> vector<64x256xf32>
    %240 = vector.broadcast %238 : vector<1x256xf32> to vector<64x256xf32>
    %241 = arith.addf %239, %240 : vector<64x256xf32>
    %242 = arith.truncf %130 : vector<64x128xf32> to vector<64x128xbf16>
    %c6 = arith.constant 6 : index
    %c0_75 = arith.constant 0 : index
    %243 = vector.load %arg4[%c6, %c0_75] : memref<48x512xf32, #tpu.memory_space<vmem>>, vector<1x256xf32>
    %cst_76 = arith.constant dense<0.000000e+00> : vector<64x256xf32>
    %244 = tpu.matmul %242, %237, %cst_76 {dimension_numbers = #tpu.dot_dimension_numbers<[1], [0], [0], [1], [0, 0, 1, 1], [], []>} : vector<64x128xbf16>, vector<128x256xbf16>, vector<64x256xf32> -> vector<64x256xf32>
    %245 = vector.broadcast %243 : vector<1x256xf32> to vector<64x256xf32>
    %246 = arith.addf %244, %245 : vector<64x256xf32>
    %247 = arith.addf %241, %246 : vector<64x256xf32>
    %cst_77 = arith.constant 0.000000e+00 : f32
    %248 = vector.broadcast %cst_77 : f32 to vector<64x256xf32>
    %249 = arith.maximumf %247, %248 : vector<64x256xf32>
    %250 = vector.shape_cast %249 : vector<64x256xf32> to vector<2x32x256xf32>
    %cst_78 = arith.constant dense<0.000000e+00> : vector<2x256xf32>
    %251 = vector.multi_reduction <add>, %250, %cst_78 [1] : vector<2x32x256xf32> to vector<2x256xf32>
    %cst_79 = arith.constant 3.200000e+01 : f32
    %252 = vector.broadcast %cst_79 : f32 to vector<2x256xf32>
    %253 = arith.divf %251, %252 : vector<2x256xf32>
    %254 = arith.truncf %253 : vector<2x256xf32> to vector<2x256xbf16>
    %c0_80 = arith.constant 0 : index
    %c0_81 = arith.constant 0 : index
    %255 = vector.load %arg3[%c0_80, %c0_81] : memref<256x512xbf16, #tpu.memory_space<vmem>>, vector<256x512xbf16>
    %c7 = arith.constant 7 : index
    %c0_82 = arith.constant 0 : index
    %256 = vector.load %arg4[%c7, %c0_82] : memref<48x512xf32, #tpu.memory_space<vmem>>, vector<1x512xf32>
    %cst_83 = arith.constant dense<0.000000e+00> : vector<2x512xf32>
    %257 = tpu.matmul %254, %255, %cst_83 {dimension_numbers = #tpu.dot_dimension_numbers<[1], [0], [0], [1], [0, 0, 1, 1], [], []>} : vector<2x256xbf16>, vector<256x512xbf16>, vector<2x512xf32> -> vector<2x512xf32>
    %258 = vector.broadcast %256 : vector<1x512xf32> to vector<2x512xf32>
    %259 = arith.addf %257, %258 : vector<2x512xf32>
    %cst_84 = arith.constant 0.000000e+00 : f32
    %260 = vector.broadcast %cst_84 : f32 to vector<2x512xf32>
    %261 = arith.maximumf %259, %260 : vector<2x512xf32>
    %c240 = arith.constant 240 : index
    %c0_85 = arith.constant 0 : index
    %262 = vector.load %arg1[%c240, %c0_85] : memref<752x128xbf16, #tpu.memory_space<vmem>>, vector<512x128xbf16>
    %263 = arith.truncf %261 : vector<2x512xf32> to vector<2x512xbf16>
    %c8 = arith.constant 8 : index
    %c0_86 = arith.constant 0 : index
    %264 = vector.load %arg4[%c8, %c0_86] : memref<48x512xf32, #tpu.memory_space<vmem>>, vector<1x128xf32>
    %cst_87 = arith.constant dense<0.000000e+00> : vector<2x128xf32>
    %265 = tpu.matmul %263, %262, %cst_87 {dimension_numbers = #tpu.dot_dimension_numbers<[1], [0], [0], [1], [0, 0, 1, 1], [], []>} : vector<2x512xbf16>, vector<512x128xbf16>, vector<2x128xf32> -> vector<2x128xf32>
    %266 = vector.broadcast %264 : vector<1x128xf32> to vector<2x128xf32>
    %267 = arith.addf %265, %266 : vector<2x128xf32>
    %c0_88 = arith.constant 0 : index
    %c0_89 = arith.constant 0 : index
    %268 = vector.load %arg5[%c0_88, %c0_89] : memref<2x128xf32, #tpu.memory_space<vmem>>, vector<2x128xf32>
    tpu.vector_store %arg5[%c0_88, %c0_89], %267 {strides = array<i32>} : memref<2x128xf32, #tpu.memory_space<vmem>>, vector<2x128xf32>,
    %cst_90 = arith.constant dense<0xFF800000> : vector<2xf32>
    %269 = vector.multi_reduction <maximumf>, %267, %cst_90 [1] : vector<2x128xf32> to vector<2xf32>
    %270 = vector.shape_cast %269 : vector<2xf32> to vector<2x1xf32>
    %271 = vector.broadcast %270 : vector<2x1xf32> to vector<2x128xf32>
    %272 = arith.subf %267, %271 : vector<2x128xf32>
    %273 = math.exp %272 : vector<2x128xf32>
    %cst_91 = arith.constant dense<0.000000e+00> : vector<2xf32>
    %274 = vector.multi_reduction <add>, %273, %cst_91 [1] : vector<2x128xf32> to vector<2xf32>
    %275 = vector.shape_cast %274 : vector<2xf32> to vector<2x1xf32>
    %276 = tpu.reciprocal %275 {approx = true} : vector<2x1xf32> -> vector<2x1xf32>
    %277 = vector.broadcast %276 : vector<2x1xf32> to vector<2x128xf32>
    %278 = arith.mulf %273, %277 : vector<2x128xf32>
    %c0_92 = arith.constant 0 : index
    %c0_93 = arith.constant 0 : index
    %279 = vector.load %arg6[%c0_92, %c0_93] : memref<2x128xf32, #tpu.memory_space<vmem>>, vector<2x128xf32>
    tpu.vector_store %arg6[%c0_92, %c0_93], %278 {strides = array<i32>} : memref<2x128xf32, #tpu.memory_space<vmem>>, vector<2x128xf32>,
    return
  }
}

</mosaic_0001>

<bundles_post_ra>
// kernel: mscnn5_forward.1
= control target key start
LH: loop header
LB: loop body
LE: loop exit
PB: predicated region body
PF: predicated region fallthrough
CT: control target
= control target key end

     0   :  { %12 = vsyncpa [#allocation3], 0  ;;  %s5904_s0 = inlined_call_operand.vmem [shape: bf16[128,16], index: 0, kind: input, shape index: {}]   ;;  %s5905_s1 = inlined_call_operand.hbm [shape: bf16[752,128], index: 1, kind: input, shape index: {}]   ;;  %s5906_s2 = inlined_call_operand.hbm [shape: bf16[512,256], index: 2, kind: input, shape index: {}]   ;;  %s5907_s3 = inlined_call_operand.hbm [shape: bf16[256,512], index: 3, kind: input, shape index: {}]   ;;  %s5908_s4 = inlined_call_operand.vmem [shape: f32[48,512], index: 4, kind: input, shape index: {}]   ;;  %s5909_s5 = inlined_call_operand.hbm [shape: f32[2,128], index: 5, kind: output, shape index: {0}]   ;;  %s5910_s6 = inlined_call_operand.hbm [shape: f32[2,128], index: 6, kind: output, shape index: {1}]  }
   0x1   :  { %13 = vsyncpa [#allocation6], 0 }
   0x2   :  { %14 = vsyncpa [#allocation4], 0 }
   0x3   :  { %15 = vsyncpa [#allocation10], 0  ;;  %s4109_s21 = smov [#allocation5]   ;;  %s3991_s25 = scalar_lea.hbm %s5906_s2, 8192 }
   0x4   :  { %s35_s22 = sshll.u32 %s4109_s21, 4  ;;  %p3992_p0 = scmp.ne.s32.totalorder %s5906_s2, %s3991_s25  ;;  %s36_s22 = int_to_ptr.vmem [resolvable:$true] %s35_s22 }
   0x5   :  { %p3995_p1 = scmp.lt.u32.totalorder %s3991_s25, %s5906_s2 }
   0x7   :  { %p3997_p2 = pnand %p3995_p1, %p3992_p0 }
   0x9   :  { %4000 = shalt.err (!%p3997_p2)
}
   0xa   :  { %s4001_s30 = scalar_lea.vmem %s36_s22, 8192  ;;  %p4006_p4 = scmp.lt.s32.totalorder %s36_s22, %s36_s22 }
   0xb   :  { %p4002_p3 = scmp.ne.s32.totalorder %s36_s22, %s4001_s30  ;;  %p4007_p5 = scmp.lt.s32.totalorder %s4001_s30, %s4001_s30 }
   0xd   :  { %p4008_p6 = por %p4007_p5, %p4006_p4 }
   0xf   :  { %p4009_p7 = pnand %p4008_p6, %p4002_p3 }
  0x11   :  { %4012 = shalt.err (!%p4009_p7)
}
  0x12   :  { %s4110_s7 = smov 128   ;;  %s4111_s8 = smov 8  }
  0x13   :  { %41 = dma.hbm_to_vmem [thread:$0]  %s5906_s2, 8192, %s36_s22, [#allocation6], %s4110_s7, %s4110_s7, %s4111_s8  }
  0x14   :  { %s4112_s11 = smov [#allocation2]   ;;  %s4013_s15 = scalar_lea.hbm %s5905_s1, 6016 }
  0x15   :  { %s23_s12 = sshll.u32 %s4112_s11, 4  ;;  %p4014_p8 = scmp.ne.s32.totalorder %s5905_s1, %s4013_s15  ;;  %s24_s12 = int_to_ptr.vmem [resolvable:$true] %s23_s12 }
  0x16   :  { %p4017_p9 = scmp.lt.u32.totalorder %s4013_s15, %s5905_s1 }
  0x18   :  { %p4019_p10 = pnand %p4017_p9, %p4014_p8 }
  0x1a   :  { %4022 = shalt.err (!%p4019_p10)
}
  0x1b   :  { %s4023_s20 = scalar_lea.vmem %s24_s12, 6016  ;;  %p4028_p12 = scmp.lt.s32.totalorder %s24_s12, %s24_s12 }
  0x1c   :  { %p4024_p11 = scmp.ne.s32.totalorder %s24_s12, %s4023_s20  ;;  %p4029_p13 = scmp.lt.s32.totalorder %s4023_s20, %s4023_s20 }
  0x1e   :  { %p4030_p0 = por %p4029_p13, %p4028_p12 }
  0x20   :  { %p4031_p1 = pnand %p4030_p0, %p4024_p11 }
  0x22   :  { %4034 = shalt.err (!%p4031_p1)
}
  0x23   :  { %s4113_s2 = smov 64   ;;  %s4114_s21 = smov 4  }
  0x24   :  { %29 = dma.hbm_to_vmem [thread:$0]  %s5905_s1, 6016, %s24_s12, [#allocation3], %s4113_s2, %s4113_s2, %s4114_s21  }
  0x25   :  { %s4115_s24 = smov [#allocation7]   ;;  %s4035_s28 = scalar_lea.hbm %s5907_s3, 8192 }
  0x26   :  { %s47_s25 = sshll.u32 %s4115_s24, 4  ;;  %p4036_p2 = scmp.ne.s32.totalorder %s5907_s3, %s4035_s28  ;;  %s48_s25 = int_to_ptr.vmem [resolvable:$true] %s47_s25 }
  0x27   :  { %p4039_p3 = scmp.lt.u32.totalorder %s4035_s28, %s5907_s3 }
  0x29   :  { %p4041_p4 = pnand %p4039_p3, %p4036_p2 }
  0x2b   :  { %4044 = shalt.err (!%p4041_p4)
}
  0x2c   :  { %s4045_s9 = scalar_lea.vmem %s48_s25, 8192  ;;  %p4050_p6 = scmp.lt.s32.totalorder %s48_s25, %s48_s25 }
  0x2d   :  { %p4046_p5 = scmp.ne.s32.totalorder %s48_s25, %s4045_s9  ;;  %p4051_p7 = scmp.lt.s32.totalorder %s4045_s9, %s4045_s9 }
  0x2f   :  { %p4052_p8 = por %p4051_p7, %p4050_p6 }
  0x31   :  { %p4053_p9 = pnand %p4052_p8, %p4046_p5 }
  0x33   :  { %4056 = shalt.err (!%p4053_p9)
}
  0x34   :  { %s4116_s1 = smov 256   ;;  %s4117_s10 = smov 16  }
  0x35   :  { %53 = dma.hbm_to_vmem [thread:$0]  %s5907_s3, 8192, %s48_s25, [#allocation6], %s4116_s1, %s4116_s1, %s4117_s10  }
  0x36   :  { %4101 = dma.done.wait [#allocation3], 6016  }
  0x37   :  { %4102 = vsyncadd [#allocation3], 4294961280 }
  0x38   :  { %4103 = dma.done.wait [#allocation6], 16384  }
  0x39   :  { %4104 = vsyncadd [#allocation6], 4294950912  ;;  %v3740_v0 = vld [vmem:[#allocation2] sm:$0xff]   ;;  %vm131_vm0 = vcmask 130048   ;;  %v3742_v2 = vld [vmem:[%s5904_s0 + $0x8] sm:$0xff]   ;;  %vm309_vm1 = vcmask 261120  }
  0x3a   :  { %v3741_v1 = vld [vmem:[%s5904_s0] sm:$0xff]   ;;  %3585 = vmatprep.subr.bf16.mxu0 %v3740_v0  ;;  %v3743_v3 = vld [vmem:[%s5904_s0 + $0x10] sm:$0xff]   ;;  %v3744_v4 = vld [vmem:[%s5904_s0 + $0x18] sm:$0xff]   ;;  %vm569_vm10 = vcmask 523264   ;;  %vm2505_vm11 = vcmask 1041409   ;;  %vm3260_vm12 = vcmask 1041408  }
  0x3b   :  { %3586 = vmatpush3.bf16.msra.mxu0 %v3740_v0  ;;  %3587 = vmatprep.mubr.msk.bf16.mxu0 %vm131_vm0, %v3741_v1  ;;  %v3745_v5 = vld [vmem:[%s5904_s0 + $0x20] sm:$0xff]   ;;  %v3746_v6 = vld [vmem:[%s5904_s0 + $0x28] sm:$0xff]   ;;  %v3747_v7 = vld [vmem:[%s5904_s0 + $0x30] sm:$0xff]   ;;  %s4120_s28 = smov [#allocation8]  }
  0x3c   :  { %v3748_v8 = vld [vmem:[%s5904_s0 + $0x38] sm:$0xff]   ;;  %v84_v17 = vld [vmem:[%s5908_s4] ss:$0 sm:$0xff]  ;;  %v3749_v24 = vld [vmem:[#allocation2 + $0x8] sm:$0xff]   ;;  %s4118_s0 = smov 32  }
  0x3d   :  { %3603 = vmatprep.subr.bf16.mxu1 %v3749_v24  ;;  %v3750_v43 = vld [vmem:[#allocation2 + $0x10] sm:$0xff]  }
  0x3e   :  { %3588 = vmatmul.mubr.msk.bf16.vlgmr.msra.gmra.mrb[0].mxu0 %vm131_vm0, %v3742_v2  ;;  %3604 = vmatpush3.bf16.msra.mxu1 %v3749_v24 }
  0x3f   :  { %3591 = vmatprep.mubr.msk.bf16.mxu0 %vm131_vm0, %v3743_v3  ;;  %3605 = vmatprep.subr.bf16.mxu1 %v3750_v43  ;;  %v3751_v3 = vld [vmem:[#allocation2 + $0x18] sm:$0xff]  }
  0x42   :  { %3606 = vmatpush3.bf16.msra.mxu1 %v3750_v43 }
  0x43   :  { %3607 = vmatprep.subr.bf16.mxu1 %v3751_v3 }
  0x46   :  { %3592 = vmatmul.mubr.msk.bf16.gmra.mrb[4].mxu0 %vm131_vm0, %v3744_v4  ;;  %3608 = vmatpush3.bf16.msra.mxu1 %v3751_v3 }
  0x47   :  { %3595 = vmatprep.mubr.msk.bf16.mxu0 %vm131_vm0, %v3745_v5  ;;  %v3752_v5 = vld [vmem:[#allocation2 + $0x20] sm:$0xff]  }
  0x48   :  { %3609 = vmatprep.subr.bf16.mxu1 %v3752_v5 }
  0x4a   :  { %3610 = vmatpush3.bf16.msra.mxu1 %v3752_v5 }
  0x4e   :  { %3596 = vmatmul.mubr.msk.bf16.gmra.mrb[8].mxu0 %vm131_vm0, %v3746_v6  ;;  %v3753_v6 = vld [vmem:[#allocation2 + $0x28] sm:$0xff]  }
  0x4f   :  { %3599 = vmatprep.mubr.msk.bf16.mxu0 %vm131_vm0, %v3747_v7  ;;  %v3754_v7 = vld [vmem:[#allocation2 + $0x30] sm:$0xff]   ;;  %3619 = vmatprep.subr.bf16.mxu0 %v3753_v6 }
  0x50   :  { %3620 = vmatpush3.bf16.msra.mxu0 %v3753_v6 }
  0x51   :  { %3621 = vmatprep.subr.bf16.mxu0 %v3754_v7 }
  0x54   :  { %3622 = vmatpush3.bf16.msra.mxu0 %v3754_v7 }
  0x56   :  { %3600 = vmatmul.mubr.msk.bf16.gmra.mrb[12].mxu0 %vm131_vm0, %v3748_v8  ;;  %v3755_v8 = vld [vmem:[#allocation2 + $0x38] sm:$0xff]  }
  0x57   :  { %3623 = vmatprep.subr.bf16.mxu0 %v3755_v8 }
  0x58   :  { %3624 = vmatpush3.bf16.msra.mxu0 %v3755_v8 }
 0x111   :  { %v3589_v9 = vpop.f32.mrb[0].mxu0 }
 0x112   :  { %v190_v10 = vpop.f32.mrb[1].mxu0  ;;  %v199_v18 = vadd.f32 %v3589_v9, %v84_v17  ;;  %v319_v9 = vlaneseq }
 0x113   :  { %v3590_v11 = vpop.f32.mrb[2].mxu0  ;;  %v191_v19 = vadd.f32 %v190_v10, %v84_v17 }
 0x114   :  { %v193_v12 = vpop.f32.mrb[3].mxu0  ;;  %v202_v21 = vadd.f32 %v3590_v11, %v84_v17  ;;  %v255_v28 = vmax.f32 %v199_v18, 0.0  ;;  %v4260_v10 = vshrl.u32 %v319_v9, 7 }
 0x115   :  { %v194_v25 = vadd.f32 %v193_v12, %v84_v17  ;;  %v253_v32 = vmax.f32 %v191_v19, 0.0  ;;  %v318_v12 = vld [vmem:[%s5908_s4 + $0x40] sm:$0x1f] }
 0x116   :  { %v256_v35 = vmax.f32 %v202_v21, 0.0  ;;  %v4263_v11 = vsub.s32 2, %v4260_v10  ;;  %vm344_vm2 = vcmp.lt.s32.totalorder %v4260_v10, 2  ;;  %vm393_vm3 = vcmp.lt.s32.totalorder %v4260_v10, 1 }
 0x117   :  { %v254_v38 = vmax.f32 %v194_v25, 0.0  ;;  %vm442_vm4 = vcmp.lt.s32.totalorder %v4260_v10, 7  ;;  %vm491_vm5 = vcmp.lt.s32.totalorder %v4260_v10, 6  ;;  %vm353_vm7 = vcmp.ge.s32.totalorder %v4260_v10, 2 }
 0x118   :  { %5952 = vst [vmem:[#allocation18_spill] sm:$0xff] %v4263_v11  ;;  %v4284_v18 = vrot.slane %v318_v12, %v4263_v11  ;;  %vm402_vm8 = vcmp.ge.s32.totalorder %v4260_v10, 1 }
 0x119   :  { %v3593_v13 = vpop.f32.mrb[4].mxu0 }
 0x11a   :  { %v206_v14 = vpop.f32.mrb[5].mxu0  ;;  %v215_v41 = vadd.f32 %v3593_v13, %v84_v17  ;;  %v4269_v13 = vsub.s32 0, %v4260_v10 }
 0x11b   :  { %v3594_v15 = vpop.f32.mrb[6].mxu0  ;;  %v207_v44 = vadd.f32 %v206_v14, %v84_v17  ;;  %v4272_v14 = vadd.s32 24, %v4260_v10 }
 0x11c   :  { %v209_v16 = vpop.f32.mrb[7].mxu0  ;;  %v218_v47 = vadd.f32 %v3594_v15, %v84_v17  ;;  %v259_v53 = vmax.f32 %v215_v41, 0.0  ;;  %5953 = vst [vmem:[#allocation19_spill] sm:$0xff] %v4269_v13  ;;  %v4275_v15 = vsub.s32 1, %v4260_v10  ;;  %v4295_v21 = vrot.slane %v318_v12, %v4269_v13 }
 0x11d   :  { %v210_v50 = vadd.f32 %v209_v16, %v84_v17  ;;  %v257_v57 = vmax.f32 %v207_v44, 0.0  ;;  %v4278_v16 = vsub.s32 3, %v4260_v10  ;;  %vm454_vm6 = vcmp.lt.s32.totalorder %v4272_v14, 31 }
 0x11e   :  { %v260_v60 = vmax.f32 %v218_v47, 0.0  ;;  %5954 = vst [vmem:[#allocation20_spill] sm:$0xff] %v4275_v15  ;;  %vm503_vm9 = vcmp.lt.s32.totalorder %v4272_v14, 30 }
 0x11f   :  { %v258_v63 = vmax.f32 %v210_v50, 0.0  ;;  %5955 = vst [vmem:[#allocation21_spill] sm:$0xff] %v4278_v16  ;;  %v4302_v24 = vrot.slane %v318_v12, %v4278_v16 }
 0x121   :  { %v3597_v20 = vpop.f32.mrb[8].mxu0 }
 0x122   :  { %v231_v22 = vadd.f32 %v3597_v20, %v84_v17  ;;  %v222_v23 = vpop.f32.mrb[9].mxu0 }
 0x123   :  { %v223_v26 = vadd.f32 %v222_v23, %v84_v17  ;;  %v3598_v27 = vpop.f32.mrb[10].mxu0  ;;  %v4299_v23 = vrot.slane %v318_v12, %v4275_v15 }
 0x124   :  { %v263_v29 = vmax.f32 %v231_v22, 0.0  ;;  %v234_v30 = vadd.f32 %v3598_v27, %v84_v17  ;;  %v225_v31 = vpop.f32.mrb[11].mxu0 }
 0x125   :  { %v261_v33 = vmax.f32 %v223_v26, 0.0  ;;  %v226_v34 = vadd.f32 %v225_v31, %v84_v17 }
 0x126   :  { %v4228_v36 = vmax.f32 %v255_v28, %v263_v29  ;;  %v264_v37 = vmax.f32 %v234_v30, 0.0 }
 0x127   :  { %v4230_v39 = vmax.f32 %v253_v32, %v261_v33  ;;  %v262_v40 = vmax.f32 %v226_v34, 0.0 }
 0x128   :  { %v4232_v42 = vmax.f32 %v256_v35, %v264_v37 }
 0x129   :  { %v4234_v45 = vmax.f32 %v254_v38, %v262_v40  ;;  %v3601_v46 = vpop.f32.mrb[12].mxu0  ;;  %285 = vrot.lane.b32.xlu0 %v4230_v39, %s4118_s0 }
 0x12a   :  { %v247_v48 = vadd.f32 %v3601_v46, %v84_v17  ;;  %v238_v49 = vpop.f32.mrb[13].mxu0 }
 0x12b   :  { %v239_v51 = vadd.f32 %v238_v49, %v84_v17  ;;  %v3602_v52 = vpop.f32.mrb[14].mxu0  ;;  %287 = vrot.lane.b32.xlu1 %v4234_v45, %s4118_s0 }
 0x12c   :  { %v267_v54 = vmax.f32 %v247_v48, 0.0  ;;  %v250_v55 = vadd.f32 %v3602_v52, %v84_v17  ;;  %v241_v56 = vpop.f32.mrb[15].mxu0 }
 0x12d   :  { %v265_v58 = vmax.f32 %v239_v51, 0.0  ;;  %v242_v59 = vadd.f32 %v241_v56, %v84_v17  ;;  %291 = vrot.lane.b32.xlu0 %v4232_v42, %s4118_s0  ;;  %v4281_v17 = vsub.s32 4, %v4260_v10 }
 0x12e   :  { %v4242_v61 = vmax.f32 %v259_v53, %v267_v54  ;;  %v268_v62 = vmax.f32 %v250_v55, 0.0 }
 0x12f   :  { %v4244_v0 = vmax.f32 %v257_v57, %v265_v58  ;;  %v266_v1 = vmax.f32 %v242_v59, 0.0  ;;  %289 = vrot.lane.b32.xlu1 %v4228_v36, %s4118_s0  ;;  %v4305_v25 = vrot.slane %v318_v12, %v4281_v17 }
 0x130   :  { %5949 = vst [vmem:[#allocation15_spill] sm:$0xff] %v4242_v61  ;;  %v4248_v2 = vmax.f32 %v260_v60, %v268_v62 }
 0x131   :  { %v4250_v4 = vmax.f32 %v258_v63, %v266_v1  ;;  %293 = vrot.lane.b32.xlu0 %v4244_v0, %s4118_s0 }
 0x132   :  { %5950 = vst [vmem:[#allocation16_spill] sm:$0xff] %v4248_v2 }
 0x133   :  { %5951 = vst [vmem:[#allocation17_spill] sm:$0xff] %v4250_v4  ;;  %299 = vrot.lane.b32.xlu1 %v4248_v2, %s4118_s0 }
 0x135   :  { %295 = vrot.lane.b32.xlu0 %v4250_v4, %s4118_s0 }
 0x137   :  { %297 = vrot.lane.b32.xlu1 %v4242_v61, %s4118_s0 }
 0x19b   :  { %v286_v19 = vpop.permute.xlu0 %285 }
 0x19c   :  { %v4292_v20 = vsel %vm309_vm1, %v4230_v39, %v286_v19 }
 0x19d   :  { %v288_v22 = vpop.permute.xlu1 %287  ;;  %v4309_v26 = vmul.f32 %v4284_v18, %v4292_v20  ;;  %v336_v27 = vrot.slane %v4292_v20, 6  ;;  %v5916_v28 = vrot.slane %v4292_v20, 7  ;;  %v5913_v30 = vrot.slane %v4292_v20, 1 }
 0x19e   :  { %v4315_v29 = vsel %vm309_vm1, %v4234_v45, %v288_v22  ;;  %v5912_v31 = vrot.slane %v4292_v20, 2 }
 0x19f   :  { %v338_v32 = vrot.slane %v4315_v29, 6  ;;  %v387_v33 = vrot.slane %v4315_v29, 7  ;;  %v292_v34 = vpop.permute.xlu0 %291  ;;  %v4324_v35 = vmul.f32 %v4284_v18, %v4315_v29 }
 0x1a0   :  { %v4330_v40 = vsel %vm309_vm1, %v4232_v42, %v292_v34 }
 0x1a1   :  { %v4334_v41 = vmul.f32 %v4284_v18, %v4330_v40  ;;  %v342_v43 = vrot.slane %v4330_v40, 6  ;;  %v5915_v44 = vrot.slane %v4330_v40, 7  ;;  %v440_v46 = vrot.slane %v4330_v40, 1  ;;  %v290_v47 = vpop.permute.xlu1 %289 }
 0x1a2   :  { %v5911_v48 = vrot.slane %v4330_v40, 2  ;;  %v4342_v49 = vsel %vm309_vm1, %v4228_v36, %v290_v47  ;;  %v349_v50 = vsel %vm344_vm2, %v336_v27, %v338_v32  ;;  %v4350_v51 = vsel %vm393_vm3, %v5916_v28, %v387_v33 }
 0x1a3   :  { %v351_v52 = vsel %vm344_vm2, %v342_v43, %v336_v27  ;;  %v449_v53 = vsel %vm442_vm4, %v440_v46, %v5913_v30  ;;  %v330_v54 = vmul.f32 %v4284_v18, %v4342_v49  ;;  %v340_v55 = vrot.slane %v4342_v49, 6  ;;  %v294_v56 = vpop.permute.xlu0 %293 }
 0x1a4   :  { %v4363_v57 = vsel %vm454_vm6, %v449_v53, 0.0  ;;  %v4371_v58 = vsel %vm491_vm5, %v5911_v48, %v5912_v31  ;;  %v389_v59 = vrot.slane %v4342_v49, 7  ;;  %v5914_v60 = vrot.slane %v4342_v49, 1 }
 0x1a5   :  { %v345_v62 = vsel %vm344_vm2, %v340_v55, %v342_v43  ;;  %v347_v63 = vsel %vm344_vm2, %v338_v32, %v340_v55  ;;  %v4383_v3 = vsel %vm309_vm1, %v4244_v0, %v294_v56  ;;  %v300_v9 = vpop.permute.xlu1 %299  ;;  %v357_v56 = vsel %vm353_vm7, %v351_v52, 0.0 }
 0x1a6   :  { %v371_v5 = vmul.f32 %v4295_v21, %v347_v63  ;;  %v4387_v6 = vmul.f32 %v4295_v21, %v345_v62  ;;  %v394_v7 = vsel %vm393_vm3, %v389_v59, %v5915_v44  ;;  %v396_v8 = vsel %vm393_vm3, %v387_v33, %v389_v59 }
 0x1a7   :  { %v420_v12 = vmul.f32 %v4299_v23, %v396_v8  ;;  %v4397_v19 = vmul.f32 %v4299_v23, %v394_v7  ;;  %v4403_v22 = vsel %vm442_vm4, %v5914_v60, %v440_v46  ;;  %v4407_v27 = vmul.f32 %v4284_v18, %v4383_v3  ;;  %v296_v32 = vpop.permute.xlu0 %295 }
 0x1a8   :  { %v379_v34 = vadd.f32 %v371_v5, %v330_v54  ;;  %v337_v33 = vrot.slane %v4383_v3, 6  ;;  %v386_v43 = vrot.slane %v4383_v3, 7  ;;  %v435_v47 = vrot.slane %v4383_v3, 1 }
 0x1a9   :  { %v5918_v53 = vrot.slane %v4383_v3, 2  ;;  %v4415_v55 = vsel %vm309_vm1, %v4248_v2, %v300_v9  ;;  %v4419_v46 = vsel %vm309_vm1, %v4250_v4, %v296_v32  ;;  %v298_v30 = vpop.permute.xlu1 %297 }
 0x1aa   :  { %v4423_v54 = vadd.f32 %v420_v12, %v379_v34  ;;  %v4427_v59 = vmul.f32 %v4284_v18, %v4415_v55  ;;  %v343_v62 = vrot.slane %v4415_v55, 6  ;;  %v392_v63 = vrot.slane %v4415_v55, 7 }
 0x1ab   :  { %v441_v5 = vrot.slane %v4415_v55, 1  ;;  %v5917_v7 = vrot.slane %v4415_v55, 2  ;;  %v333_v8 = vmul.f32 %v4284_v18, %v4419_v46  ;;  %v339_v9 = vrot.slane %v4419_v46, 6 }
 0x1ac   :  { %v352_v52 = vsel %vm344_vm2, %v343_v62, %v337_v33  ;;  %v401_v12 = vsel %vm393_vm3, %v392_v63, %v386_v43  ;;  %v388_v32 = vrot.slane %v4419_v46, 7  ;;  %v437_v34 = vrot.slane %v4419_v46, 1 }
 0x1ad   :  { %v361_v48 = vsel %vm353_vm7, %v352_v52, 0.0  ;;  %v410_v31 = vsel %vm402_vm8, %v401_v12, 0.0  ;;  %v450_v38 = vsel %vm442_vm4, %v441_v5, %v435_v47  ;;  %v4454_v1 = vsel %vm491_vm5, %v5917_v7, %v5918_v53 }
 0x1ae   :  { %v373_v37 = vmul.f32 %v4295_v21, %v361_v48  ;;  %v4458_v60 = vmul.f32 %v4299_v23, %v410_v31  ;;  %v4462_v52 = vsel %vm454_vm6, %v450_v38, 0.0  ;;  %v350_v12 = vsel %vm344_vm2, %v337_v33, %v339_v9 }
 0x1af   :  { %v374_v44 = vmul.f32 %v4295_v21, %v350_v12  ;;  %v399_v28 = vsel %vm393_vm3, %v386_v43, %v388_v32  ;;  %v448_v7 = vsel %vm442_vm4, %v435_v47, %v437_v34  ;;  %v4475_v53 = vsel %vm309_vm1, %v4242_v61, %v298_v30 }
 0x1b0   :  { %v423_v31 = vmul.f32 %v4299_v23, %v399_v28  ;;  %v369_v38 = vmul.f32 %v4295_v21, %v357_v56  ;;  %v370_v33 = vmul.f32 %v4295_v21, %v349_v50  ;;  %v334_v43 = vmul.f32 %v4284_v18, %v4475_v53 }
 0x1b1   :  { %v382_v12 = vadd.f32 %v374_v44, %v333_v8  ;;  %v341_v47 = vrot.slane %v4475_v53, 6  ;;  %v390_v48 = vrot.slane %v4475_v53, 7  ;;  %v439_v28 = vrot.slane %v4475_v53, 1 }
 0x1b2   :  { %v377_v30 = vadd.f32 %v369_v38, %v4309_v26  ;;  %v378_v56 = vadd.f32 %v370_v33, %v4324_v35 }
 0x1b3   :  { %v431_v61 = vadd.f32 %v423_v31, %v382_v12  ;;  %v346_v50 = vsel %vm344_vm2, %v341_v47, %v343_v62  ;;  %v348_v44 = vsel %vm344_vm2, %v339_v9, %v341_v47  ;;  %v395_v18 = vsel %vm393_vm3, %v390_v48, %v392_v63 }
 0x1b4   :  { %v375_v8 = vmul.f32 %v4295_v21, %v348_v44  ;;  %v376_v4 = vmul.f32 %v4295_v21, %v346_v50  ;;  %v397_v2 = vsel %vm393_vm3, %v388_v32, %v390_v48  ;;  %v425_v26 = vmul.f32 %v4299_v23, %v395_v18 }
 0x1b5   :  { %v424_v35 = vmul.f32 %v4299_v23, %v397_v2  ;;  %v444_v62 = vsel %vm442_vm4, %v439_v28, %v441_v5  ;;  %v446_v9 = vsel %vm442_vm4, %v437_v34, %v439_v28  ;;  %v5956_v31 = vrot.slane %v4292_v20, 7 }
 0x1b6   :  { %v5957_v63 = vrot.slane %v4330_v40, 7  ;;  %v383_v38 = vadd.f32 %v375_v8, %v334_v43  ;;  %v419_v2 = vmul.f32 %v4299_v23, %v4350_v51  ;;  %v5958_v48 = vrot.slane %v4342_v49, 1 }
 0x1b7   :  { %v5959_v5 = vrot.slane %v4315_v29, 1  ;;  %v5961_v43 = vrot.slane %v4292_v20, 1  ;;  %v5962_v51 = vrot.slane %v4342_v49, 2  ;;  %v5963_v50 = vrot.slane %v4315_v29, 2 }
 0x1b8   :  { %v400_v21 = vsel %vm393_vm3, %v5957_v63, %v5956_v31  ;;  %v432_v18 = vadd.f32 %v424_v35, %v383_v38  ;;  %v427_v8 = vadd.f32 %v419_v2, %v378_v56  ;;  %v5965_v63 = vrot.slane %v4292_v20, 2 }
 0x1b9   :  { %v406_v32 = vsel %vm402_vm8, %v400_v21, 0.0  ;;  %v445_v34 = vsel %vm442_vm4, %v5959_v5, %v5958_v48  ;;  %v5960_v12 = vmov %v5959_v5  ;;  %v494_v44 = vsel %vm491_vm5, %v5963_v50, %v5962_v51 }
 0x1ba   :  { %v418_v33 = vmul.f32 %v4299_v23, %v406_v32  ;;  %v447_v47 = vsel %vm442_vm4, %v5961_v43, %v5960_v12  ;;  %v468_v28 = vmul.f32 %v4302_v24, %v445_v34  ;;  %v5964_v31 = vmov %v5963_v50 }
 0x1bb   :  { %v467_v23 = vmul.f32 %v4302_v24, %v447_v47  ;;  %v496_v21 = vsel %vm491_vm5, %v5965_v63, %v5964_v31  ;;  %v517_v5 = vmul.f32 %v4305_v25, %v494_v44  ;;  %v380_v34 = vadd.f32 %v4387_v6, %v4334_v41 }
 0x1bc   :  { %v426_v32 = vadd.f32 %v418_v33, %v377_v30  ;;  %v516_v48 = vmul.f32 %v4305_v25, %v496_v21  ;;  %v476_v12 = vadd.f32 %v468_v28, %v427_v8  ;;  %v469_v56 = vmul.f32 %v4302_v24, %v4403_v22 }
 0x1bd   :  { %v470_v29 = vmul.f32 %v4302_v24, %v4363_v57  ;;  %v5966_v20 = vrot.slane %v4330_v40, 2  ;;  %v5967_v35 = vmov %v5962_v51  ;;  %v429_v2 = vadd.f32 %v4397_v19, %v380_v34 }
 0x1be   :  { %v475_v38 = vadd.f32 %v467_v23, %v426_v32  ;;  %v507_v41 = vsel %vm503_vm9, %v4371_v58, 0.0  ;;  %v525_v22 = vadd.f32 %v517_v5, %v476_v12  ;;  %v477_v33 = vadd.f32 %v469_v56, %v4423_v54 }
 0x1bf   :  { %v492_v30 = vsel %vm491_vm5, %v5967_v35, %v5966_v20  ;;  %v519_v57 = vmul.f32 %v4305_v25, %v507_v41  ;;  %v381_v40 = vadd.f32 %v373_v37, %v4407_v27  ;;  %v478_v43 = vadd.f32 %v470_v29, %v429_v2  ;;  %v3759_v20 = vld [vmem:[#allocation2 + $0x58] sm:$0xff]   ;;  %v3760_v35 = vld [vmem:[#allocation2 + $0x60] sm:$0xff]   ;;  %v3768_v2 = vld [vmem:[#allocation5 + $0x14] ss:$8 sps:$4 sm:$0xff]  }
 0x1c0   :  { %v518_v6 = vmul.f32 %v4305_v25, %v492_v30  ;;  %v524_v49 = vadd.f32 %v516_v48, %v475_v38  ;;  %v471_v47 = vmul.f32 %v4302_v24, %v448_v7  ;;  %v472_v28 = vmul.f32 %v4302_v24, %v446_v9  ;;  %v3763_v30 = vld [vmem:[#allocation5] ss:$8 sps:$4 sm:$0xff]   ;;  %v3765_v38 = vld [vmem:[#allocation5 + $0x4] ss:$8 sps:$4 sm:$0xff]   ;;  %v3766_v41 = vld [vmem:[#allocation5 + $0x10] ss:$8 sps:$4 sm:$0xff]  }
 0x1c1   :  { %v430_v51 = vadd.f32 %v4458_v60, %v381_v40  ;;  %v5968_v58 = vrot.slane %v4475_v53, 2  ;;  %v5969_v50 = vrot.slane %v4419_v46, 2  ;;  %v5971_v37 = vrot.slane %v4383_v3, 2  ;;  %1394 = vmatprep.subr.bf16.mxu1 %v3765_v38 }
 0x1c2   :  { %v526_v19 = vadd.f32 %v518_v6, %v477_v33  ;;  %v532_v7 = vpack.c.bf16 %v525_v22, %v524_v49  ;;  %v527_v8 = vadd.f32 %v519_v57, %v478_v43  ;;  %v480_v9 = vadd.f32 %v472_v28, %v431_v61  ;;  %v544_v6 = vld [vmem:[%s5908_s4 + $0x1] ss:$0 sm:$0xff] }
 0x1c3   :  { %v495_v54 = vsel %vm491_vm5, %v5969_v50, %v5968_v58  ;;  %v5970_v44 = vmov %v5969_v50  ;;  %v479_v60 = vadd.f32 %v471_v47, %v430_v51  ;;  %v384_v63 = vadd.f32 %v376_v4, %v4427_v59  ;;  %v655_v22 = vld [vmem:[%s5908_s4 + $0x60] sm:$0x1f] }
 0x1c4   :  { %v497_v27 = vsel %vm491_vm5, %v5971_v37, %v5970_v44  ;;  %v521_v31 = vmul.f32 %v4305_v25, %v495_v54  ;;  %v473_v21 = vmul.f32 %v4302_v24, %v444_v62  ;;  %3611 = vmatprep.mubr.msk.bf16.mxu1 %vm569_vm10, %v532_v7  ;;  %v533_v46 = vpack.c.bf16 %v527_v8, %v526_v19 }
 0x1c5   :  { %v520_v23 = vmul.f32 %v4305_v25, %v497_v27  ;;  %v474_v3 = vmul.f32 %v4302_v24, %v4462_v52  ;;  %v5972_v32 = vrot.slane %v4415_v55, 2  ;;  %v5973_v48 = vmov %v5968_v58 }
 0x1c6   :  { %v511_v5 = vsel %vm503_vm9, %v4454_v1, 0.0  ;;  %v529_v59 = vadd.f32 %v521_v31, %v480_v9  ;;  %v433_v62 = vadd.f32 %v425_v26, %v384_v63  ;;  %v481_v34 = vadd.f32 %v473_v21, %v432_v18  ;;  %3612 = vmatmul.mubr.msk.bf16.vlgmr.msra.gmra.mrb[0].mxu1 %vm569_vm10, %v533_v46  ;;  %v3756_v1 = vld [vmem:[#allocation2 + $0x40] sm:$0xff]   ;;  %v3757_v26 = vld [vmem:[#allocation2 + $0x48] sm:$0xff]   ;;  %v3758_v18 = vld [vmem:[#allocation2 + $0x50] sm:$0xff]  }
 0x1c7   :  { %v493_v61 = vsel %vm491_vm5, %v5973_v48, %v5972_v32  ;;  %v528_v4 = vadd.f32 %v520_v23, %v479_v60  ;;  %v523_v55 = vmul.f32 %v4305_v25, %v511_v5  ;;  %3625 = vmatprep.subr.bf16.mxu0 %v3756_v1  ;;  %1395 = vmatpush1.bf16.msra.mxu1 %v3763_v30 }
 0x1c8   :  { %v522_v12 = vmul.f32 %v4305_v25, %v493_v61  ;;  %v482_v52 = vadd.f32 %v474_v3, %v433_v62  ;;  %3626 = vmatpush3.bf16.msra.mxu0 %v3756_v1  ;;  %v4599_v25 = vld [vmem:[#allocation2 + $0x68] sm:$0xff]   ;;  %1396 = vmatprep.subr.bf16.mxu1 %v3768_v2  ;;  %v4609_v49 = vrot.slane %v655_v22, %v4263_v11 }
 0x1c9   :  { %v534_v24 = vpack.c.bf16 %v529_v59, %v528_v4  ;;  %3627 = vmatprep.subr.bf16.mxu0 %v3757_v26  ;;  %v4616_v54 = vrot.slane %v655_v22, %v4269_v13  ;;  %v4619_v44 = vrot.slane %v655_v22, %v4275_v15  ;;  %v4622_v37 = vrot.slane %v655_v22, %v4278_v16 }
 0x1ca   :  { %v530_v53 = vadd.f32 %v522_v12, %v481_v34  ;;  %v531_v56 = vadd.f32 %v523_v55, %v482_v52  ;;  %v4625_v27 = vrot.slane %v655_v22, %v4281_v17 }
 0x1cb   :  { %3615 = vmatprep.mubr.msk.bf16.mxu1 %vm569_vm10, %v534_v24  ;;  %1397 = vmatpush1.bf16.msra.mxu1 %v3766_v41 }
 0x1cc   :  { %v535_v29 = vpack.c.bf16 %v531_v56, %v530_v53  ;;  %3628 = vmatpush3.bf16.msra.mxu0 %v3757_v26 }
 0x1cd   :  { %3629 = vmatprep.subr.bf16.mxu0 %v3758_v18 }
 0x1ce   :  { %3616 = vmatmul.mubr.msk.bf16.gmra.mrb[4].mxu1 %vm569_vm10, %v535_v29 }
 0x1d0   :  { %3630 = vmatpush3.bf16.msra.mxu0 %v3758_v18 }
 0x1d1   :  { %3631 = vmatprep.subr.bf16.mxu0 %v3759_v20 }
 0x1d4   :  { %3632 = vmatpush3.bf16.msra.mxu0 %v3759_v20 }
 0x1d5   :  { %3633 = vmatprep.subr.bf16.mxu0 %v3760_v35 }
 0x1d8   :  { %3634 = vmatpush3.bf16.msra.mxu0 %v3760_v35 }
 0x1d9   :  { %3643 = vmatprep.subr.bf16.mxu0 %v4599_v25 }
 0x299   :  { %v3613_v33 = vpop.f32.mrb[0].mxu1 }
 0x29a   :  { %v625_v57 = vadd.f32 %v3613_v33, %v544_v6  ;;  %v616_v40 = vpop.f32.mrb[1].mxu1 }
 0x29b   :  { %v617_v43 = vadd.f32 %v616_v40, %v544_v6  ;;  %v3614_v47 = vpop.f32.mrb[2].mxu1 }
 0x29c   :  { %v4611_v28 = vmax.f32 %v625_v57, 0.0  ;;  %v628_v19 = vadd.f32 %v3614_v47, %v544_v6  ;;  %v619_v51 = vpop.f32.mrb[3].mxu1 }
 0x29d   :  { %v4613_v58 = vmax.f32 %v617_v43, 0.0  ;;  %v620_v50 = vadd.f32 %v619_v51, %v544_v6 }
 0x29e   :  { %v4629_v7 = vmul.f32 %v4609_v49, %v4611_v28  ;;  %v672_v8 = vrot.slane %v4611_v28, 6  ;;  %v716_v9 = vrot.slane %v4611_v28, 7  ;;  %v760_v23 = vrot.slane %v4611_v28, 1 }
 0x29f   :  { %v4636_v60 = vmul.f32 %v4609_v49, %v4613_v58  ;;  %v756_v31 = vrot.slane %v4613_v58, 1  ;;  %v4639_v63 = vmax.f32 %v628_v19, 0.0  ;;  %v4641_v21 = vmax.f32 %v620_v50, 0.0 }
 0x2a0   :  { %v668_v46 = vrot.slane %v4613_v58, 6  ;;  %v712_v3 = vrot.slane %v4613_v58, 7  ;;  %v800_v48 = vrot.slane %v4613_v58, 2  ;;  %v804_v61 = vrot.slane %v4611_v28, 2 }
 0x2a1   :  { %v3617_v32 = vpop.f32.mrb[4].mxu1  ;;  %v663_v5 = vmul.f32 %v4609_v49, %v4639_v63  ;;  %v674_v4 = vrot.slane %v4639_v63, 6  ;;  %v718_v59 = vrot.slane %v4639_v63, 7  ;;  %v762_v62 = vrot.slane %v4639_v63, 1 }
 0x2a2   :  { %v632_v34 = vpop.f32.mrb[5].mxu1  ;;  %v806_v12 = vrot.slane %v4639_v63, 2  ;;  %v661_v24 = vmul.f32 %v4609_v49, %v4641_v21  ;;  %v670_v52 = vrot.slane %v4641_v21, 6  ;;  %v714_v55 = vrot.slane %v4641_v21, 7 }
 0x2a3   :  { %v3618_v53 = vpop.f32.mrb[6].mxu1  ;;  %v676_v56 = vsel %vm344_vm2, %v672_v8, %v674_v4  ;;  %v720_v29 = vsel %vm393_vm3, %v716_v9, %v718_v59  ;;  %v764_v1 = vsel %vm442_vm4, %v760_v23, %v762_v62  ;;  %v770_v26 = vsel %vm442_vm4, %v762_v62, %v756_v31 }
 0x2a4   :  { %v635_v18 = vpop.f32.mrb[7].mxu1  ;;  %v699_v20 = vmul.f32 %v4616_v54, %v676_v56  ;;  %v743_v35 = vmul.f32 %v4619_v44, %v720_v29  ;;  %v678_v30 = vsel %vm344_vm2, %v670_v52, %v672_v8  ;;  %v722_v38 = vsel %vm393_vm3, %v714_v55, %v716_v9 }
 0x2a5   :  { %v698_v2 = vmul.f32 %v4616_v54, %v678_v30  ;;  %v742_v41 = vmul.f32 %v4619_v44, %v722_v38  ;;  %v758_v22 = vrot.slane %v4641_v21, 1  ;;  %v641_v33 = vadd.f32 %v3617_v32, %v544_v6 }
 0x2a6   :  { %v707_v57 = vadd.f32 %v699_v20, %v663_v5  ;;  %v633_v40 = vadd.f32 %v632_v34, %v544_v6  ;;  %v644_v43 = vadd.f32 %v3618_v53, %v544_v6  ;;  %v636_v47 = vadd.f32 %v635_v18, %v544_v6 }
 0x2a7   :  { %v4678_v19 = vmax.f32 %v641_v33, 0.0  ;;  %v680_v51 = vsel %vm344_vm2, %v668_v46, %v670_v52  ;;  %v682_v50 = vsel %vm344_vm2, %v674_v4, %v668_v46  ;;  %v724_v8 = vsel %vm393_vm3, %v712_v3, %v714_v55 }
 0x2a8   :  { %v751_v9 = vadd.f32 %v743_v35, %v707_v57  ;;  %v4686_v62 = vmax.f32 %v633_v40, 0.0  ;;  %v4688_v56 = vmax.f32 %v644_v43, 0.0  ;;  %v4690_v32 = vmax.f32 %v636_v47, 0.0 }
 0x2a9   :  { %v4694_v6 = vmul.f32 %v4609_v49, %v4678_v19  ;;  %v684_v40 = vsel %vm353_vm7, %v682_v50, 0.0  ;;  %v697_v43 = vmul.f32 %v4616_v54, %v680_v51  ;;  %v726_v47 = vsel %vm393_vm3, %v718_v59, %v712_v3 }
 0x2aa   :  { %v664_v4 = vmul.f32 %v4609_v49, %v4686_v62  ;;  %v669_v52 = vrot.slane %v4686_v62, 6  ;;  %v713_v55 = vrot.slane %v4686_v62, 7  ;;  %v4706_v29 = vmul.f32 %v4609_v49, %v4688_v56 }
 0x2ab   :  { %v675_v18 = vrot.slane %v4688_v56, 6  ;;  %v665_v30 = vmul.f32 %v4609_v49, %v4690_v32  ;;  %v671_v38 = vrot.slane %v4690_v32, 6  ;;  %v715_v33 = vrot.slane %v4690_v32, 7 }
 0x2ac   :  { %v759_v57 = vrot.slane %v4690_v32, 1  ;;  %v741_v34 = vmul.f32 %v4619_v44, %v724_v8  ;;  %v696_v35 = vmul.f32 %v4616_v54, %v684_v40  ;;  %v728_v49 = vsel %vm402_vm8, %v726_v47, 0.0 }
 0x2ad   :  { %v766_v5 = vsel %vm442_vm4, %v758_v22, %v760_v23  ;;  %v768_v51 = vsel %vm442_vm4, %v756_v31, %v758_v22  ;;  %v705_v50 = vadd.f32 %v697_v43, %v661_v24  ;;  %v740_v3 = vmul.f32 %v4619_v44, %v728_v49 }
 0x2ae   :  { %v784_v59 = vmul.f32 %v4622_v37, %v768_v51  ;;  %v785_v8 = vmul.f32 %v4622_v37, %v766_v5  ;;  %v704_v40 = vadd.f32 %v696_v35, %v4636_v60  ;;  %v802_v47 = vrot.slane %v4641_v21, 2 }
 0x2af   :  { %v706_v53 = vadd.f32 %v698_v2, %v4629_v7  ;;  %v775_v23 = vsel %vm454_vm6, %v770_v26, 0.0  ;;  %v749_v46 = vadd.f32 %v741_v34, %v705_v50  ;;  %v786_v20 = vmul.f32 %v4622_v37, %v764_v1 }
 0x2b0   :  { %v787_v31 = vmul.f32 %v4622_v37, %v775_v23  ;;  %v808_v24 = vsel %vm491_vm5, %v804_v61, %v806_v12  ;;  %v748_v60 = vadd.f32 %v740_v3, %v704_v40  ;;  %v810_v7 = vsel %vm491_vm5, %v802_v47, %v804_v61 }
 0x2b1   :  { %v812_v21 = vsel %vm491_vm5, %v800_v48, %v802_v47  ;;  %v750_v1 = vadd.f32 %v742_v41, %v706_v53  ;;  %v793_v26 = vadd.f32 %v785_v8, %v749_v46  ;;  %v829_v22 = vmul.f32 %v4625_v27, %v810_v7 }
 0x2b2   :  { %v828_v2 = vmul.f32 %v4625_v27, %v812_v21  ;;  %v795_v5 = vadd.f32 %v787_v31, %v751_v9  ;;  %v792_v34 = vadd.f32 %v784_v59, %v748_v60  ;;  %v814_v28 = vsel %vm491_vm5, %v806_v12, %v800_v48 }
 0x2b3   :  { %v794_v35 = vadd.f32 %v786_v20, %v750_v1  ;;  %v830_v61 = vmul.f32 %v4625_v27, %v808_v24  ;;  %v837_v43 = vadd.f32 %v829_v22, %v793_v26  ;;  %v819_v41 = vsel %vm503_vm9, %v814_v28, 0.0 }
 0x2b4   :  { %v681_v9 = vsel %vm344_vm2, %v669_v52, %v671_v38  ;;  %v683_v58 = vsel %vm344_vm2, %v675_v18, %v669_v52  ;;  %v836_v63 = vadd.f32 %v828_v2, %v792_v34  ;;  %v831_v46 = vmul.f32 %v4625_v27, %v819_v41 }
 0x2b5   :  { %v838_v48 = vadd.f32 %v830_v61, %v794_v35  ;;  %v688_v12 = vsel %vm353_vm7, %v683_v58, 0.0  ;;  %v701_v20 = vmul.f32 %v4616_v54, %v681_v9  ;;  %v725_v49 = vsel %vm393_vm3, %v713_v55, %v715_v33 }
 0x2b6   :  { %v700_v53 = vmul.f32 %v4616_v54, %v688_v12  ;;  %v5974_v51 = vrot.slane %v4688_v56, 7  ;;  %v844_v50 = vpack.c.bf16 %v837_v43, %v836_v63  ;;  %v839_v3 = vadd.f32 %v831_v46, %v795_v5 }
 0x2b7   :  { %v745_v8 = vmul.f32 %v4619_v44, %v725_v49  ;;  %v709_v47 = vadd.f32 %v701_v20, %v665_v30  ;;  %v5975_v31 = vrot.slane %v4678_v19, 1  ;;  %v801_v1 = vrot.slane %v4686_v62, 2 }
 0x2b8   :  { %v727_v52 = vsel %vm393_vm3, %v5974_v51, %v713_v55  ;;  %v708_v40 = vadd.f32 %v700_v53, %v664_v4  ;;  %3635 = vmatprep.mubr.bf16.mxu0 %v844_v50  ;;  %v845_v60 = vpack.c.bf16 %v839_v3, %v838_v48  ;;  %v5976_v55 = vrot.slane %v4686_v62, 1  ;;  %v3762_v4 = vld [vmem:[#allocation2 + $0x70] sm:$0xff]  }
 0x2b9   :  { %v732_v59 = vsel %vm402_vm8, %v727_v52, 0.0  ;;  %v767_v24 = vsel %vm442_vm4, %v759_v57, %v5975_v31  ;;  %v753_v26 = vadd.f32 %v745_v8, %v709_v47  ;;  %v803_v22 = vrot.slane %v4690_v32, 2 }
 0x2ba   :  { %v744_v23 = vmul.f32 %v4619_v44, %v732_v59  ;;  %v769_v7 = vsel %vm442_vm4, %v5976_v55, %v759_v57  ;;  %v789_v21 = vmul.f32 %v4622_v37, %v767_v24  ;;  %3636 = vmatmul.mubr.bf16.vlgmr.msra.gmra.mrb[16].mxu0 %v845_v60  ;;  %v805_v5 = vrot.slane %v4678_v19, 2 }
 0x2bb   :  { %v788_v2 = vmul.f32 %v4622_v37, %v769_v7  ;;  %v5977_v34 = vrot.slane %v4678_v19, 6  ;;  %v5979_v61 = vmov %v5974_v51  ;;  %v5980_v43 = vrot.slane %v4678_v19, 7  ;;  %3644 = vmatpush3.bf16.msra.mxu0 %v4599_v25 }
 0x2bc   :  { %v752_v30 = vadd.f32 %v744_v23, %v708_v40  ;;  %v797_v58 = vadd.f32 %v789_v21, %v753_v26  ;;  %v811_v46 = vsel %vm491_vm5, %v803_v22, %v805_v5  ;;  %3645 = vmatprep.subr.bf16.mxu0 %v3762_v4  ;;  %v5983_v3 = vmov %v5975_v31 }
 0x2bd   :  { %v677_v57 = vsel %vm344_vm2, %v5977_v34, %v675_v18  ;;  %v5978_v35 = vmov %v5977_v34  ;;  %v721_v41 = vsel %vm393_vm3, %v5980_v43, %v5979_v61  ;;  %v813_v18 = vsel %vm491_vm5, %v801_v1, %v803_v22  ;;  %v3783_v61 = vld [vmem:[#allocation5 + $0x64] ss:$8 sps:$4 sm:$0xff]  }
 0x2be   :  { %v679_v28 = vsel %vm344_vm2, %v671_v38, %v5978_v35  ;;  %v796_v9 = vadd.f32 %v788_v2, %v752_v30  ;;  %v832_v38 = vmul.f32 %v4625_v27, %v813_v18  ;;  %v703_v48 = vmul.f32 %v4616_v54, %v677_v57  ;;  %v5986_v2 = vld [vmem:[#allocation17_spill] sm:$0xff]  ;;  %v3771_v57 = vld [vmem:[#allocation5 + $0x24] ss:$8 sps:$4 sm:$0xff]  }
 0x2bf   :  { %v702_v63 = vmul.f32 %v4616_v54, %v679_v28  ;;  %v5981_v12 = vmov %v5980_v43  ;;  %v833_v53 = vmul.f32 %v4625_v27, %v811_v46  ;;  %v747_v51 = vmul.f32 %v4619_v44, %v721_v41  ;;  %3646 = vmatpush3.bf16.msra.mxu0 %v3762_v4  ;;  %1398 = vmatprep.subr.bf16.mxu1 %v3771_v57  ;;  %v3772_v35 = vld [vmem:[#allocation5 + $0x30] ss:$8 sps:$4 sm:$0xff]   ;;  %v3780_v28 = vld [vmem:[#allocation5 + $0x54] ss:$8 sps:$4 sm:$0xff]   ;;  %v3781_v41 = vld [vmem:[#allocation5 + $0x60] ss:$8 sps:$4 sm:$0xff]  }
 0x2c0   :  { %v723_v25 = vsel %vm393_vm3, %v715_v33, %v5981_v12  ;;  %v840_v52 = vadd.f32 %v832_v38, %v796_v9  ;;  %v711_v50 = vadd.f32 %v703_v48, %v4706_v29  ;;  %v5982_v54 = vrot.slane %v4688_v56, 1  ;;  %v3786_v9 = vld [vmem:[#allocation5 + $0x74] ss:$8 sps:$4 sm:$0xff]   ;;  %v3789_v18 = vld [vmem:[#allocation5 + $0x84] ss:$8 sps:$4 sm:$0xff]  }
 0x2c1   :  { %v710_v20 = vadd.f32 %v702_v63, %v4694_v6  ;;  %v746_v49 = vmul.f32 %v4619_v44, %v723_v25  ;;  %v5984_v33 = vmov %v5976_v55  ;;  %v841_v8 = vadd.f32 %v833_v53, %v797_v58  ;;  %v3784_v58 = vld [vmem:[#allocation5 + $0x70] ss:$8 sps:$4 sm:$0xff]   ;;  %v868_v63 = vld [vmem:[%s5908_s4 + $0x2] ss:$0 sm:$0xff]  ;;  %v986_v46 = vld [vmem:[%s5908_s4 + $0x3] ss:$0 sm:$0xff] }
 0x2c2   :  { %v765_v32 = vsel %vm442_vm4, %v5983_v3, %v5982_v54  ;;  %v5985_v59 = vmov %v5982_v54  ;;  %v755_v47 = vadd.f32 %v747_v51, %v711_v50  ;;  %v807_v23 = vrot.slane %v4688_v56, 2  ;;  %v1092_v53 = vld [vmem:[%s5908_s4 + $0x80] sm:$0x1f] }
 0x2c3   :  { %v771_v6 = vsel %vm442_vm4, %v5985_v59, %v5984_v33  ;;  %v754_v40 = vadd.f32 %v746_v49, %v710_v20  ;;  %v790_v29 = vmul.f32 %v4622_v37, %v765_v32  ;;  %v846_v31 = vpack.c.bf16 %v841_v8, %v840_v52 }
 0x2c4   :  { %v779_v44 = vsel %vm454_vm6, %v771_v6, 0.0  ;;  %v809_v60 = vsel %vm491_vm5, %v805_v5, %v807_v23  ;;  %v815_v55 = vsel %vm491_vm5, %v807_v23, %v801_v1  ;;  %v982_v26 = vpack.c.bf16 %v4234_v45, %v4230_v39  ;;  %v5988_v5 = vld [vmem:[#allocation16_spill] sm:$0xff]  ;;  %v3769_v39 = vld [vmem:[#allocation5 + $0x20] ss:$8 sps:$4 sm:$0xff]   ;;  %v3774_v45 = vld [vmem:[#allocation5 + $0x34] ss:$8 sps:$4 sm:$0xff]  }
 0x2c5   :  { %v791_v19 = vmul.f32 %v4622_v37, %v779_v44  ;;  %v798_v62 = vadd.f32 %v790_v29, %v754_v40  ;;  %3639 = vmatprep.mubr.bf16.mxu0 %v846_v31  ;;  %v823_v7 = vsel %vm503_vm9, %v815_v55, 0.0  ;;  %v834_v21 = vmul.f32 %v4625_v27, %v809_v60  ;;  %1399 = vmatpush1.bf16.msra.mxu1 %v3769_v39 }
 0x2c6   :  { %v835_v4 = vmul.f32 %v4625_v27, %v823_v7  ;;  %v983_v1 = vpack.c.bf16 %v4232_v42, %v4228_v36  ;;  %v984_v22 = vpack.c.bf16 %v5986_v2, %v4244_v0  ;;  %v5987_v27 = vld [vmem:[#allocation15_spill] sm:$0xff]  ;;  %1400 = vmatprep.subr.bf16.mxu1 %v3774_v45  ;;  %v3778_v0 = vld [vmem:[#allocation5 + $0x50] ss:$8 sps:$4 sm:$0xff]   ;;  %v5922_v43 = vmov 0  }
 0x2c7   :  { %v799_v24 = vadd.f32 %v791_v19, %v755_v47  ;;  %v842_v37 = vadd.f32 %v834_v21, %v798_v62  ;;  %v985_v34 = vpack.c.bf16 %v5988_v5, %v5987_v27  ;;  %v3777_v36 = vld [vmem:[#allocation5 + $0x44] ss:$8 sps:$4 sm:$0xff]   ;;  %v3775_v42 = vld [vmem:[#allocation5 + $0x40] ss:$8 sps:$4 sm:$0xff]   ;;  %1426 = vmatprep.mubr.bf16.mxu1 %v5922_v43  ;;  %v3661_v38 = vadd.f32 %v986_v46, %v868_v63 }
 0x2c8   :  { %v4891_v3 = vrot.slane %v1092_v53, %v4263_v11  ;;  %v4898_v6 = vrot.slane %v1092_v53, %v4269_v13  ;;  %v4901_v8 = vrot.slane %v1092_v53, %v4275_v15  ;;  %v4908_v29 = vrot.slane %v1092_v53, %v4278_v16 }
 0x2c9   :  { %v843_v30 = vadd.f32 %v835_v4, %v799_v24  ;;  %1401 = vmatpush1.bf16.msra.mxu1 %v3772_v35  ;;  %v4911_v47 = vrot.slane %v1092_v53, %v4281_v17 }
 0x2ca   :  { %1402 = vmatprep.subr.bf16.mxu1 %v3777_v36 }
 0x2cb   :  { %v847_v56 = vpack.c.bf16 %v843_v30, %v842_v37 }
 0x2cd   :  { %3640 = vmatmul.mubr.bf16.gmra.mrb[20].mxu0 %v847_v56  ;;  %1403 = vmatpush1.bf16.msra.mxu1 %v3775_v42 }
 0x2ce   :  { %3647 = vmatprep.mubr.msk.bf16.mxu0 %vm309_vm1, %v982_v26  ;;  %1404 = vmatprep.subr.bf16.mxu1 %v3780_v28 }
 0x2d1   :  { %1405 = vmatpush1.bf16.msra.mxu1 %v3778_v0 }
 0x2d2   :  { %1406 = vmatprep.subr.bf16.mxu1 %v3783_v61 }
 0x2d5   :  { %3648 = vmatmul.mubr.msk.bf16.vlgmr.msra.gmra.mrb[16].mxu0 %vm309_vm1, %v983_v1  ;;  %1407 = vmatpush1.bf16.msra.mxu1 %v3781_v41 }
 0x2d6   :  { %3651 = vmatprep.mubr.msk.bf16.mxu0 %vm309_vm1, %v984_v22  ;;  %1408 = vmatprep.subr.bf16.mxu1 %v3786_v9 }
 0x2d9   :  { %1409 = vmatpush1.bf16.msra.mxu1 %v3784_v58 }
 0x2da   :  { %2090 = vmatprep.subr.bf16.mxu1 %v3789_v18 }
 0x2dd   :  { %3652 = vmatmul.mubr.msk.bf16.gmra.mrb[20].mxu0 %vm309_vm1, %v985_v34 }
 0x3a8   :  { %v3649_v48 = vpop.f32.mrb[16].mxu0 }
 0x3a9   :  { %v3655_v12 = vadd.f32 %v3649_v48, %v868_v63  ;;  %v1045_v25 = vpop.f32.mrb[17].mxu0 }
 0x3aa   :  { %v3657_v20 = vadd.f32 %v1045_v25, %v868_v63  ;;  %v3650_v49 = vpop.f32.mrb[18].mxu0 }
 0x3ab   :  { %v3656_v51 = vadd.f32 %v3655_v12, %v986_v46  ;;  %v3660_v52 = vadd.f32 %v3661_v38, %v3650_v49  ;;  %v1048_v50 = vpop.f32.mrb[19].mxu0 }
 0x3ac   :  { %v3658_v54 = vadd.f32 %v3657_v20, %v986_v46  ;;  %v3662_v32 = vadd.f32 %v3661_v38, %v1048_v50 }
 0x3ad   :  { %v4893_v33 = vmax.f32 %v3656_v51, 0.0  ;;  %v4895_v59 = vmax.f32 %v3660_v52, 0.0 }
 0x3ae   :  { %v4903_v40 = vmax.f32 %v3658_v54, 0.0  ;;  %v4905_v44 = vmax.f32 %v3662_v32, 0.0 }
 0x3af   :  { %5989 = vst [vmem:[#allocation17_spill] sm:$0xff] %v4893_v33  ;;  %5990 = vst [vmem:[#allocation15_spill] sm:$0xff] %v4895_v59  ;;  %v1197_v19 = vrot.slane %v4893_v33, 1  ;;  %v1241_v23 = vrot.slane %v4893_v33, 2  ;;  %v1111_v31 = vrot.slane %v4895_v59, 6  ;;  %v1155_v62 = vrot.slane %v4895_v59, 7 }
 0x3b0   :  { %5991 = vst [vmem:[#allocation16_spill] sm:$0xff] %v4903_v40  ;;  %5992 = vst [vmem:[#allocation22_spill] sm:$0xff] %v4905_v44  ;;  %v1097_v24 = vmul.f32 %v4891_v3, %v4903_v40  ;;  %v1105_v60 = vrot.slane %v4903_v40, 6  ;;  %v1149_v55 = vrot.slane %v4903_v40, 7  ;;  %v1193_v7 = vrot.slane %v4903_v40, 1  ;;  %v3653_v21 = vpop.f32.mrb[20].mxu0 }
 0x3b1   :  { %v1237_v4 = vrot.slane %v4903_v40, 2  ;;  %v1098_v37 = vmul.f32 %v4891_v3, %v4905_v44  ;;  %v1107_v30 = vrot.slane %v4905_v44, 6  ;;  %v1151_v56 = vrot.slane %v4905_v44, 7  ;;  %v1061_v26 = vpop.f32.mrb[21].mxu0 }
 0x3b2   :  { %v1119_v1 = vsel %vm344_vm2, %v1111_v31, %v1105_v60  ;;  %v1195_v2 = vrot.slane %v4905_v44, 1  ;;  %v1239_v22 = vrot.slane %v4905_v44, 2  ;;  %v3664_v27 = vadd.f32 %v3661_v38, %v3653_v21  ;;  %v3654_v5 = vpop.f32.mrb[22].mxu0 }
 0x3b3   :  { %v3666_v34 = vadd.f32 %v3661_v38, %v1061_v26  ;;  %v3668_v57 = vadd.f32 %v3661_v38, %v3654_v5  ;;  %v1064_v39 = vpop.f32.mrb[23].mxu0  ;;  %v1117_v45 = vsel %vm344_vm2, %v1105_v60, %v1107_v30  ;;  %v1121_v35 = vsel %vm353_vm7, %v1119_v1, 0.0 }
 0x3b4   :  { %v4935_v36 = vmax.f32 %v3664_v27, 0.0  ;;  %v3670_v42 = vadd.f32 %v3661_v38, %v1064_v39  ;;  %v1133_v0 = vmul.f32 %v4898_v6, %v1121_v35  ;;  %v1134_v28 = vmul.f32 %v4898_v6, %v1117_v45 }
 0x3b5   :  { %v4939_v61 = vmax.f32 %v3666_v34, 0.0  ;;  %v4941_v41 = vmax.f32 %v3668_v57, 0.0  ;;  %v1161_v9 = vsel %vm393_vm3, %v1149_v55, %v1151_v56  ;;  %v1163_v58 = vsel %vm393_vm3, %v1155_v62, %v1149_v55 }
 0x3b6   :  { %5993 = vst [vmem:[#allocation23_spill] sm:$0xff] %v4935_v36  ;;  %v1110_v18 = vrot.slane %v4935_v36, 6  ;;  %v4950_v63 = vmax.f32 %v3670_v42, 0.0  ;;  %v1141_v46 = vadd.f32 %v1133_v0, %v1097_v24  ;;  %v1142_v38 = vadd.f32 %v1134_v28, %v1098_v37  ;;  %v6087_v14 = vld [vmem:[#allocation17_spill] sm:$0xff] }
 0x3b7   :  { %5994 = vst [vmem:[#allocation24_spill] sm:$0xff] %v4939_v61  ;;  %5995 = vst [vmem:[#allocation25_spill] sm:$0xff] %v4941_v41  ;;  %v1106_v48 = vrot.slane %v4939_v61, 6  ;;  %v1112_v12 = vrot.slane %v4941_v41, 6  ;;  %v1165_v25 = vsel %vm402_vm8, %v1163_v58, 0.0  ;;  %v1178_v53 = vmul.f32 %v4901_v8, %v1161_v9 }
 0x3b8   :  { %5996 = vst [vmem:[#allocation26_spill] sm:$0xff] %v4950_v63  ;;  %v1108_v20 = vrot.slane %v4950_v63, 6  ;;  %v1177_v49 = vmul.f32 %v4901_v8, %v1165_v25  ;;  %v1203_v51 = vsel %vm442_vm4, %v1195_v2, %v1197_v19  ;;  %v1205_v52 = vsel %vm442_vm4, %v1193_v7, %v1195_v2 }
 0x3b9   :  { %v1186_v50 = vadd.f32 %v1178_v53, %v1142_v38  ;;  %v1221_v54 = vmul.f32 %v4908_v29, %v1205_v52  ;;  %v1222_v32 = vmul.f32 %v4908_v29, %v1203_v51  ;;  %v1247_v24 = vsel %vm491_vm5, %v1239_v22, %v1241_v23  ;;  %v3787_v51 = vld [vmem:[#allocation5 + $0x80] ss:$8 sps:$4 sm:$0xff]  }
 0x3ba   :  { %v1185_v60 = vadd.f32 %v1177_v49, %v1141_v46  ;;  %v1249_v55 = vsel %vm491_vm5, %v1237_v4, %v1239_v22  ;;  %v1266_v21 = vmul.f32 %v4911_v47, %v1247_v24  ;;  %v1099_v37 = vmul.f32 %v4891_v3, %v4893_v33 }
 0x3bb   :  { %v1230_v26 = vadd.f32 %v1222_v32, %v1186_v50  ;;  %v1265_v1 = vmul.f32 %v4911_v47, %v1249_v55  ;;  %v1100_v2 = vmul.f32 %v4891_v3, %v4895_v59  ;;  %v1109_v27 = vrot.slane %v4893_v33, 6  ;;  %v3792_v50 = vld [vmem:[#allocation5 + $0x94] ss:$8 sps:$4 sm:$0xff]  }
 0x3bc   :  { %v1229_v5 = vadd.f32 %v1221_v54, %v1185_v60  ;;  %v1153_v34 = vrot.slane %v4893_v33, 7  ;;  %v1199_v57 = vrot.slane %v4895_v59, 1  ;;  %v1243_v22 = vrot.slane %v4895_v59, 2 }
 0x3bd   :  { %v1274_v39 = vadd.f32 %v1266_v21, %v1230_v26  ;;  %v1113_v45 = vsel %vm344_vm2, %v1109_v27, %v1111_v31  ;;  %v1115_v35 = vsel %vm344_vm2, %v1107_v30, %v1109_v27  ;;  %v1101_v42 = vmul.f32 %v4891_v3, %v4939_v61  ;;  %v3790_v27 = vld [vmem:[#allocation5 + $0x90] ss:$8 sps:$4 sm:$0xff]  }
 0x3be   :  { %v1273_v0 = vadd.f32 %v1265_v1, %v1229_v5  ;;  %v1135_v28 = vmul.f32 %v4898_v6, %v1115_v35  ;;  %v1136_v9 = vmul.f32 %v4898_v6, %v1113_v45  ;;  %v1157_v58 = vsel %vm393_vm3, %v1153_v34, %v1155_v62 }
 0x3bf   :  { %v1159_v46 = vsel %vm393_vm3, %v1151_v56, %v1153_v34  ;;  %v1180_v31 = vmul.f32 %v4901_v8, %v1157_v58  ;;  %v1201_v30 = vsel %vm442_vm4, %v1197_v19, %v1199_v57  ;;  %v1207_v38 = vsel %vm442_vm4, %v1199_v57, %v1193_v7 }
 0x3c0   :  { %v1281_v25 = vpack.c.bf16 %v1274_v39, %v1273_v0  ;;  %v1143_v53 = vadd.f32 %v1135_v28, %v1099_v37  ;;  %v1144_v49 = vadd.f32 %v1136_v9, %v1100_v2  ;;  %v1179_v62 = vmul.f32 %v4901_v8, %v1159_v46  ;;  %v3795_v39 = vld [vmem:[#allocation5 + $0xa4] ss:$8 sps:$4 sm:$0xff]  }
 0x3c1   :  { %v1212_v56 = vsel %vm454_vm6, %v1207_v38, 0.0  ;;  %v1223_v52 = vmul.f32 %v4908_v29, %v1201_v30  ;;  %v1245_v19 = vsel %vm491_vm5, %v1241_v23, %v1243_v22  ;;  %v1251_v7 = vsel %vm491_vm5, %v1243_v22, %v1237_v4 }
 0x3c2   :  { %1427 = vmatmul.mubr.bf16.vlgmr.msra.gmra.mrb[8].mxu1 %v1281_v25  ;;  %v1187_v54 = vadd.f32 %v1179_v62, %v1143_v53  ;;  %v1188_v32 = vadd.f32 %v1180_v31, %v1144_v49  ;;  %v1224_v24 = vmul.f32 %v4908_v29, %v1212_v56  ;;  %v1256_v60 = vsel %vm503_vm9, %v1251_v7, 0.0  ;;  %v3793_v53 = vld [vmem:[#allocation5 + $0xa0] ss:$8 sps:$4 sm:$0xff]  }
 0x3c3   :  { %1436 = vmatprep.mubr.bf16.mxu1 %v5922_v43  ;;  %v1267_v55 = vmul.f32 %v4911_v47, %v1245_v19  ;;  %v1268_v23 = vmul.f32 %v4911_v47, %v1256_v60  ;;  %v1102_v21 = vmul.f32 %v4891_v3, %v4950_v63  ;;  %v1118_v4 = vsel %vm344_vm2, %v1106_v48, %v1108_v20 }
 0x3c4   :  { %v1231_v37 = vadd.f32 %v1223_v52, %v1187_v54  ;;  %v1232_v26 = vadd.f32 %v1224_v24, %v1188_v32  ;;  %v1120_v1 = vsel %vm344_vm2, %v1112_v12, %v1106_v48  ;;  %v1138_v2 = vmul.f32 %v4898_v6, %v1118_v4  ;;  %2091 = vmatpush1.bf16.msra.mxu1 %v3787_v51  ;;  %v3798_v52 = vld [vmem:[#allocation5 + $0xb4] ss:$8 sps:$4 sm:$0xff]  }
 0x3c5   :  { %v1125_v5 = vsel %vm353_vm7, %v1120_v1, 0.0  ;;  %v1150_v34 = vrot.slane %v4939_v61, 7  ;;  %v1152_v57 = vrot.slane %v4950_v63, 7  ;;  %v1156_v22 = vrot.slane %v4941_v41, 7  ;;  %2092 = vmatprep.subr.bf16.mxu1 %v3792_v50 }
 0x3c6   :  { %v1275_v45 = vadd.f32 %v1267_v55, %v1231_v37  ;;  %v1276_v35 = vadd.f32 %v1268_v23, %v1232_v26  ;;  %v1137_v0 = vmul.f32 %v4898_v6, %v1125_v5  ;;  %v1146_v48 = vadd.f32 %v1138_v2, %v1102_v21  ;;  %v3796_v37 = vld [vmem:[#allocation5 + $0xb0] ss:$8 sps:$4 sm:$0xff]  }
 0x3c7   :  { %v1162_v28 = vsel %vm393_vm3, %v1150_v34, %v1152_v57  ;;  %v1164_v9 = vsel %vm393_vm3, %v1156_v22, %v1150_v34  ;;  %v1194_v58 = vrot.slane %v4939_v61, 1  ;;  %v1196_v46 = vrot.slane %v4950_v63, 1 }
 0x3c8   :  { %v1282_v31 = vpack.c.bf16 %v1276_v35, %v1275_v45  ;;  %v1145_v30 = vadd.f32 %v1137_v0, %v1101_v42  ;;  %v1169_v38 = vsel %vm402_vm8, %v1164_v9, 0.0  ;;  %v1182_v25 = vmul.f32 %v4901_v8, %v1162_v28  ;;  %2093 = vmatpush1.bf16.msra.mxu1 %v3790_v27  ;;  %v3801_v27 = vld [vmem:[#allocation5 + $0xc4] ss:$8 sps:$4 sm:$0xff]  }
 0x3c9   :  { %v1181_v49 = vmul.f32 %v4901_v8, %v1169_v38  ;;  %v1198_v62 = vrot.slane %v4935_v36, 1  ;;  %v1206_v51 = vsel %vm442_vm4, %v1194_v58, %v1196_v46  ;;  %v1238_v56 = vrot.slane %v4939_v61, 2  ;;  %2094 = vmatprep.subr.bf16.mxu1 %v3795_v39  ;;  %v3799_v38 = vld [vmem:[#allocation5 + $0xc0] ss:$8 sps:$4 sm:$0xff]  }
 0x3ca   :  { %1437 = vmatmul.mubr.bf16.gmra.mrb[12].mxu1 %v1282_v31  ;;  %v1190_v42 = vadd.f32 %v1182_v25, %v1146_v48  ;;  %v1225_v19 = vmul.f32 %v4908_v29, %v1206_v51  ;;  %v1240_v7 = vrot.slane %v4950_v63, 2  ;;  %v1242_v50 = vrot.slane %v4935_v36, 2 }
 0x3cb   :  { %1446 = vmatprep.mubr.bf16.mxu1 %v5922_v43  ;;  %v1189_v54 = vadd.f32 %v1181_v49, %v1145_v30  ;;  %v1204_v32 = vsel %vm442_vm4, %v1196_v46, %v1198_v62  ;;  %v1103_v24 = vmul.f32 %v4891_v3, %v4935_v36  ;;  %v1104_v60 = vmul.f32 %v4891_v3, %v4941_v41  ;;  %v3804_v49 = vld [vmem:[#allocation5 + $0xd4] ss:$8 sps:$4 sm:$0xff]  }
 0x3cc   :  { %v1226_v55 = vmul.f32 %v4908_v29, %v1204_v32  ;;  %v1248_v23 = vsel %vm491_vm5, %v1240_v7, %v1242_v50  ;;  %v1250_v21 = vsel %vm491_vm5, %v1238_v56, %v1240_v7  ;;  %v1114_v4 = vsel %vm344_vm2, %v1110_v18, %v1112_v12  ;;  %2095 = vmatpush1.bf16.msra.mxu1 %v3793_v53 }
 0x3cd   :  { %v1233_v26 = vadd.f32 %v1225_v19, %v1189_v54  ;;  %v1269_v3 = vmul.f32 %v4911_v47, %v1250_v21  ;;  %v1270_v1 = vmul.f32 %v4911_v47, %v1248_v23  ;;  %v1116_v2 = vsel %vm344_vm2, %v1108_v20, %v1110_v18  ;;  %2096 = vmatprep.subr.bf16.mxu1 %v3798_v52  ;;  %v3805_v21 = vld [vmem:[#allocation5 + $0xe0] ss:$8 sps:$4 sm:$0xff]  }
 0x3ce   :  { %v1234_v5 = vadd.f32 %v1226_v55, %v1190_v42  ;;  %v1139_v34 = vmul.f32 %v4898_v6, %v1116_v2  ;;  %v1140_v12 = vmul.f32 %v4898_v6, %v1114_v4  ;;  %v1154_v39 = vrot.slane %v4935_v36, 7  ;;  %v3816_v2 = vld [vmem:[#allocation5 + $0x114] ss:$8 sps:$4 sm:$0xff]  }
 0x3cf   :  { %v1277_v45 = vadd.f32 %v1269_v3, %v1233_v26  ;;  %v1200_v35 = vrot.slane %v4941_v41, 1  ;;  %v1244_v0 = vrot.slane %v4941_v41, 2  ;;  %v3808_v26 = vld [vmem:[#allocation5 + $0xf0] ss:$8 sps:$4 sm:$0xff]   ;;  %v3811_v3 = vld [vmem:[#allocation5 + $0x100] ss:$8 sps:$4 sm:$0xff]  }
 0x3d0   :  { %v1278_v28 = vadd.f32 %v1270_v1, %v1234_v5  ;;  %v1147_v9 = vadd.f32 %v1139_v34, %v1103_v24  ;;  %v1148_v18 = vadd.f32 %v1140_v12, %v1104_v60  ;;  %v1158_v20 = vsel %vm393_vm3, %v1154_v39, %v1156_v22  ;;  %2097 = vmatpush1.bf16.msra.mxu1 %v3796_v37  ;;  %v3810_v37 = vld [vmem:[#allocation5 + $0xf4] ss:$8 sps:$4 sm:$0xff]   ;;  %v3813_v1 = vld [vmem:[#allocation5 + $0x104] ss:$8 sps:$4 sm:$0xff]   ;;  %v3820_v12 = vld [vmem:[#allocation5 + $0x130] ss:$8 sps:$4 sm:$0xff]  }
 0x3d1   :  { %v1160_v6 = vsel %vm393_vm3, %v1152_v57, %v1154_v39  ;;  %v1184_v46 = vmul.f32 %v4901_v8, %v1158_v20  ;;  %v1202_v31 = vsel %vm442_vm4, %v1198_v62, %v1200_v35  ;;  %v1208_v30 = vsel %vm442_vm4, %v1200_v35, %v1194_v58  ;;  %2098 = vmatprep.subr.bf16.mxu1 %v3801_v27  ;;  %v3817_v27 = vld [vmem:[#allocation5 + $0x120] ss:$8 sps:$4 sm:$0xff]   ;;  %v3819_v5 = vld [vmem:[#allocation5 + $0x124] ss:$8 sps:$4 sm:$0xff]   ;;  %v3822_v34 = vld [vmem:[#allocation5 + $0x134] ss:$8 sps:$4 sm:$0xff]  }
 0x3d2   :  { %v1283_v25 = vpack.c.bf16 %v1278_v28, %v1277_v45  ;;  %v1183_v53 = vmul.f32 %v4901_v8, %v1160_v6  ;;  %v1216_v22 = vsel %vm454_vm6, %v1208_v30, 0.0  ;;  %v1246_v52 = vsel %vm491_vm5, %v1242_v50, %v1244_v0  ;;  %v3802_v50 = vld [vmem:[#allocation5 + $0xd0] ss:$8 sps:$4 sm:$0xff]   ;;  %v3825_v39 = vld [vmem:[#allocation5 + $0x144] ss:$8 sps:$4 sm:$0xff]  }
 0x3d3   :  { %v1192_v51 = vadd.f32 %v1184_v46, %v1148_v18  ;;  %v1228_v57 = vmul.f32 %v4908_v29, %v1216_v22  ;;  %v1252_v62 = vsel %vm491_vm5, %v1244_v0, %v1238_v56  ;;  %v1227_v42 = vmul.f32 %v4908_v29, %v1202_v31  ;;  %v3807_v29 = vld [vmem:[#allocation5 + $0xe4] ss:$8 sps:$4 sm:$0xff]   ;;  %v3823_v45 = vld [vmem:[#allocation5 + $0x140] ss:$8 sps:$4 sm:$0xff]   ;;  %v3828_v35 = vld [vmem:[#allocation5 + $0x154] ss:$8 sps:$4 sm:$0xff]  }
 0x3d4   :  { %1447 = vmatmul.mubr.bf16.gmra.mrb[16].mxu1 %v1283_v25  ;;  %v1191_v58 = vadd.f32 %v1183_v53, %v1147_v9  ;;  %v1260_v8 = vsel %vm503_vm9, %v1252_v62, 0.0  ;;  %v1271_v24 = vmul.f32 %v4911_v47, %v1246_v52  ;;  %v3826_v0 = vld [vmem:[#allocation5 + $0x150] ss:$8 sps:$4 sm:$0xff]   ;;  %v3831_v28 = vld [vmem:[#allocation5 + $0x164] ss:$8 sps:$4 sm:$0xff]  }
 0x3d5   :  { %1456 = vmatprep.mubr.bf16.mxu1 %v5922_v43  ;;  %v1236_v7 = vadd.f32 %v1228_v57, %v1192_v51  ;;  %v1272_v54 = vmul.f32 %v4911_v47, %v1260_v8  ;;  %2099 = vmatpush1.bf16.msra.mxu1 %v3799_v38  ;;  %v3814_v47 = vld [vmem:[#allocation5 + $0x110] ss:$8 sps:$4 sm:$0xff]   ;;  %v3829_v9 = vld [vmem:[#allocation5 + $0x160] ss:$8 sps:$4 sm:$0xff]   ;;  %v3834_v18 = vld [vmem:[#allocation5 + $0x174] ss:$8 sps:$4 sm:$0xff]  }
 0x3d6   :  { %v1235_v32 = vadd.f32 %v1227_v42, %v1191_v58  ;;  %2100 = vmatprep.subr.bf16.mxu1 %v3804_v49  ;;  %v3832_v20 = vld [vmem:[#allocation5 + $0x170] ss:$8 sps:$4 sm:$0xff]   ;;  %v3837_v6 = vld [vmem:[#allocation5 + $0x184] ss:$8 sps:$4 sm:$0xff]  }
 0x3d7   :  { %v1280_v55 = vadd.f32 %v1272_v54, %v1236_v7  ;;  %v3342_v46 = vld [vmem:[%s5908_s4 + $0x4] ss:$8 sm:$0x3]  ;;  %v3859_v31 = vld [vmem:[#allocation7] ss:$16 sps:$4 sm:$0xff]  }
 0x3d8   :  { %v1279_v23 = vadd.f32 %v1271_v24, %v1235_v32  ;;  %v3861_v30 = vld [vmem:[#allocation7 + $0x4] ss:$16 sps:$4 sm:$0xff]   ;;  %v5128_v38 = vrot.slane %v3342_v46, %v4269_v13  ;;  %v5131_v53 = vrot.slane %v3342_v46, %v4275_v15  ;;  %v1483_v22 = vld [vmem:[%s5908_s4 + $0xa0] sm:$0x1f]  ;;  %v3862_v51 = vld [vmem:[#allocation7 + $0x20] ss:$16 sps:$4 sm:$0xff]  }
 0x3d9   :  { %2101 = vmatpush1.bf16.msra.mxu1 %v3802_v50  ;;  %v3864_v25 = vld [vmem:[#allocation7 + $0x24] ss:$16 sps:$4 sm:$0xff]   ;;  %2832 = vmatprep.subr.bf16.mxu0 %v3861_v30  ;;  %v5141_v42 = vrot.slane %v1483_v22, %v4263_v11  ;;  %v5151_v24 = vrot.slane %v1483_v22, %v4269_v13 }
 0x3da   :  { %v1284_v4 = vpack.c.bf16 %v1280_v55, %v1279_v23  ;;  %2102 = vmatprep.subr.bf16.mxu1 %v3807_v29  ;;  %v1484_v49 = vld [vmem:[%s5908_s4 + $0xa8] sm:$0x1f]  ;;  %2833 = vmatpush1.bf16.msra.mxu0 %v3859_v31  ;;  %v5154_v29 = vrot.slane %v1483_v22, %v4275_v15 }
 0x3db   :  { %2834 = vmatprep.subr.bf16.mxu0 %v3864_v25  ;;  %v3867_v52 = vld [vmem:[#allocation7 + $0x44] ss:$16 sps:$4 sm:$0xff]   ;;  %v5145_v7 = vrot.slane %v1484_v49, %v4263_v11  ;;  %v3865_v23 = vld [vmem:[#allocation7 + $0x40] ss:$16 sps:$4 sm:$0xff]  }
 0x3dc   :  { %1457 = vmatmul.mubr.bf16.gmra.mrb[20].mxu1 %v1284_v4 }
 0x3dd   :  { %2103 = vmatpush1.bf16.msra.mxu1 %v3805_v21 }
 0x3de   :  { %2104 = vmatprep.subr.bf16.mxu1 %v3810_v37  ;;  %2835 = vmatpush1.bf16.msra.mxu0 %v3862_v51  ;;  %v5160_v37 = vrot.slane %v1484_v49, %v4269_v13 }
 0x3df   :  { %2836 = vmatprep.subr.bf16.mxu0 %v3867_v52 }
 0x3e1   :  { %2105 = vmatpush1.bf16.msra.mxu1 %v3808_v26  ;;  %v5163_v26 = vrot.slane %v1484_v49, %v4275_v15 }
 0x3e2   :  { %2106 = vmatprep.subr.bf16.mxu1 %v3813_v1  ;;  %v5169_v1 = vrot.slane %v1484_v49, %v4281_v17  ;;  %2837 = vmatpush1.bf16.msra.mxu0 %v3865_v23 }
 0x3e5   :  { %2107 = vmatpush1.bf16.msra.mxu1 %v3811_v3  ;;  %v5166_v3 = vrot.slane %v1484_v49, %v4278_v16 }
 0x3e6   :  { %2108 = vmatprep.subr.bf16.mxu1 %v3816_v2  ;;  %v5175_v2 = vrot.slane %v1483_v22, %v4281_v17 }
 0x3e9   :  { %2109 = vmatpush1.bf16.msra.mxu1 %v3814_v47  ;;  %v5172_v47 = vrot.slane %v1483_v22, %v4278_v16 }
 0x3ea   :  { %2110 = vmatprep.subr.bf16.mxu1 %v3819_v5 }
 0x3ed   :  { %2111 = vmatpush1.bf16.msra.mxu1 %v3817_v27 }
 0x3ee   :  { %2112 = vmatprep.subr.bf16.mxu1 %v3822_v34 }
 0x3f1   :  { %2113 = vmatpush1.bf16.msra.mxu1 %v3820_v12 }
 0x3f2   :  { %2114 = vmatprep.subr.bf16.mxu1 %v3825_v39 }
 0x3f5   :  { %2115 = vmatpush1.bf16.msra.mxu1 %v3823_v45 }
 0x3f6   :  { %2116 = vmatprep.subr.bf16.mxu1 %v3828_v35 }
 0x3f9   :  { %2117 = vmatpush1.bf16.msra.mxu1 %v3826_v0 }
 0x3fa   :  { %2118 = vmatprep.subr.bf16.mxu1 %v3831_v28 }
 0x3fd   :  { %2119 = vmatpush1.bf16.msra.mxu1 %v3829_v9 }
 0x3fe   :  { %2120 = vmatprep.subr.bf16.mxu1 %v3834_v18 }
 0x401   :  { %2121 = vmatpush1.bf16.msra.mxu1 %v3832_v20 }
 0x402   :  { %2260 = vmatprep.subr.bf16.mxu1 %v3837_v6 }
 0x495   :  { %v1428_v57 = vpop.f32.mrb[8].mxu1 }
 0x496   :  { %v1429_v62 = vadd.f32 %v1428_v57, %v5128_v38  ;;  %v1430_v58 = vpop.f32.mrb[9].mxu1 }
 0x497   :  { %v1431_v8 = vadd.f32 %v1430_v58, %v5131_v53  ;;  %v1432_v54 = vpop.f32.mrb[10].mxu1 }
 0x498   :  { %v5147_v50 = vmax.f32 %v1429_v62, 0.0  ;;  %v1433_v32 = vadd.f32 %v1432_v54, %v5128_v38  ;;  %v1434_v55 = vpop.f32.mrb[11].mxu1 }
 0x499   :  { %v5156_v21 = vmax.f32 %v1431_v8, 0.0  ;;  %v1435_v4 = vadd.f32 %v1434_v55, %v5131_v53 }
 0x49a   :  { %v5179_v27 = vmul.f32 %v5141_v42, %v5147_v50  ;;  %v1509_v5 = vrot.slane %v5147_v50, 6  ;;  %v1597_v34 = vrot.slane %v5147_v50, 7  ;;  %v5924_v12 = vrot.slane %v5147_v50, 1 }
 0x49b   :  { %v5187_v45 = vmul.f32 %v5145_v7, %v5156_v21  ;;  %v5189_v35 = vmax.f32 %v1433_v32, 0.0  ;;  %v5191_v17 = vmax.f32 %v1435_v4, 0.0  ;;  %v1510_v0 = vrot.slane %v5156_v21, 6 }
 0x49c   :  { %v5933_v28 = vrot.slane %v5156_v21, 7  ;;  %v5927_v9 = vrot.slane %v5156_v21, 1 }
 0x49d   :  { %v1438_v18 = vpop.f32.mrb[12].mxu1  ;;  %v1495_v6 = vmul.f32 %v5141_v42, %v5189_v35  ;;  %v5926_v46 = vrot.slane %v5189_v35, 6  ;;  %v5925_v31 = vrot.slane %v5189_v35, 7  ;;  %v1689_v30 = vrot.slane %v5189_v35, 1 }
 0x49e   :  { %v1440_v25 = vpop.f32.mrb[13].mxu1  ;;  %v1496_v49 = vmul.f32 %v5145_v7, %v5191_v17  ;;  %v5929_v51 = vrot.slane %v5191_v17, 6  ;;  %v5928_v57 = vrot.slane %v5191_v17, 7  ;;  %v5931_v54 = vrot.slane %v5191_v17, 1 }
 0x49f   :  { %v1442_v52 = vpop.f32.mrb[14].mxu1  ;;  %v1533_v62 = vsel %vm344_vm2, %v1509_v5, %v5926_v46  ;;  %v1621_v58 = vsel %vm393_vm3, %v1597_v34, %v5925_v31  ;;  %v5223_v8 = vsel %vm442_vm4, %v5924_v12, %v1689_v30  ;;  %v1439_v4 = vadd.f32 %v1438_v18, %v5128_v38 }
 0x4a0   :  { %v1444_v32 = vpop.f32.mrb[15].mxu1  ;;  %v1567_v55 = vmul.f32 %v5151_v24, %v1533_v62  ;;  %v1655_v23 = vmul.f32 %v5154_v29, %v1621_v58  ;;  %v1441_v60 = vadd.f32 %v1440_v25, %v5131_v53  ;;  %v1443_v56 = vadd.f32 %v1442_v52, %v5128_v38 }
 0x4a1   :  { %v1445_v19 = vadd.f32 %v1444_v32, %v5131_v53  ;;  %v1534_v48 = vsel %vm344_vm2, %v1510_v0, %v5929_v51  ;;  %v1622_v18 = vsel %vm393_vm3, %v5933_v28, %v5928_v57  ;;  %v5244_v25 = vmax.f32 %v1439_v4, 0.0 }
 0x4a2   :  { %v1583_v62 = vadd.f32 %v1567_v55, %v1495_v6  ;;  %v5246_v52 = vmax.f32 %v1441_v60, 0.0  ;;  %v1568_v58 = vmul.f32 %v5160_v37, %v1534_v48  ;;  %v5249_v32 = vmax.f32 %v1443_v56, 0.0 }
 0x4a3   :  { %v5251_v43 = vmax.f32 %v1445_v19, 0.0  ;;  %v5254_v12 = vmul.f32 %v5163_v26, %v1622_v18  ;;  %v5262_v6 = vsel %vm442_vm4, %v5927_v9, %v5931_v54  ;;  %v5268_v48 = vmul.f32 %v5141_v42, %v5244_v25 }
 0x4a4   :  { %v5264_v55 = vadd.f32 %v1655_v23, %v1583_v62  ;;  %v5930_v60 = vrot.slane %v5244_v25, 1  ;;  %v5276_v18 = vmul.f32 %v5145_v7, %v5246_v52  ;;  %v5283_v46 = vmul.f32 %v5141_v42, %v5249_v32 }
 0x4a5   :  { %v5932_v56 = vrot.slane %v5249_v32, 6  ;;  %v5934_v57 = vrot.slane %v5249_v32, 7  ;;  %v5296_v23 = vmul.f32 %v5145_v7, %v5251_v43  ;;  %v6007_v63 = vrot.slane %v5251_v43, 6 }
 0x4a6   :  { %v5290_v9 = vsel %vm442_vm4, %v1689_v30, %v5930_v60  ;;  %v6011_v59 = vrot.slane %v5251_v43, 7 }
 0x4a7   :  { %v1448_v19 = vpop.f32.mrb[16].mxu1  ;;  %v1537_v39 = vsel %vm344_vm2, %v5932_v56, %v1509_v5  ;;  %v1625_v20 = vsel %vm393_vm3, %v5934_v57, %v1597_v34  ;;  %v5997_v34 = vrot.slane %v5251_v43, 6 }
 0x4a8   :  { %v1450_v31 = vpop.f32.mrb[17].mxu1  ;;  %v1541_v51 = vsel %vm353_vm7, %v1537_v39, 0.0  ;;  %v1449_v54 = vadd.f32 %v1448_v19, %v5128_v38  ;;  %v5322_v60 = vsel %vm402_vm8, %v1625_v20, 0.0 }
 0x4a9   :  { %v1452_v4 = vpop.f32.mrb[18].mxu1  ;;  %v1451_v5 = vadd.f32 %v1450_v31, %v5131_v53  ;;  %v5318_v62 = vmul.f32 %v5151_v24, %v1541_v51  ;;  %v1538_v31 = vsel %vm344_vm2, %v5997_v34, %v1510_v0  ;;  %v1584_v51 = vadd.f32 %v1568_v58, %v1496_v49 }
 0x4aa   :  { %v1454_v56 = vpop.f32.mrb[19].mxu1  ;;  %v1453_v39 = vadd.f32 %v1452_v4, %v5128_v38  ;;  %v5326_v28 = vmax.f32 %v1449_v54, 0.0  ;;  %v1542_v4 = vsel %vm353_vm7, %v1538_v31, 0.0  ;;  %v5998_v54 = vrot.slane %v5156_v21, 7 }
 0x4ab   :  { %v1455_v30 = vadd.f32 %v1454_v56, %v5131_v53  ;;  %v5328_v22 = vmax.f32 %v1451_v5, 0.0  ;;  %v5999_v56 = vrot.slane %v5251_v43, 7  ;;  %v1566_v58 = vmul.f32 %v5160_v37, %v1542_v4 }
 0x4ac   :  { %v5336_v19 = vmax.f32 %v1453_v39, 0.0  ;;  %v5350_v57 = vmul.f32 %v5141_v42, %v5326_v28  ;;  %v1672_v34 = vadd.f32 %v5254_v12, %v1584_v51  ;;  %v6000_v31 = vrot.slane %v5246_v52, 1 }
 0x4ad   :  { %v5338_v20 = vmax.f32 %v1455_v30, 0.0  ;;  %v1626_v5 = vsel %vm393_vm3, %v5999_v56, %v5998_v54  ;;  %v5357_v30 = vmul.f32 %v5145_v7, %v5328_v22  ;;  %v6001_v39 = vrot.slane %v5191_v17, 1 }
 0x4ae   :  { %v5364_v56 = vmul.f32 %v5141_v42, %v5336_v19  ;;  %v1630_v61 = vsel %vm402_vm8, %v1626_v5, 0.0  ;;  %v1742_v12 = vmul.f32 %v5166_v3, %v5262_v6 }
 0x4af   :  { %v1458_v54 = vpop.f32.mrb[20].mxu1  ;;  %v5371_v11 = vmul.f32 %v5145_v7, %v5338_v20  ;;  %v1654_v4 = vmul.f32 %v5163_v26, %v1630_v61  ;;  %v6006_v61 = vrot.slane %v5147_v50, 2 }
 0x4b0   :  { %v1460_v16 = vpop.f32.mrb[21].mxu1  ;;  %v1459_v13 = vadd.f32 %v1458_v54, %v5128_v38  ;;  %v1706_v54 = vsel %vm442_vm4, %v6001_v39, %v6000_v31  ;;  %v1782_v39 = vrot.slane %v5246_v52, 2  ;;  %v1581_v31 = vadd.f32 %v5318_v62, %v5179_v27 }
 0x4b1   :  { %v1462_v15 = vpop.f32.mrb[22].mxu1  ;;  %v1461_v0 = vadd.f32 %v1460_v16, %v5131_v53  ;;  %v1744_v51 = vmul.f32 %v5166_v3, %v1706_v54  ;;  %v1653_v54 = vmul.f32 %v5154_v29, %v5322_v60  ;;  %v6003_v27 = vrot.slane %v5244_v25, 2 }
 0x4b2   :  { %v1463_v49 = vadd.f32 %v1462_v15, %v5128_v38  ;;  %v1464_v36 = vpop.f32.mrb[23].mxu1  ;;  %v5390_v16 = vmax.f32 %v1459_v13, 0.0  ;;  %v6004_v62 = vrot.slane %v5189_v35, 2 }
 0x4b3   :  { %v1465_v41 = vadd.f32 %v1464_v36, %v5131_v53  ;;  %v5392_v15 = vmax.f32 %v1461_v0, 0.0  ;;  %v1582_v36 = vadd.f32 %v1566_v58, %v5187_v45  ;;  %v1760_v6 = vadd.f32 %v1744_v51, %v1672_v34 }
 0x4b4   :  { %v5394_v38 = vmax.f32 %v1463_v49, 0.0  ;;  %v5405_v5 = vmul.f32 %v5141_v42, %v5390_v16  ;;  %v1743_v45 = vmul.f32 %v5172_v47, %v5290_v9  ;;  %v1793_v60 = vsel %vm491_vm5, %v6004_v62, %v6003_v27 }
 0x4b5   :  { %v5397_v53 = vmax.f32 %v1465_v41, 0.0  ;;  %v5412_v41 = vmul.f32 %v5145_v7, %v5392_v15  ;;  %v1670_v49 = vadd.f32 %v1654_v4, %v1582_v36  ;;  %v6002_v36 = vrot.slane %v5156_v21, 2 }
 0x4b6   :  { %v5419_v58 = vmul.f32 %v5141_v42, %v5394_v38  ;;  %v1778_v42 = vrot.slane %v5191_v17, 2  ;;  %v1759_v51 = vadd.f32 %v1743_v45, %v5264_v55  ;;  %v6008_v27 = vrot.slane %v5246_v52, 6 }
 0x4b7   :  { %v5426_v0 = vmul.f32 %v5145_v7, %v5397_v53  ;;  %v1741_v7 = vmul.f32 %v5172_v47, %v5223_v8  ;;  %v1758_v13 = vadd.f32 %v1742_v12, %v1670_v49  ;;  %v1669_v12 = vadd.f32 %v1653_v54, %v1581_v31 }
 0x4b8   :  { %v1794_v34 = vsel %vm491_vm5, %v1778_v42, %v1782_v39  ;;  %v1798_v4 = vsel %vm491_vm5, %v6002_v36, %v1778_v42  ;;  %v6005_v49 = vmov %v6004_v62  ;;  %v1831_v36 = vmul.f32 %v5175_v2, %v1793_v60 }
 0x4b9   :  { %v1830_v8 = vmul.f32 %v5169_v1, %v1798_v4  ;;  %v1832_v9 = vmul.f32 %v5169_v1, %v1794_v34  ;;  %v1797_v42 = vsel %vm491_vm5, %v6006_v61, %v6005_v49  ;;  %v1526_v4 = vsel %vm344_vm2, %v6008_v27, %v6007_v63 }
 0x4ba   :  { %v6009_v31 = vmov %v6008_v27  ;;  %v6010_v55 = vrot.slane %v5191_v17, 6  ;;  %v1757_v62 = vadd.f32 %v1741_v7, %v1669_v12  ;;  %v1829_v61 = vmul.f32 %v5175_v2, %v1797_v42 }
 0x4bb   :  { %v1846_v54 = vadd.f32 %v1830_v8, %v1758_v13  ;;  %v1848_v34 = vadd.f32 %v1832_v9, %v1760_v6  ;;  %v1847_v60 = vadd.f32 %v1831_v36, %v1759_v51  ;;  %v1572_v33 = vmul.f32 %v5160_v37, %v1526_v4  ;;  %v3835_v9 = vld [vmem:[#allocation5 + $0x180] ss:$8 sps:$4 sm:$0xff]  }
 0x4bc   :  { %v1530_v45 = vsel %vm344_vm2, %v6010_v55, %v6009_v31  ;;  %v6012_v63 = vrot.slane %v5246_v52, 7  ;;  %v1845_v44 = vadd.f32 %v1829_v61, %v1757_v62  ;;  %v6014_v6 = vrot.slane %v5191_v17, 7 }
 0x4bd   :  { %v1570_v49 = vmul.f32 %v5160_v37, %v1530_v45  ;;  %v1862_v40 = vpack.c.bf16 %v1848_v34, %v1846_v54  ;;  %v1588_v51 = vadd.f32 %v1572_v33, %v5296_v23  ;;  %v6016_v36 = vrot.slane %v5246_v52, 1  ;;  %v3840_v45 = vld [vmem:[#allocation5 + $0x194] ss:$8 sps:$4 sm:$0xff]  }
 0x4be   :  { %v1614_v27 = vsel %vm393_vm3, %v6012_v63, %v6011_v59  ;;  %v6013_v13 = vmov %v6012_v63  ;;  %v6015_v59 = vrot.slane %v5251_v43, 1  ;;  %v1861_v17 = vpack.c.bf16 %v1847_v60, %v1845_v44 }
 0x4bf   :  { %v1618_v7 = vsel %vm393_vm3, %v6014_v6, %v6013_v13  ;;  %v1660_v8 = vmul.f32 %v5163_v26, %v1614_v27  ;;  %v1586_v12 = vadd.f32 %v1570_v49, %v5276_v18  ;;  %2122 = vmatprep.mubr.bf16.mxu1 %v1862_v40  ;;  %v6017_v31 = vrot.slane %v5156_v21, 1 }
 0x4c0   :  { %v1658_v42 = vmul.f32 %v5163_v26, %v1618_v7  ;;  %v1702_v4 = vsel %vm442_vm4, %v6016_v36, %v6015_v59  ;;  %v6018_v55 = vmov %v6015_v59  ;;  %v1786_v23 = vrot.slane %v5251_v43, 2  ;;  %2123 = vmatmul.mubr.bf16.vlgmr.msra.gmra.mrb[24].mxu1 %v1861_v17 }
 0x4c1   :  { %v1714_v18 = vsel %vm442_vm4, %v6018_v55, %v6017_v31  ;;  %v1746_v33 = vmul.f32 %v5166_v3, %v1702_v4  ;;  %v1676_v34 = vadd.f32 %v1660_v8, %v1588_v51  ;;  %v6019_v40 = vrot.slane %v5249_v32, 6  ;;  %2261 = vmatpush1.bf16.msra.mxu1 %v3835_v9 }
 0x4c2   :  { %v1674_v54 = vadd.f32 %v1658_v42, %v1586_v12  ;;  %v1724_v52 = vsel %vm454_vm6, %v1714_v18, 0.0  ;;  %v6020_v44 = vrot.slane %v5244_v25, 6  ;;  %v1790_v60 = vsel %vm491_vm5, %v1782_v39, %v1786_v23  ;;  %v3838_v39 = vld [vmem:[#allocation5 + $0x190] ss:$8 sps:$4 sm:$0xff]   ;;  %2262 = vmatprep.subr.bf16.mxu1 %v3840_v45  ;;  %v3843_v42 = vld [vmem:[#allocation5 + $0x1a4] ss:$8 sps:$4 sm:$0xff]  }
 0x4c3   :  { %v1748_v61 = vmul.f32 %v5166_v3, %v1724_v52  ;;  %v6021_v43 = vrot.slane %v5156_v21, 2  ;;  %v6023_v27 = vrot.slane %v5189_v35, 6  ;;  %v1834_v8 = vmul.f32 %v5169_v1, %v1790_v60 }
 0x4c4   :  { %v1525_v62 = vsel %vm344_vm2, %v6020_v44, %v6019_v40  ;;  %v6022_v63 = vmov %v6020_v44  ;;  %v1762_v6 = vadd.f32 %v1746_v33, %v1674_v54  ;;  %v6024_v36 = vrot.slane %v5249_v32, 7  ;;  %v3841_v44 = vld [vmem:[#allocation5 + $0x1a0] ss:$8 sps:$4 sm:$0xff]  }
 0x4c5   :  { %v1802_v49 = vsel %vm491_vm5, %v1786_v23, %v6021_v43  ;;  %v1529_v13 = vsel %vm344_vm2, %v6023_v27, %v6022_v63  ;;  %v1764_v12 = vadd.f32 %v1748_v61, %v1676_v34  ;;  %v1571_v59 = vmul.f32 %v5151_v24, %v1525_v62  ;;  %2263 = vmatpush1.bf16.msra.mxu1 %v3838_v39 }
 0x4c6   :  { %v1812_v7 = vsel %vm503_vm9, %v1802_v49, 0.0  ;;  %v1569_v21 = vmul.f32 %v5151_v24, %v1529_v13  ;;  %v6025_v9 = vrot.slane %v5244_v25, 7  ;;  %v1850_v17 = vadd.f32 %v1834_v8, %v1762_v6  ;;  %2264 = vmatprep.subr.bf16.mxu1 %v3843_v42  ;;  %v3846_v8 = vld [vmem:[#allocation5 + $0x1b4] ss:$8 sps:$4 sm:$0xff]  }
 0x4c7   :  { %v1836_v51 = vmul.f32 %v5169_v1, %v1812_v7  ;;  %v6027_v18 = vrot.slane %v5189_v35, 7  ;;  %v1587_v54 = vadd.f32 %v1571_v59, %v5283_v46  ;;  %v6028_v52 = vrot.slane %v5249_v32, 1 }
 0x4c8   :  { %v1613_v4 = vsel %vm393_vm3, %v6025_v9, %v6024_v36  ;;  %v1585_v31 = vadd.f32 %v1569_v21, %v5268_v48  ;;  %v6026_v55 = vmov %v6025_v9  ;;  %v6029_v40 = vrot.slane %v5244_v25, 1 }
 0x4c9   :  { %v1617_v33 = vsel %vm393_vm3, %v6027_v18, %v6026_v55  ;;  %v1659_v23 = vmul.f32 %v5154_v29, %v1613_v4  ;;  %v1852_v45 = vadd.f32 %v1836_v51, %v1764_v12  ;;  %v6030_v35 = vrot.slane %v5147_v50, 1  ;;  %2265 = vmatpush1.bf16.msra.mxu1 %v3841_v44  ;;  %v3844_v55 = vld [vmem:[#allocation5 + $0x1b0] ss:$8 sps:$4 sm:$0xff]  }
 0x4ca   :  { %v1657_v34 = vmul.f32 %v5154_v29, %v1617_v33  ;;  %v1701_v48 = vsel %vm442_vm4, %v6029_v40, %v6028_v52  ;;  %v6031_v62 = vmov %v6028_v52  ;;  %v1785_v60 = vrot.slane %v5249_v32, 2  ;;  %2266 = vmatprep.subr.bf16.mxu1 %v3846_v8 }
 0x4cb   :  { %v1713_v61 = vsel %vm442_vm4, %v6031_v62, %v6030_v35  ;;  %v1745_v46 = vmul.f32 %v5172_v47, %v1701_v48  ;;  %v6032_v43 = vrot.slane %v5338_v20, 6  ;;  %v6033_v49 = vrot.slane %v5328_v22, 6 }
 0x4cc   :  { %v1864_v27 = vpack.c.bf16 %v1852_v45, %v1850_v17  ;;  %v1673_v13 = vadd.f32 %v1657_v34, %v1585_v31  ;;  %v1675_v6 = vadd.f32 %v1659_v23, %v1587_v54  ;;  %v1723_v7 = vsel %vm454_vm6, %v1713_v61, 0.0  ;;  %v3849_v61 = vld [vmem:[#allocation5 + $0x1c4] ss:$8 sps:$4 sm:$0xff]  }
 0x4cd   :  { %v1536_v63 = vsel %vm344_vm2, %v6033_v49, %v6032_v43  ;;  %v1747_v39 = vmul.f32 %v5172_v47, %v1723_v7  ;;  %v6034_v21 = vrot.slane %v5244_v25, 2  ;;  %v6035_v12 = vrot.slane %v5147_v50, 2  ;;  %2267 = vmatpush1.bf16.msra.mxu1 %v3844_v55 }
 0x4ce   :  { %v6036_v42 = vmov %v6033_v49  ;;  %v6037_v59 = vrot.slane %v5397_v53, 6  ;;  %2132 = vmatprep.mubr.bf16.mxu1 %v1864_v27  ;;  %v1761_v9 = vadd.f32 %v1745_v46, %v1673_v13  ;;  %v1576_v33 = vmul.f32 %v5160_v37, %v1536_v63  ;;  %2268 = vmatprep.subr.bf16.mxu1 %v3849_v61 }
 0x4cf   :  { %v1789_v32 = vsel %vm491_vm5, %v6034_v21, %v1785_v60  ;;  %v1801_v51 = vsel %vm491_vm5, %v1785_v60, %v6035_v12  ;;  %v1763_v17 = vadd.f32 %v1747_v39, %v1675_v6  ;;  %v6038_v45 = vrot.slane %v5338_v20, 7 }
 0x4d0   :  { %v1540_v36 = vsel %vm344_vm2, %v6037_v59, %v6036_v42  ;;  %v1811_v25 = vsel %vm503_vm9, %v1801_v51, 0.0  ;;  %v1833_v4 = vmul.f32 %v5175_v2, %v1789_v32  ;;  %v6039_v54 = vrot.slane %v5328_v22, 7  ;;  %v3847_v32 = vld [vmem:[#allocation5 + $0x1c0] ss:$8 sps:$4 sm:$0xff]  }
 0x4d1   :  { %v1550_v50 = vsel %vm353_vm7, %v1540_v36, 0.0  ;;  %v1835_v31 = vmul.f32 %v5175_v2, %v1811_v25  ;;  %v6041_v40 = vrot.slane %v5397_v53, 7  ;;  %v6042_v44 = vrot.slane %v5392_v15, 1  ;;  %v3852_v25 = vld [vmem:[#allocation5 + $0x1d4] ss:$8 sps:$4 sm:$0xff]   ;;  %2269 = vmatpush1.bf16.msra.mxu1 %v3847_v32 }
 0x4d2   :  { %v1574_v18 = vmul.f32 %v5160_v37, %v1550_v50  ;;  %v1849_v23 = vadd.f32 %v1833_v4, %v1761_v9  ;;  %v1624_v34 = vsel %vm393_vm3, %v6039_v54, %v6038_v45  ;;  %v6040_v52 = vmov %v6039_v54  ;;  %2270 = vmatprep.subr.bf16.mxu1 %v3852_v25 }
 0x4d3   :  { %v1628_v48 = vsel %vm393_vm3, %v6041_v40, %v6040_v52  ;;  %v6043_v35 = vrot.slane %v5338_v20, 1  ;;  %v1851_v46 = vadd.f32 %v1835_v31, %v1763_v17  ;;  %v1592_v43 = vadd.f32 %v1576_v33, %v5371_v11 }
 0x4d4   :  { %v1590_v60 = vadd.f32 %v1574_v18, %v5357_v30  ;;  %v1638_v49 = vsel %vm402_vm8, %v1628_v48, 0.0  ;;  %v1664_v27 = vmul.f32 %v5163_v26, %v1624_v34  ;;  %v6045_v6 = vrot.slane %v5328_v22, 1 }
 0x4d5   :  { %v1708_v62 = vsel %vm442_vm4, %v6043_v35, %v6042_v44  ;;  %v1662_v63 = vmul.f32 %v5163_v26, %v1638_v49  ;;  %v6044_v13 = vmov %v6043_v35  ;;  %v1863_v39 = vpack.c.bf16 %v1851_v46, %v1849_v23  ;;  %v3850_v46 = vld [vmem:[#allocation5 + $0x1d0] ss:$8 sps:$4 sm:$0xff]  }
 0x4d6   :  { %v1712_v7 = vsel %vm442_vm4, %v6045_v6, %v6044_v13  ;;  %v1752_v8 = vmul.f32 %v5166_v3, %v1708_v62  ;;  %v1776_v30 = vrot.slane %v5328_v22, 2  ;;  %v1780_v21 = vrot.slane %v5338_v20, 2  ;;  %2271 = vmatpush1.bf16.msra.mxu1 %v3850_v46 }
 0x4d7   :  { %v1750_v11 = vmul.f32 %v5166_v3, %v1712_v7  ;;  %v1678_v12 = vadd.f32 %v1662_v63, %v1590_v60  ;;  %v1680_v51 = vadd.f32 %v1664_v27, %v1592_v43  ;;  %v1784_v42 = vrot.slane %v5392_v15, 2  ;;  %2133 = vmatmul.mubr.bf16.gmra.mrb[28].mxu1 %v1863_v39  ;;  %v3855_v27 = vld [vmem:[#allocation5 + $0x1e4] ss:$8 sps:$4 sm:$0xff]  }
 0x4d8   :  { %v6046_v59 = vrot.slane %v5336_v19, 6  ;;  %v6047_v36 = vrot.slane %v5326_v28, 6  ;;  %v1800_v4 = vsel %vm491_vm5, %v1776_v30, %v1780_v21  ;;  %v6049_v17 = vrot.slane %v5394_v38, 6  ;;  %2272 = vmatprep.subr.bf16.mxu1 %v3855_v27 }
 0x4d9   :  { %v6050_v18 = vrot.slane %v5336_v19, 7  ;;  %v6051_v33 = vrot.slane %v5326_v28, 7  ;;  %v1766_v45 = vadd.f32 %v1750_v11, %v1678_v12  ;;  %v1768_v54 = vadd.f32 %v1752_v8, %v1680_v51 }
 0x4da   :  { %v1535_v9 = vsel %vm344_vm2, %v6047_v36, %v6046_v59  ;;  %v6048_v50 = vmov %v6047_v36  ;;  %v1796_v34 = vsel %vm491_vm5, %v1780_v21, %v1784_v42  ;;  %v1838_v52 = vmul.f32 %v5169_v1, %v1800_v4 }
 0x4db   :  { %v1539_v31 = vsel %vm344_vm2, %v6049_v17, %v6048_v50  ;;  %v1575_v55 = vmul.f32 %v5151_v24, %v1535_v9  ;;  %v1623_v23 = vsel %vm393_vm3, %v6051_v33, %v6050_v18  ;;  %v1840_v40 = vmul.f32 %v5169_v1, %v1796_v34  ;;  %v3853_v50 = vld [vmem:[#allocation5 + $0x1e0] ss:$8 sps:$4 sm:$0xff]  }
 0x4dc   :  { %v1549_v48 = vsel %vm353_vm7, %v1539_v31, 0.0  ;;  %v6052_v35 = vmov %v6051_v33  ;;  %v6053_v62 = vrot.slane %v5394_v38, 7  ;;  %v1854_v60 = vadd.f32 %v1838_v52, %v1766_v45  ;;  %2273 = vmatpush1.bf16.msra.mxu1 %v3853_v50 }
 0x4dd   :  { %v1591_v44 = vadd.f32 %v1575_v55, %v5364_v56  ;;  %v1573_v43 = vmul.f32 %v5151_v24, %v1549_v48  ;;  %v1663_v63 = vmul.f32 %v5154_v29, %v1623_v23  ;;  %v1856_v56 = vadd.f32 %v1840_v40, %v1768_v54  ;;  %v3858_v54 = vld [vmem:[#allocation5 + $0x1f4] ss:$8 sps:$4 sm:$0xff]  }
 0x4de   :  { %v1627_v61 = vsel %vm393_vm3, %v6053_v62, %v6052_v35  ;;  %v6054_v6 = vrot.slane %v5390_v16, 1  ;;  %v6055_v7 = vrot.slane %v5336_v19, 1  ;;  %v6057_v11 = vrot.slane %v5326_v28, 1  ;;  %2274 = vmatprep.subr.bf16.mxu1 %v3858_v54 }
 0x4df   :  { %v1637_v49 = vsel %vm402_vm8, %v1627_v61, 0.0  ;;  %v1589_v32 = vadd.f32 %v1573_v43, %v5350_v57  ;;  %v1679_v12 = vadd.f32 %v1663_v63, %v1591_v44  ;;  %v1866_v36 = vpack.c.bf16 %v1856_v56, %v1854_v60 }
 0x4e0   :  { %v1661_v13 = vmul.f32 %v5154_v29, %v1637_v49  ;;  %v1707_v8 = vsel %vm442_vm4, %v6055_v7, %v6054_v6  ;;  %v6056_v39 = vmov %v6055_v7  ;;  %v1775_v9 = vrot.slane %v5326_v28, 2 }
 0x4e1   :  { %v1711_v21 = vsel %vm442_vm4, %v6057_v11, %v6056_v39  ;;  %v1751_v59 = vmul.f32 %v5172_v47, %v1707_v8  ;;  %v1779_v25 = vrot.slane %v5336_v19, 2  ;;  %v1783_v4 = vrot.slane %v5390_v16, 2  ;;  %2142 = vmatprep.mubr.bf16.mxu1 %v1866_v36 }
 0x4e2   :  { %v1749_v51 = vmul.f32 %v5172_v47, %v1711_v21  ;;  %v1677_v17 = vadd.f32 %v1661_v13, %v1589_v32  ;;  %v6058_v55 = vrot.slane %v5397_v53, 6  ;;  %v6059_v57 = vrot.slane %v5392_v15, 6  ;;  %v3856_v13 = vld [vmem:[#allocation5 + $0x1f0] ss:$8 sps:$4 sm:$0xff]  }
 0x4e3   :  { %v1767_v31 = vadd.f32 %v1751_v59, %v1679_v12  ;;  %v6061_v23 = vrot.slane %v5338_v20, 6  ;;  %v1795_v34 = vsel %vm491_vm5, %v1779_v25, %v1783_v4  ;;  %v1799_v52 = vsel %vm491_vm5, %v1775_v9, %v1779_v25  ;;  %2275 = vmatpush1.bf16.msra.mxu1 %v3856_v13 }
 0x4e4   :  { %v1528_v18 = vsel %vm344_vm2, %v6059_v57, %v6058_v55  ;;  %v6060_v33 = vmov %v6059_v57  ;;  %v1765_v44 = vadd.f32 %v1749_v51, %v1677_v17  ;;  %v1837_v35 = vmul.f32 %v5175_v2, %v1799_v52 }
 0x4e5   :  { %v1532_v45 = vsel %vm344_vm2, %v6061_v23, %v6060_v33  ;;  %v1580_v48 = vmul.f32 %v5160_v37, %v1528_v18  ;;  %v1839_v62 = vmul.f32 %v5175_v2, %v1795_v34  ;;  %v6062_v61 = vrot.slane %v5397_v53, 7 }
 0x4e6   :  { %v1578_v40 = vmul.f32 %v5160_v37, %v1532_v45  ;;  %v6063_v46 = vrot.slane %v5392_v15, 7  ;;  %v6065_v37 = vrot.slane %v5338_v20, 7  ;;  %v1853_v6 = vadd.f32 %v1837_v35, %v1765_v44 }
 0x4e7   :  { %v1596_v49 = vadd.f32 %v1580_v48, %v5426_v0  ;;  %v1855_v7 = vadd.f32 %v1839_v62, %v1767_v31  ;;  %v6066_v39 = vrot.slane %v5397_v53, 1  ;;  %v6068_v11 = vrot.slane %v5328_v22, 1 }
 0x4e8   :  { %v1616_v60 = vsel %vm393_vm3, %v6063_v46, %v6062_v61  ;;  %v1594_v43 = vadd.f32 %v1578_v40, %v5412_v41  ;;  %v6064_v63 = vmov %v6063_v46  ;;  %v6067_v41 = vrot.slane %v5392_v15, 1 }
 0x4e9   :  { %v1620_v27 = vsel %vm393_vm3, %v6065_v37, %v6064_v63  ;;  %v1668_v56 = vmul.f32 %v5163_v26, %v1616_v60  ;;  %v6069_v21 = vmov %v6066_v39  ;;  %v1865_v51 = vpack.c.bf16 %v1855_v7, %v1853_v6 }
 0x4ea   :  { %v1666_v8 = vmul.f32 %v5163_v26, %v1620_v27  ;;  %v1704_v0 = vsel %vm442_vm4, %v6067_v41, %v6066_v39  ;;  %v1716_v32 = vsel %vm442_vm4, %v6069_v21, %v6068_v11  ;;  %v1788_v26 = vrot.slane %v5397_v53, 2  ;;  %v6084_v21 = vld [vmem:[#allocation16_spill] sm:$0xff] }
 0x4eb   :  { %v1684_v20 = vadd.f32 %v1668_v56, %v1596_v49  ;;  %v1754_v12 = vmul.f32 %v5166_v3, %v1704_v0  ;;  %v1732_v36 = vsel %vm454_vm6, %v1716_v32, 0.0  ;;  %v6070_v25 = vrot.slane %v5394_v38, 6  ;;  %2143 = vmatmul.mubr.bf16.gmra.mrb[32].mxu1 %v1865_v51  ;;  %v6092_v51 = vld [vmem:[#allocation25_spill] sm:$0xff] }
 0x4ec   :  { %v1682_v59 = vadd.f32 %v1666_v8, %v1594_v43  ;;  %v6071_v50 = vrot.slane %v5390_v16, 6  ;;  %v1756_v31 = vmul.f32 %v5166_v3, %v1732_v36  ;;  %v1792_v55 = vsel %vm491_vm5, %v1784_v42, %v1788_v26 }
 0x4ed   :  { %v1804_v53 = vsel %vm491_vm5, %v1788_v26, %v1776_v30  ;;  %v6073_v18 = vrot.slane %v5336_v19, 6  ;;  %v1842_v42 = vmul.f32 %v5169_v1, %v1792_v55  ;;  %v6074_v54 = vrot.slane %v5394_v38, 7  ;;  %v3876_v55 = vld [vmem:[#allocation7 + $0xa4] ss:$16 sps:$4 sm:$0xff]  }
 0x4ee   :  { %v1527_v17 = vsel %vm344_vm2, %v6071_v50, %v6070_v25  ;;  %v6072_v57 = vmov %v6071_v50  ;;  %v1770_v3 = vadd.f32 %v1754_v12, %v1682_v59  ;;  %v1820_v15 = vsel %vm503_vm9, %v1804_v53, 0.0  ;;  %v6089_v12 = vld [vmem:[#allocation26_spill] sm:$0xff]  ;;  %v6093_v59 = vld [vmem:[#allocation23_spill] sm:$0xff] }
 0x4ef   :  { %v1531_v33 = vsel %vm344_vm2, %v6073_v18, %v6072_v57  ;;  %v1772_v23 = vadd.f32 %v1756_v31, %v1684_v20  ;;  %v1844_v30 = vmul.f32 %v5169_v1, %v1820_v15  ;;  %v1579_v45 = vmul.f32 %v5151_v24, %v1527_v17  ;;  %v3868_v25 = vld [vmem:[#allocation7 + $0x60] ss:$16 sps:$4 sm:$0xff]   ;;  %v3870_v50 = vld [vmem:[#allocation7 + $0x64] ss:$16 sps:$4 sm:$0xff]  }
 0x4f0   :  { %v1577_v22 = vmul.f32 %v5151_v24, %v1531_v33  ;;  %v6075_v34 = vrot.slane %v5390_v16, 7  ;;  %v1858_v40 = vadd.f32 %v1842_v42, %v1770_v3  ;;  %v6077_v35 = vrot.slane %v5336_v19, 7  ;;  %v3873_v17 = vld [vmem:[#allocation7 + $0x84] ss:$16 sps:$4 sm:$0xff]   ;;  %2838 = vmatprep.subr.bf16.mxu0 %v3870_v50  ;;  %v3871_v31 = vld [vmem:[#allocation7 + $0x80] ss:$16 sps:$4 sm:$0xff]  }
 0x4f1   :  { %v1860_v24 = vadd.f32 %v1844_v30, %v1772_v23  ;;  %v1595_v61 = vadd.f32 %v1579_v45, %v5419_v58  ;;  %v6078_v60 = vrot.slane %v5394_v38, 1  ;;  %v6079_v43 = vrot.slane %v5390_v16, 1  ;;  %2839 = vmatpush1.bf16.msra.mxu0 %v3868_v25  ;;  %v3874_v53 = vld [vmem:[#allocation7 + $0xa0] ss:$16 sps:$4 sm:$0xff]   ;;  %v3879_v57 = vld [vmem:[#allocation7 + $0xc4] ss:$16 sps:$4 sm:$0xff]  }
 0x4f2   :  { %v1615_v52 = vsel %vm393_vm3, %v6075_v34, %v6074_v54  ;;  %v1593_v48 = vadd.f32 %v1577_v22, %v5405_v5  ;;  %v6076_v44 = vmov %v6075_v34  ;;  %v6080_v49 = vrot.slane %v5326_v28, 1  ;;  %v6083_v28 = vld [vmem:[#allocation22_spill] sm:$0xff]  ;;  %2840 = vmatprep.subr.bf16.mxu0 %v3873_v17  ;;  %v3882_v3 = vld [vmem:[#allocation7 + $0xe4] ss:$16 sps:$4 sm:$0xff]  }
 0x4f3   :  { %v1619_v62 = vsel %vm393_vm3, %v6077_v35, %v6076_v44  ;;  %v1667_v1 = vmul.f32 %v5154_v29, %v1615_v52  ;;  %v1703_v5 = vsel %vm442_vm4, %v6079_v43, %v6078_v60  ;;  %v6081_v19 = vmov %v6078_v60  ;;  %v3877_v18 = vld [vmem:[#allocation7 + $0xc0] ss:$16 sps:$4 sm:$0xff]   ;;  %v3885_v15 = vld [vmem:[#allocation7 + $0x104] ss:$16 sps:$4 sm:$0xff]  }
 0x4f4   :  { %v1665_v46 = vmul.f32 %v5154_v29, %v1619_v62  ;;  %v1715_v63 = vsel %vm442_vm4, %v6081_v19, %v6080_v49  ;;  %v1753_v37 = vmul.f32 %v5172_v47, %v1703_v5  ;;  %v1787_v58 = vrot.slane %v5394_v38, 2  ;;  %v3880_v33 = vld [vmem:[#allocation7 + $0xe0] ss:$16 sps:$4 sm:$0xff]   ;;  %v3888_v22 = vld [vmem:[#allocation7 + $0x124] ss:$16 sps:$4 sm:$0xff]   ;;  %v3957_v49 = vld [vmem:[#allocation2 + $0xc0] sm:$0xff]  }
 0x4f5   :  { %v1868_v27 = vpack.c.bf16 %v1860_v24, %v1858_v40  ;;  %v1683_v56 = vadd.f32 %v1667_v1, %v1595_v61  ;;  %v1731_v13 = vsel %vm454_vm6, %v1715_v63, 0.0  ;;  %v6085_v10 = vpack.c.bf16 %v6083_v28, %v6084_v21  ;;  %2841 = vmatpush1.bf16.msra.mxu0 %v3871_v31  ;;  %v3883_v42 = vld [vmem:[#allocation7 + $0x100] ss:$16 sps:$4 sm:$0xff]   ;;  %v3891_v30 = vld [vmem:[#allocation7 + $0x144] ss:$16 sps:$4 sm:$0xff]  }
 0x4f6   :  { %v1681_v29 = vadd.f32 %v1665_v46, %v1593_v48  ;;  %v1755_v6 = vmul.f32 %v5172_v47, %v1731_v13  ;;  %v1791_v7 = vsel %vm491_vm5, %v1783_v4, %v1787_v58  ;;  %v1803_v8 = vsel %vm491_vm5, %v1787_v58, %v1775_v9  ;;  %v6086_v9 = vld [vmem:[#allocation15_spill] sm:$0xff]  ;;  %2842 = vmatprep.subr.bf16.mxu0 %v3876_v55  ;;  %v3886_v23 = vld [vmem:[#allocation7 + $0x120] ss:$16 sps:$4 sm:$0xff]   ;;  %v3909_v61 = vld [vmem:[#allocation7 + $0xc] ss:$16 sps:$4 sm:$0xff]  }
 0x4f7   :  { %2152 = vmatprep.mubr.bf16.mxu1 %v1868_v27  ;;  %v1819_v39 = vsel %vm503_vm9, %v1803_v8, 0.0  ;;  %v1841_v41 = vmul.f32 %v5175_v2, %v1791_v7  ;;  %v6082_v4 = vmov 0   ;;  %v6088_v32 = vpack.c.bf16 %v6086_v9, %v6087_v14  ;;  %v3889_v45 = vld [vmem:[#allocation7 + $0x140] ss:$16 sps:$4 sm:$0xff]   ;;  %v3894_v34 = vld [vmem:[#allocation7 + $0x164] ss:$16 sps:$4 sm:$0xff]  }
 0x4f8   :  { %v1769_v38 = vadd.f32 %v1753_v37, %v1681_v29  ;;  %v1771_v0 = vadd.f32 %v1755_v6, %v1683_v56  ;;  %v1843_v47 = vmul.f32 %v5175_v2, %v1819_v39  ;;  %v6090_v2 = vld [vmem:[#allocation24_spill] sm:$0xff]  ;;  %v6094_v36 = vpack.c.bf16 %v6092_v51, %v6093_v59  ;;  %v3897_v52 = vld [vmem:[#allocation7 + $0x184] ss:$16 sps:$4 sm:$0xff]   ;;  %v3961_v39 = vld [vmem:[#allocation2 + $0xd0] sm:$0xff]  }
 0x4f9   :  { %v6091_v26 = vpack.c.bf16 %v6089_v12, %v6090_v2  ;;  %2843 = vmatpush1.bf16.msra.mxu0 %v3874_v53  ;;  %v3892_v54 = vld [vmem:[#allocation7 + $0x160] ss:$16 sps:$4 sm:$0xff]   ;;  %v3900_v48 = vld [vmem:[#allocation7 + $0x1a4] ss:$16 sps:$4 sm:$0xff]   ;;  %v3958_v56 = vld [vmem:[#allocation2 + $0x80] sm:$0xff]  }
 0x4fa   :  { %v1857_v20 = vadd.f32 %v1841_v41, %v1769_v38  ;;  %v1859_v16 = vadd.f32 %v1843_v47, %v1771_v0  ;;  %2844 = vmatprep.subr.bf16.mxu0 %v3879_v57  ;;  %v3895_v40 = vld [vmem:[#allocation7 + $0x180] ss:$16 sps:$4 sm:$0xff]   ;;  %v3903_v35 = vld [vmem:[#allocation7 + $0x1c4] ss:$16 sps:$4 sm:$0xff]   ;;  %v3965_v59 = vld [vmem:[#allocation2 + $0xe0] sm:$0xff]  }
 0x4fb   :  { %v3898_v44 = vld [vmem:[#allocation7 + $0x1a0] ss:$16 sps:$4 sm:$0xff]   ;;  %v3906_v1 = vld [vmem:[#allocation7 + $0x1e4] ss:$16 sps:$4 sm:$0xff]   ;;  %v3966_v57 = vld [vmem:[#allocation2 + $0xa0] sm:$0xff]  }
 0x4fc   :  { %v1867_v11 = vpack.c.bf16 %v1859_v16, %v1857_v20  ;;  %v3901_v62 = vld [vmem:[#allocation7 + $0x1c0] ss:$16 sps:$4 sm:$0xff]   ;;  %v3359_v46 = vld [vmem:[%s5908_s4 + $0x5] ss:$8 sm:$0x3]  ;;  %v6095_v19 = vld [vmem:[#allocation19_spill] sm:$0xff] }
 0x4fd   :  { %2845 = vmatpush1.bf16.msra.mxu0 %v3877_v18  ;;  %v3904_v24 = vld [vmem:[#allocation7 + $0x1e0] ss:$16 sps:$4 sm:$0xff]   ;;  %v3392_v60 = vld [vmem:[%s5908_s4 + $0x6] ss:$8 sm:$0x3]  ;;  %v1923_v63 = vrot.slane %v3359_v46, %v6095_v19 }
 0x4fe   :  { %2153 = vmatmul.mubr.bf16.gmra.mrb[36].mxu1 %v1867_v11  ;;  %2846 = vmatprep.subr.bf16.mxu0 %v3882_v3  ;;  %v3955_v43 = vld [vmem:[#allocation2 + $0xb8] sm:$0xff]   ;;  %v2173_v37 = vrot.slane %v3392_v60, %v6095_v19  ;;  %v6096_v58 = vld [vmem:[#allocation20_spill] sm:$0xff] }
 0x4ff   :  { %2292 = vmatprep.mubr.bf16.mxu1 %v6082_v4  ;;  %v3956_v5 = vld [vmem:[#allocation2 + $0x78] sm:$0xff]   ;;  %v1927_v27 = vrot.slane %v3359_v46, %v6096_v58  ;;  %v2177_v29 = vrot.slane %v3392_v60, %v6096_v58  ;;  %3541 = vmatprep.subr.bf16.mxu1 %v3955_v43  ;;  %v3959_v13 = vld [vmem:[#allocation2 + $0xc8] sm:$0xff]  }
 0x500   :  { %v5846_v6 = vadd.f32 %v2173_v37, %v1923_v63  ;;  %v3960_v8 = vld [vmem:[#allocation2 + $0x88] sm:$0xff]   ;;  %v3963_v21 = vld [vmem:[#allocation2 + $0xd8] sm:$0xff]  }
 0x501   :  { %2847 = vmatpush1.bf16.msra.mxu0 %v3880_v33  ;;  %v5848_v7 = vadd.f32 %v2177_v29, %v1927_v27  ;;  %v3964_v2 = vld [vmem:[#allocation2 + $0x98] sm:$0xff]  }
 0x502   :  { %2848 = vmatprep.subr.bf16.mxu0 %v3885_v15 }
 0x505   :  { %2849 = vmatpush1.bf16.msra.mxu0 %v3883_v42 }
 0x506   :  { %2293 = vmatmul.mubr.bf16.vlgmr.msra.gmra.mrb[24].mxu1 %v6085_v10  ;;  %2850 = vmatprep.subr.bf16.mxu0 %v3888_v22 }
 0x507   :  { %2302 = vmatprep.mubr.bf16.mxu1 %v6082_v4  ;;  %3542 = vmatpush3.bf16.msra.mxu1 %v3956_v5 }
 0x508   :  { %3543 = vmatprep.subr.bf16.mxu1 %v3957_v49 }
 0x509   :  { %2851 = vmatpush1.bf16.msra.mxu0 %v3886_v23 }
 0x50a   :  { %2852 = vmatprep.subr.bf16.mxu0 %v3891_v30 }
 0x50b   :  { %3544 = vmatpush3.bf16.msra.mxu1 %v3958_v56 }
 0x50c   :  { %3545 = vmatprep.subr.bf16.mxu1 %v3959_v13 }
 0x50d   :  { %2853 = vmatpush1.bf16.msra.mxu0 %v3889_v45 }
 0x50e   :  { %2303 = vmatmul.mubr.bf16.gmra.mrb[28].mxu1 %v6088_v32  ;;  %2854 = vmatprep.subr.bf16.mxu0 %v3894_v34 }
 0x50f   :  { %2312 = vmatprep.mubr.bf16.mxu1 %v6082_v4  ;;  %3546 = vmatpush3.bf16.msra.mxu1 %v3960_v8 }
 0x510   :  { %3547 = vmatprep.subr.bf16.mxu1 %v3961_v39 }
 0x511   :  { %2855 = vmatpush1.bf16.msra.mxu0 %v3892_v54 }
 0x512   :  { %2856 = vmatprep.subr.bf16.mxu0 %v3897_v52 }
 0x515   :  { %2857 = vmatpush1.bf16.msra.mxu0 %v3895_v40 }
 0x516   :  { %2313 = vmatmul.mubr.bf16.gmra.mrb[32].mxu1 %v6091_v26  ;;  %2858 = vmatprep.subr.bf16.mxu0 %v3900_v48 }
 0x517   :  { %2322 = vmatprep.mubr.bf16.mxu1 %v6082_v4  ;;  %v3962_v4 = vld [vmem:[#allocation2 + $0x90] sm:$0xff]  }
 0x518   :  { %3548 = vmatpush3.bf16.msra.mxu1 %v3962_v4 }
 0x519   :  { %2859 = vmatpush1.bf16.msra.mxu0 %v3898_v44  ;;  %3549 = vmatprep.subr.bf16.mxu1 %v3963_v21 }
 0x51a   :  { %2860 = vmatprep.subr.bf16.mxu0 %v3903_v35 }
 0x51c   :  { %3550 = vmatpush3.bf16.msra.mxu1 %v3964_v2 }
 0x51d   :  { %2861 = vmatpush1.bf16.msra.mxu0 %v3901_v62  ;;  %3551 = vmatprep.subr.bf16.mxu1 %v3965_v59 }
 0x51e   :  { %2323 = vmatmul.mubr.bf16.gmra.mrb[36].mxu1 %v6094_v36  ;;  %2862 = vmatprep.subr.bf16.mxu0 %v3906_v1 }
 0x520   :  { %3552 = vmatpush3.bf16.msra.mxu1 %v3966_v57 }
 0x521   :  { %2863 = vmatpush1.bf16.msra.mxu0 %v3904_v24 }
 0x522   :  { %2873 = vmatprep.subr.bf16.mxu0 %v3909_v61 }
 0x5d9   :  { %v2294_v38 = vpop.f32.mrb[24].mxu1 }
 0x5da   :  { %v3672_v41 = vadd.f32 %v5846_v6, %v2294_v38  ;;  %v2296_v0 = vpop.f32.mrb[25].mxu1 }
 0x5db   :  { %v3674_v47 = vadd.f32 %v5848_v7, %v2296_v0  ;;  %v2298_v20 = vpop.f32.mrb[26].mxu1 }
 0x5dc   :  { %v3676_v16 = vadd.f32 %v5846_v6, %v2298_v20  ;;  %v2300_v11 = vpop.f32.mrb[27].mxu1  ;;  %v2349_v10 = vmax.f32 %v3672_v41, 0.0 }
 0x5dd   :  { %v3678_v28 = vadd.f32 %v5848_v7, %v2300_v11  ;;  %v2350_v14 = vmax.f32 %v3674_v47, 0.0 }
 0x5de   :  { %v2351_v9 = vmax.f32 %v3676_v16, 0.0 }
 0x5df   :  { %v2352_v32 = vmax.f32 %v3678_v28, 0.0 }
 0x5e0   :  { %v2365_v12 = vadd.f32 %v2351_v9, %v2349_v10 }
 0x5e1   :  { %v2374_v26 = vadd.f32 %v2352_v32, %v2350_v14  ;;  %v2304_v51 = vpop.f32.mrb[28].mxu1 }
 0x5e2   :  { %v3680_v36 = vadd.f32 %v5846_v6, %v2304_v51  ;;  %v2306_v25 = vpop.f32.mrb[29].mxu1 }
 0x5e3   :  { %v3682_v50 = vadd.f32 %v5848_v7, %v2306_v25  ;;  %v2308_v17 = vpop.f32.mrb[30].mxu1 }
 0x5e4   :  { %v2353_v31 = vmax.f32 %v3680_v36, 0.0  ;;  %v3684_v55 = vadd.f32 %v5846_v6, %v2308_v17  ;;  %v2310_v53 = vpop.f32.mrb[31].mxu1 }
 0x5e5   :  { %v2354_v18 = vmax.f32 %v3682_v50, 0.0  ;;  %v3686_v33 = vadd.f32 %v5848_v7, %v2310_v53 }
 0x5e6   :  { %v2366_v3 = vadd.f32 %v2365_v12, %v2353_v31  ;;  %v2355_v15 = vmax.f32 %v3684_v55, 0.0 }
 0x5e7   :  { %v2375_v42 = vadd.f32 %v2374_v26, %v2354_v18  ;;  %v2356_v22 = vmax.f32 %v3686_v33, 0.0 }
 0x5e8   :  { %v2367_v23 = vadd.f32 %v2366_v3, %v2355_v15 }
 0x5e9   :  { %v2376_v30 = vadd.f32 %v2375_v42, %v2356_v22  ;;  %v2314_v45 = vpop.f32.mrb[32].mxu1 }
 0x5ea   :  { %v2368_v54 = vrot.slane %v2367_v23, 4  ;;  %v3688_v34 = vadd.f32 %v5846_v6, %v2314_v45  ;;  %v2316_v52 = vpop.f32.mrb[33].mxu1 }
 0x5eb   :  { %v2377_v40 = vrot.slane %v2376_v30, 4  ;;  %v3690_v48 = vadd.f32 %v5848_v7, %v2316_v52  ;;  %v2318_v44 = vpop.f32.mrb[34].mxu1 }
 0x5ec   :  { %v3692_v35 = vadd.f32 %v5846_v6, %v2318_v44  ;;  %v2320_v62 = vpop.f32.mrb[35].mxu1  ;;  %v2369_v24 = vadd.f32 %v2368_v54, %v2367_v23  ;;  %v2357_v61 = vmax.f32 %v3688_v34, 0.0 }
 0x5ed   :  { %v3694_v1 = vadd.f32 %v5848_v7, %v2320_v62  ;;  %v2378_v60 = vadd.f32 %v2377_v40, %v2376_v30  ;;  %v2358_v43 = vmax.f32 %v3690_v48, 0.0 }
 0x5ee   :  { %v2359_v46 = vmax.f32 %v3692_v35, 0.0  ;;  %v2370_v27 = vrot.slane %v2369_v24, 2  ;;  %v3907_v35 = vld [vmem:[#allocation7 + $0x8] ss:$16 sps:$4 sm:$0xff]  }
 0x5ef   :  { %v2360_v5 = vmax.f32 %v3694_v1, 0.0  ;;  %v2379_v13 = vrot.slane %v2378_v60, 2  ;;  %v3912_v1 = vld [vmem:[#allocation7 + $0x2c] ss:$16 sps:$4 sm:$0xff]  }
 0x5f0   :  { %v2383_v49 = vadd.f32 %v2359_v46, %v2357_v61  ;;  %v2371_v16 = vadd.f32 %v2370_v27, %v2369_v24  ;;  %v3910_v24 = vld [vmem:[#allocation7 + $0x28] ss:$16 sps:$4 sm:$0xff]   ;;  %v3915_v61 = vld [vmem:[#allocation7 + $0x4c] ss:$16 sps:$4 sm:$0xff]  }
 0x5f1   :  { %v2392_v63 = vadd.f32 %v2360_v5, %v2358_v43  ;;  %v2324_v37 = vpop.f32.mrb[36].mxu1  ;;  %v2380_v28 = vadd.f32 %v2379_v13, %v2378_v60  ;;  %v3913_v46 = vld [vmem:[#allocation7 + $0x48] ss:$16 sps:$4 sm:$0xff]   ;;  %v3918_v60 = vld [vmem:[#allocation7 + $0x6c] ss:$16 sps:$4 sm:$0xff]  }
 0x5f2   :  { %v3696_v29 = vadd.f32 %v5846_v6, %v2324_v37  ;;  %v2326_v56 = vpop.f32.mrb[37].mxu1  ;;  %v2372_v32 = vrot.slane %v2371_v16, 1  ;;  %v3916_v43 = vld [vmem:[#allocation7 + $0x68] ss:$16 sps:$4 sm:$0xff]   ;;  %v3921_v5 = vld [vmem:[#allocation7 + $0x8c] ss:$16 sps:$4 sm:$0xff]  }
 0x5f3   :  { %v3698_v8 = vadd.f32 %v5848_v7, %v2326_v56  ;;  %v2328_v38 = vpop.f32.mrb[38].mxu1  ;;  %v2381_v2 = vrot.slane %v2380_v28, 1  ;;  %v3922_v37 = vld [vmem:[#allocation7 + $0xa8] ss:$16 sps:$4 sm:$0xff]   ;;  %v3927_v27 = vld [vmem:[#allocation7 + $0xcc] ss:$16 sps:$4 sm:$0xff]  }
 0x5f4   :  { %v2361_v39 = vmax.f32 %v3696_v29, 0.0  ;;  %v3700_v41 = vadd.f32 %v5846_v6, %v2328_v38  ;;  %v2330_v0 = vpop.f32.mrb[39].mxu1  ;;  %v2373_v36 = vadd.f32 %v2372_v32, %v2371_v16  ;;  %v3925_v29 = vld [vmem:[#allocation7 + $0xc8] ss:$16 sps:$4 sm:$0xff]   ;;  %v3930_v56 = vld [vmem:[#allocation7 + $0xec] ss:$16 sps:$4 sm:$0xff]  }
 0x5f5   :  { %v2362_v47 = vmax.f32 %v3698_v8, 0.0  ;;  %v3702_v20 = vadd.f32 %v5848_v7, %v2330_v0  ;;  %v2382_v25 = vadd.f32 %v2381_v2, %v2380_v28  ;;  %v3928_v13 = vld [vmem:[#allocation7 + $0xe8] ss:$16 sps:$4 sm:$0xff]   ;;  %v3933_v8 = vld [vmem:[#allocation7 + $0x10c] ss:$16 sps:$4 sm:$0xff]   ;;  %v3968_v2 = vld [vmem:[#allocation2 + $0xa8] sm:$0xff]  }
 0x5f6   :  { %v2384_v11 = vadd.f32 %v2383_v49, %v2361_v39  ;;  %v2363_v4 = vmax.f32 %v3700_v41, 0.0  ;;  %v2402_v31 = vmul.f32 0.03125, %v2373_v36  ;;  %v3919_v49 = vld [vmem:[#allocation7 + $0x88] ss:$16 sps:$4 sm:$0xff]   ;;  %v3936_v39 = vld [vmem:[#allocation7 + $0x12c] ss:$16 sps:$4 sm:$0xff]  }
 0x5f7   :  { %v2393_v21 = vadd.f32 %v2392_v63, %v2362_v47  ;;  %v2364_v10 = vmax.f32 %v3702_v20, 0.0  ;;  %v2403_v53 = vmul.f32 0.03125, %v2382_v25  ;;  %v3924_v63 = vld [vmem:[#allocation7 + $0xac] ss:$16 sps:$4 sm:$0xff]   ;;  %v3931_v38 = vld [vmem:[#allocation7 + $0x108] ss:$16 sps:$4 sm:$0xff]  }
 0x5f8   :  { %v2385_v9 = vadd.f32 %v2384_v11, %v2363_v4  ;;  %v2406_v3 = vpack.c.bf16 %v2402_v31, %v2402_v31  ;;  %v3934_v41 = vld [vmem:[#allocation7 + $0x128] ss:$16 sps:$4 sm:$0xff]   ;;  %v3939_v0 = vld [vmem:[#allocation7 + $0x14c] ss:$16 sps:$4 sm:$0xff]  }
 0x5f9   :  { %v2394_v14 = vadd.f32 %v2393_v21, %v2364_v10  ;;  %v2407_v22 = vpack.c.bf16 %v2403_v53, %v2403_v53  ;;  %v3937_v47 = vld [vmem:[#allocation7 + $0x148] ss:$16 sps:$4 sm:$0xff]   ;;  %v3942_v20 = vld [vmem:[#allocation7 + $0x16c] ss:$16 sps:$4 sm:$0xff]  }
 0x5fa   :  { %v2386_v12 = vrot.slane %v2385_v9, 4  ;;  %v2501_v45 = vunpack.c.l.b16 %v2406_v3  ;;  %v3940_v16 = vld [vmem:[#allocation7 + $0x168] ss:$16 sps:$4 sm:$0xff]   ;;  %v3945_v11 = vld [vmem:[#allocation7 + $0x18c] ss:$16 sps:$4 sm:$0xff]   ;;  %v3972_v3 = vld [vmem:[#allocation2 + $0xf8] sm:$0xff]  }
 0x5fb   :  { %v2395_v26 = vrot.slane %v2394_v14, 4  ;;  %v2502_v34 = vunpack.c.l.b16 %v2407_v22  ;;  %v3943_v4 = vld [vmem:[#allocation7 + $0x188] ss:$16 sps:$4 sm:$0xff]   ;;  %v3948_v28 = vld [vmem:[#allocation7 + $0x1ac] ss:$16 sps:$4 sm:$0xff]  }
 0x5fc   :  { %v2387_v51 = vadd.f32 %v2386_v12, %v2385_v9  ;;  %v3946_v21 = vld [vmem:[#allocation7 + $0x1a8] ss:$16 sps:$4 sm:$0xff]   ;;  %v3951_v10 = vld [vmem:[#allocation7 + $0x1cc] ss:$16 sps:$4 sm:$0xff]   ;;  %v3967_v12 = vld [vmem:[#allocation2 + $0xe8] sm:$0xff]  }
 0x5fd   :  { %v2396_v59 = vadd.f32 %v2395_v26, %v2394_v14  ;;  %v3949_v9 = vld [vmem:[#allocation7 + $0x1c8] ss:$16 sps:$4 sm:$0xff]   ;;  %v3954_v14 = vld [vmem:[#allocation7 + $0x1ec] ss:$16 sps:$4 sm:$0xff]   ;;  %3553 = vmatprep.subr.bf16.mxu1 %v3967_v12 }
 0x5fe   :  { %v2388_v6 = vrot.slane %v2387_v51, 2  ;;  %v3952_v32 = vld [vmem:[#allocation7 + $0x1e8] ss:$16 sps:$4 sm:$0xff]   ;;  %3554 = vmatpush3.bf16.msra.mxu1 %v3968_v2  ;;  %v3409_v36 = vld [vmem:[%s5908_s4 + $0x7] ss:$8 sm:$0xf] }
 0x5ff   :  { %v2397_v50 = vrot.slane %v2396_v59, 2  ;;  %v3969_v26 = vld [vmem:[#allocation2 + $0xf0] sm:$0xff]   ;;  %v2484_v25 = vrot.slane %v3409_v36, %v6096_v58  ;;  %v3974_v22 = vld [vmem:[#allocation2 + $0x100] sm:$0xff]   ;;  %v3976_v58 = vld [vmem:[#allocation2 + $0x108] sm:$0xff]  }
 0x600   :  { %v2389_v17 = vadd.f32 %v2388_v6, %v2387_v51  ;;  %v3970_v51 = vld [vmem:[#allocation2 + $0xb0] sm:$0xff]   ;;  %3555 = vmatprep.subr.bf16.mxu1 %v3969_v26  ;;  %v2480_v6 = vrot.slane %v3409_v36, %v6095_v19  ;;  %v3975_v19 = vld [vmem:[#allocation2 + $0x148] sm:$0xff]  }
 0x601   :  { %v2398_v7 = vadd.f32 %v2397_v50, %v2396_v59  ;;  %v3971_v59 = vld [vmem:[#allocation2 + $0x138] sm:$0xff]  }
 0x602   :  { %v2390_v55 = vrot.slane %v2389_v17, 1  ;;  %3556 = vmatpush3.bf16.msra.mxu1 %v3970_v51 }
 0x603   :  { %v2399_v57 = vrot.slane %v2398_v7, 1  ;;  %3563 = vmatprep.subr.bf16.mxu1 %v3971_v59 }
 0x604   :  { %v2391_v18 = vadd.f32 %v2390_v55, %v2389_v17 }
 0x605   :  { %v2400_v33 = vadd.f32 %v2399_v57, %v2398_v7 }
 0x606   :  { %v2404_v15 = vmul.f32 0.03125, %v2391_v18 }
 0x607   :  { %v2405_v42 = vmul.f32 0.03125, %v2400_v33 }
 0x608   :  { %v2408_v23 = vpack.c.bf16 %v2404_v15, %v2404_v15 }
 0x609   :  { %v2409_v30 = vpack.c.bf16 %v2405_v42, %v2405_v42  ;;  %v3973_v42 = vld [vmem:[#allocation2 + $0x140] sm:$0xff]  }
 0x60a   :  { %v2503_v54 = vunpack.c.l.b16 %v2408_v23  ;;  %v3977_v23 = vld [vmem:[#allocation2 + $0x150] sm:$0xff]  }
 0x60b   :  { %v2504_v52 = vunpack.c.l.b16 %v2409_v30  ;;  %v3978_v30 = vld [vmem:[#allocation2 + $0x110] sm:$0xff]  }
 0x60c   :  { %v2506_v40 = vsel %vm2505_vm11, %v2503_v54, %v2501_v45  ;;  %v3979_v45 = vld [vmem:[#allocation2 + $0x158] sm:$0xff]  }
 0x60d   :  { %v2507_v48 = vsel %vm2505_vm11, %v2504_v52, %v2502_v34  ;;  %v5866_v62 = vpack.c.b16 %v2506_v40, %v2506_v40  ;;  %v3980_v54 = vld [vmem:[#allocation2 + $0x118] sm:$0xff]   ;;  %v3981_v34 = vld [vmem:[#allocation2 + $0x160] sm:$0xff]   ;;  %v3983_v40 = vld [vmem:[#allocation2 + $0x168] sm:$0xff]  }
 0x60e   :  { %v2509_v44 = vpack.c.b16 %v2507_v48, %v2507_v48  ;;  %v3982_v52 = vld [vmem:[#allocation2 + $0x120] sm:$0xff]   ;;  %v3984_v48 = vld [vmem:[#allocation2 + $0x128] sm:$0xff]  }
 0x610   :  { %2864 = vmatprep.mubr.bf16.mxu0 %v2509_v44 }
 0x611   :  { %2865 = vmatmul.mubr.bf16.vlgmr.msra.gmra.mrb[24].mxu0 %v5866_v62 }
 0x612   :  { %2874 = vmatpush1.bf16.msra.mxu0 %v3907_v35  ;;  %2905 = vmatprep.mubr.bf16.mxu0 %v2509_v44  ;;  %v3985_v44 = vld [vmem:[#allocation2 + $0x170] sm:$0xff]  }
 0x613   :  { %2875 = vmatprep.subr.bf16.mxu0 %v3912_v1  ;;  %v3986_v35 = vld [vmem:[#allocation2 + $0x130] sm:$0xff]  }
 0x616   :  { %2876 = vmatpush1.bf16.msra.mxu0 %v3910_v24  ;;  %v6098_v24 = vld [vmem:[#allocation21_spill] sm:$0xff] }
 0x617   :  { %2877 = vmatprep.subr.bf16.mxu0 %v3915_v61  ;;  %v2492_v61 = vrot.slane %v3409_v36, %v6098_v24 }
 0x61a   :  { %2878 = vmatpush1.bf16.msra.mxu0 %v3913_v46 }
 0x61b   :  { %2879 = vmatprep.subr.bf16.mxu0 %v3918_v60 }
 0x61e   :  { %2880 = vmatpush1.bf16.msra.mxu0 %v3916_v43 }
 0x61f   :  { %2881 = vmatprep.subr.bf16.mxu0 %v3921_v5 }
 0x622   :  { %2882 = vmatpush1.bf16.msra.mxu0 %v3919_v49 }
 0x623   :  { %2883 = vmatprep.subr.bf16.mxu0 %v3924_v63 }
 0x626   :  { %2884 = vmatpush1.bf16.msra.mxu0 %v3922_v37 }
 0x627   :  { %2885 = vmatprep.subr.bf16.mxu0 %v3927_v27 }
 0x62a   :  { %2886 = vmatpush1.bf16.msra.mxu0 %v3925_v29 }
 0x62b   :  { %2887 = vmatprep.subr.bf16.mxu0 %v3930_v56 }
 0x62e   :  { %2888 = vmatpush1.bf16.msra.mxu0 %v3928_v13 }
 0x62f   :  { %2889 = vmatprep.subr.bf16.mxu0 %v3933_v8 }
 0x632   :  { %2890 = vmatpush1.bf16.msra.mxu0 %v3931_v38 }
 0x633   :  { %2891 = vmatprep.subr.bf16.mxu0 %v3936_v39 }
 0x636   :  { %2892 = vmatpush1.bf16.msra.mxu0 %v3934_v41 }
 0x637   :  { %2893 = vmatprep.subr.bf16.mxu0 %v3939_v0  ;;  %v2986_v0 = vld [vmem:[%s5908_s4 + $0x20] ss:$0 sm:$0xff]  ;;  %s3279_s4 = sshll.u32 %s4120_s28, 4  ;;  %s3280_s4 = int_to_ptr.vmem [resolvable:$true] %s3279_s4 }
 0x638   :  { %s4057_s0 = scalar_lea.vmem %s3280_s4, 32  ;;  %p4062_p11 = scmp.lt.s32.totalorder %s3280_s4, %s3280_s4 }
 0x639   :  { %p4058_p10 = scmp.ne.s32.totalorder %s3280_s4, %s4057_s0  ;;  %p4063_p12 = scmp.lt.s32.totalorder %s4057_s0, %s4057_s0 }
 0x63a   :  { %2894 = vmatpush1.bf16.msra.mxu0 %v3937_v47 }
 0x63b   :  { %2895 = vmatprep.subr.bf16.mxu0 %v3942_v20  ;;  %p4064_p13 = por %p4063_p12, %p4062_p11 }
 0x63d   :  { %p4065_p0 = pnand %p4064_p13, %p4058_p10 }
 0x63e   :  { %2896 = vmatpush1.bf16.msra.mxu0 %v3940_v16 }
 0x63f   :  { %2897 = vmatprep.subr.bf16.mxu0 %v3945_v11 }
 0x642   :  { %2898 = vmatpush1.bf16.msra.mxu0 %v3943_v4 }
 0x643   :  { %2899 = vmatprep.subr.bf16.mxu0 %v3948_v28 }
 0x646   :  { %2900 = vmatpush1.bf16.msra.mxu0 %v3946_v21 }
 0x647   :  { %2901 = vmatprep.subr.bf16.mxu0 %v3951_v10 }
 0x64a   :  { %2902 = vmatpush1.bf16.msra.mxu0 %v3949_v9 }
 0x64b   :  { %2903 = vmatprep.subr.bf16.mxu0 %v3954_v14 }
 0x64e   :  { %2904 = vmatpush1.bf16.msra.mxu0 %v3952_v32 }
 0x651   :  { %2906 = vmatmul.mubr.bf16.vlgmr.msra.gmra.mrb[28].mxu0 %v5866_v62  ;;  %v6097_v62 = vld [vmem:[#allocation18_spill] sm:$0xff] }
 0x652   :  { %v2488_v1 = vrot.slane %v3409_v36, %v6097_v62 }
 0x6e4   :  { %v2866_v50 = vpop.f32.mrb[24].mxu0 }
 0x6e5   :  { %v2867_v17 = vadd.f32 %v2866_v50, %v2480_v6  ;;  %v2868_v7 = vpop.f32.mrb[25].mxu0 }
 0x6e6   :  { %v2869_v31 = vadd.f32 %v2868_v7, %v2484_v25  ;;  %v2870_v55 = vpop.f32.mrb[26].mxu0 }
 0x6e7   :  { %v2914_v53 = vmax.f32 %v2867_v17, 0.0  ;;  %v2871_v57 = vpop.f32.mrb[27].mxu0 }
 0x6e8   :  { %v2915_v18 = vmax.f32 %v2869_v31, 0.0 }
 0x6e9   :  { %v2982_v15 = vpack.c.bf16 %v2914_v53, %v2914_v53 }
 0x6ea   :  { %v2983_v33 = vpack.c.bf16 %v2915_v18, %v2915_v18 }
 0x6ec   :  { %3211 = vmatprep.mubr.bf16.mxu1 %v2983_v33 }
 0x6ed   :  { %3212 = vmatmul.mubr.bf16.vlgmr.msra.gmra.mrb[40].mxu1 %v2982_v15 }
 0x6ee   :  { %3564 = vmatpush3.bf16.msra.mxu1 %v3972_v3 }
 0x6ef   :  { %3565 = vmatprep.subr.bf16.mxu1 %v3973_v42 }
 0x6f2   :  { %3566 = vmatpush3.bf16.msra.mxu1 %v3974_v22 }
 0x6f3   :  { %3567 = vmatprep.subr.bf16.mxu1 %v3975_v19 }
 0x6f6   :  { %3568 = vmatpush3.bf16.msra.mxu1 %v3976_v58 }
 0x6f7   :  { %3569 = vmatprep.subr.bf16.mxu1 %v3977_v23 }
 0x6fa   :  { %3570 = vmatpush3.bf16.msra.mxu1 %v3978_v30 }
 0x6fb   :  { %3571 = vmatprep.subr.bf16.mxu1 %v3979_v45 }
 0x6fe   :  { %3572 = vmatpush3.bf16.msra.mxu1 %v3980_v54 }
 0x6ff   :  { %3573 = vmatprep.subr.bf16.mxu1 %v3981_v34 }
 0x702   :  { %3574 = vmatpush3.bf16.msra.mxu1 %v3982_v52 }
 0x703   :  { %3575 = vmatprep.subr.bf16.mxu1 %v3983_v40 }
 0x706   :  { %3576 = vmatpush3.bf16.msra.mxu1 %v3984_v48 }
 0x707   :  { %3577 = vmatprep.subr.bf16.mxu1 %v3985_v44 }
 0x70a   :  { %3578 = vmatpush3.bf16.msra.mxu1 %v3986_v35 }
 0x724   :  { %v2907_v46 = vpop.f32.mrb[28].mxu0 }
 0x725   :  { %v2908_v60 = vadd.f32 %v2907_v46, %v2488_v1  ;;  %v2909_v43 = vpop.f32.mrb[29].mxu0 }
 0x726   :  { %v2910_v5 = vadd.f32 %v2909_v43, %v2492_v61  ;;  %v2911_v49 = vpop.f32.mrb[30].mxu0 }
 0x727   :  { %v2916_v63 = vmax.f32 %v2908_v60, 0.0  ;;  %v2912_v37 = vpop.f32.mrb[31].mxu0 }
 0x728   :  { %v2917_v27 = vmax.f32 %v2910_v5, 0.0 }
 0x729   :  { %v2984_v56 = vpack.c.bf16 %v2916_v63, %v2916_v63 }
 0x72a   :  { %v2985_v29 = vpack.c.bf16 %v2917_v27, %v2917_v27 }
 0x72c   :  { %3251 = vmatprep.mubr.bf16.mxu1 %v2985_v29 }
 0x72d   :  { %3252 = vmatmul.mubr.bf16.vlgmr.msra.gmra.mrb[44].mxu1 %v2984_v56 }
 0x7c0   :  { %v3557_v13 = vpop.f32.mrb[40].mxu1 }
 0x7c1   :  { %v3558_v8 = vpop.f32.mrb[41].mxu1 }
 0x7c2   :  { %v3559_v38 = vadd.f32 %v3558_v8, %v3557_v13  ;;  %v3560_v39 = vpop.f32.mrb[42].mxu1 }
 0x7c3   :  { %v3561_v41 = vpop.f32.mrb[43].mxu1 }
 0x7c4   :  { %v3214_v16 = vadd.f32 %v3559_v38, %v2986_v0 }
 0x800   :  { %v3579_v47 = vpop.f32.mrb[44].mxu1 }
 0x801   :  { %v3580_v20 = vpop.f32.mrb[45].mxu1 }
 0x802   :  { %v3581_v11 = vadd.f32 %v3580_v20, %v3579_v47  ;;  %v3582_v4 = vpop.f32.mrb[46].mxu1 }
 0x803   :  { %v3583_v28 = vpop.f32.mrb[47].mxu1 }
 0x804   :  { %v3254_v21 = vadd.f32 %v3581_v11, %v3214_v16 }
 0x806   :  { %3259 = vst [vmem:[#allocation8] sm:$0x3] %v3254_v21  ;;  %v3261_v10 = vsel %vm3260_vm12, %v3254_v21, -inf }
 0x807   :  { %3262 = vmax.xlane.f32.xlu0 %v3261_v10 }
 0x894   :  { %v3263_v9 = vpop.xlane.xlu0 %3262 }
 0x895   :  { %v3264_v14 = vsub.f32 %v3254_v21, %v3263_v9 }
 0x897   :  { %v3265_v32 = vmul.f32 1.442695, %v3264_v14 }
 0x899   :  { %3987 = vpow2.f32 %v3265_v32 }
 0x8a3   :  { %v3988_v12 = vpop.eup %3987 }
 0x8a4   :  { %v3267_v2 = vsel %vm3260_vm12, %v3988_v12, 0.0 }
 0x8a5   :  { %3268 = vadd.xlane.f32.xlu1 %v3267_v2 }
 0x8a6   :  { %4068 = shalt.err (!%p4065_p0)
}
 0x8a7   :  { %s4069_s7 = scalar_lea.hbm %s5909_s5, 32 }
 0x8a8   :  { %p4070_p1 = scmp.ne.s32.totalorder %s5909_s5, %s4069_s7  ;;  %p4073_p2 = scmp.lt.u32.totalorder %s4069_s7, %s5909_s5 }
 0x8aa   :  { %p4075_p3 = pnand %p4073_p2, %p4070_p1 }
 0x8ac   :  { %4078 = shalt.err (!%p4075_p3)
}
 0x8ad   :  { %3282 = dma.vmem_to_hbm [thread:$0]  %s3280_s4, 32, %s5909_s5, [#allocation4]  }
 0x8ae   :  { %s4121_s13 = smov [#allocation9]  }
 0x8af   :  { %s3289_s14 = sshll.u32 %s4121_s13, 4  ;;  %s3290_s14 = int_to_ptr.vmem [resolvable:$true] %s3289_s14 }
 0x8b0   :  { %s4079_s15 = scalar_lea.vmem %s3290_s14, 32  ;;  %p4084_p5 = scmp.lt.s32.totalorder %s3290_s14, %s3290_s14 }
 0x8b1   :  { %p4080_p4 = scmp.ne.s32.totalorder %s3290_s14, %s4079_s15  ;;  %p4085_p6 = scmp.lt.s32.totalorder %s4079_s15, %s4079_s15 }
 0x8b3   :  { %p4086_p7 = por %p4085_p6, %p4084_p5 }
 0x8b5   :  { %p4087_p8 = pnand %p4086_p7, %p4080_p4 }
 0x932   :  { %v3269_v26 = vpop.xlane.xlu1 %3268 }
 0x933   :  { %3989 = vrcp.f32 %v3269_v26 }
 0x93d   :  { %v3990_v51 = vpop.eup %3989 }
 0x93e   :  { %v3271_v59 = vmul.f32 %v3990_v51, %v3988_v12 }
 0x940   :  { %3272 = vst [vmem:[#allocation9] sm:$0x3] %v3271_v59 }
 0x941   :  { %4090 = shalt.err (!%p4087_p8)
}
 0x942   :  { %s4091_s3 = scalar_lea.hbm %s5910_s6, 32 }
 0x943   :  { %p4092_p9 = scmp.ne.s32.totalorder %s5910_s6, %s4091_s3  ;;  %p4095_p10 = scmp.lt.u32.totalorder %s4091_s3, %s5910_s6 }
 0x945   :  { %p4097_p11 = pnand %p4095_p10, %p4092_p9 }
 0x947   :  { %4100 = shalt.err (!%p4097_p11)
}
 0x948   :  { %3292 = dma.vmem_to_hbm [thread:$0]  %s3290_s14, 32, %s5910_s6, [#allocation10]  }
 0x949   :  { %4105 = dma.done.wait [#allocation4], 32  }
 0x94a   :  { %4106 = vsyncadd [#allocation4], 4294967264 }
 0x94b   :  { %4107 = dma.done.wait [#allocation10], 32  }
 0x94c   :  { %4108 = vsyncadd [#allocation10], 4294967264 }
 0x94d   :  { %3299 = vsyncpa [#allocation3], 1 }
 0x94e   :  { %3300 = vsyncpa [#allocation6], 1 }
 0x94f   :  { %3301 = vsyncpa [#allocation4], 1 }
 0x950   :  { %3302 = vsyncpa [#allocation10], 1 }

</bundles_post_ra>
